<compile_context>
chip_gen: v7x
topology: tpu7x:2x2x1
jax: 0.10.0
libtpu: 0.0.40
codegen_flags: <defaults>
</compile_context>

<pallas_src>
import math

import jax
import jax.numpy as jnp
from jax.experimental import pallas as pl
from jax.experimental.pallas import tpu as pltpu

EMB = 64            # BipartiteGraphConvolution hard-codes emb_size = 64
LN_EPS = 1e-5       # torch.nn.LayerNorm default eps
NODE_TILE = 512     # row tile for embeddings and conv right-row chunks
EDGE_TILE = 1024    # edge tile for the conv message/scatter phase
MXU_DTYPE = jnp.float32  # set to jnp.bfloat16 for ~2-3x MXU throughput (re-check tolerance)


# ----------------------------------------------------------------------------- helpers
def _round_up(n, m):
    return ((n + m - 1) // m) * m


def _pad_count(n, tile=NODE_TILE):
    """Padded node-row count: multiple of 8 when small, multiple of `tile` when large."""
    n8 = _round_up(max(n, 8), 8)
    return n8 if n8 <= tile else _round_up(n, tile)


def _edge_tiling(e, max_tile=EDGE_TILE):
    e8 = _round_up(max(e, 8), 8)          # guard e == 0 (no edges)
    if e8 <= max_tile:
        return e8, e8                     # single full-extent block
    return max_tile, _round_up(e, max_tile)


def _pad_rows(x, n_p):
    pad = n_p - x.shape[0]
    if pad == 0:
        return x
    return jnp.pad(x, ((0, pad), (0, 0)))


def _ln(x, g, b):
    """LayerNorm over the last axis (biased variance, like torch.nn.LayerNorm)."""
    mu = jnp.mean(x, axis=-1, keepdims=True)
    var = jnp.mean((x - mu) ** 2, axis=-1, keepdims=True)
    return (x - mu) * jax.lax.rsqrt(var + LN_EPS) * g + b


def _dot(a, b):
    """MXU matmul with f32 accumulation; operands cast to MXU_DTYPE (no-op for f32)."""
    return jnp.dot(a.astype(MXU_DTYPE), b.astype(MXU_DTYPE),
                   preferred_element_type=jnp.float32)


def _const1(shape):
    """Full-array block with a constant index map for a 1-axis grid."""
    return pl.BlockSpec(shape, lambda i: (0, 0))


def _conv_vmem_limit(rt, te, out_w, weights):
    """Explicit VMEM budget for a conv pallas_call (with headroom)."""
    w_bytes = sum(math.prod(w.shape) * 4 for w in weights)
    est = 2 * (te * 4 + te * 2 * EMB * 4)            # dst + gathered blocks, double-buffered
    est += 2 * rt * EMB * 4 + 2 * rt * out_w * 4     # right tile + output tile
    est += rt * EMB * 4                              # accumulator scratch
    est += rt * te * 8 + 4 * te * EMB * 4            # one-hot/compare + message temporaries
    est += 2 * w_bytes                               # resident weights (double-buffered)
    return int(min(max(1.5 * est + (2 << 20), 32 << 20), 96 << 20))


# ----------------------------------------------------------------------------- kernels
def embedding_kernel(x_ref, g_ref, bn_ref, w1_ref, b1_ref, w2_ref, b2_ref, o_ref):
    # LayerNorm -> Linear -> tanh -> Linear -> tanh, tiled over node rows.
    x = _ln(x_ref[...], g_ref[...], bn_ref[...])
    h = jnp.tanh(_dot(x, w1_ref[...]) + b1_ref[...])
    o_ref[...] = jnp.tanh(_dot(h, w2_ref[...]) + b2_ref[...])


def _conv_message_step(min_ref, max_ref, dst_ref, gath_ref,
                       w_in_ref, bl_ref, lnf_g_ref, lnf_b_ref, wf_ref, bf_ref,
                       acc_ref):
    """One (right_chunk, edge_tile) step: message MLP + banded MXU scatter-add."""
    r = pl.program_id(0)
    e = pl.program_id(1)

    @pl.when(e == 0)
    def _():
        acc_ref[...] = jnp.zeros_like(acc_ref)

    rt = acc_ref.shape[0]
    row_lo = r * rt
    # Edges are sorted by dst; skip edge tiles whose dst band misses this chunk.
    has_work = jnp.logical_and(max_ref[e] >= row_lo, min_ref[e] < row_lo + rt)

    @pl.when(has_work)
    def _():
        # message(): single K=128 matmul over [right_i | left_j]; the constant
        # edge term (edge-LayerNorm bias * W_edge) is pre-folded into bl.
        joint = _dot(gath_ref[...], w_in_ref[...]) + bl_ref[...]
        msg = _dot(jnp.maximum(_ln(joint, lnf_g_ref[...], lnf_b_ref[...]), 0.0),
                   wf_ref[...]) + bf_ref[...]
        # 'add' aggregation: one-hot built from a sublane iota vs. the dst row
        # (never touches HBM; padded edges have dst == -1 so they never match).
        row_ids = row_lo + jax.lax.broadcasted_iota(jnp.int32, (rt, 1), 0)
        onehot = (row_ids == dst_ref[...]).astype(jnp.float32)
        acc_ref[...] += _dot(onehot, msg)


def _conv_epilogue(acc, right, lnp_g, lnp_b, wo1, bo1, wo2, bo2):
    # post_conv_module (LayerNorm) + output_module on concat([post, right]);
    # the two K=64 matmuls are fused into one K=128 contraction.
    post = _ln(acc, lnp_g, lnp_b)
    cat = jnp.concatenate([post, right], axis=-1)
    h = jnp.maximum(_dot(cat, wo1) + bo1, 0.0)
    return _dot(h, wo2) + bo2


def conv_kernel(min_ref, max_ref, dst_ref, gath_ref, right_ref,
                w_in_ref, bl_ref, lnf_g_ref, lnf_b_ref, wf_ref, bf_ref,
                lnp_g_ref, lnp_b_ref, wo1_ref, bo1_ref, wo2_ref, bo2_ref,
                o_ref, acc_ref):
    _conv_message_step(min_ref, max_ref, dst_ref, gath_ref,
                       w_in_ref, bl_ref, lnf_g_ref, lnf_b_ref, wf_ref, bf_ref,
                       acc_ref)

    @pl.when(pl.program_id(1) == pl.num_programs(1) - 1)
    def _():
        o_ref[...] = _conv_epilogue(acc_ref[...], right_ref[...],
                                    lnp_g_ref[...], lnp_b_ref[...],
                                    wo1_ref[...], bo1_ref[...],
                                    wo2_ref[...], bo2_ref[...])


def conv_output_kernel(min_ref, max_ref, dst_ref, gath_ref, right_ref,
                       w_in_ref, bl_ref, lnf_g_ref, lnf_b_ref, wf_ref, bf_ref,
                       lnp_g_ref, lnp_b_ref, wo1_ref, bo1_ref, wo2_ref, bo2_ref,
                       w1o_ref, b1o_ref, w2row_ref,
                       o_ref, acc_ref):
    # Final conv layer with the policy output head fused in as an epilogue.
    _conv_message_step(min_ref, max_ref, dst_ref, gath_ref,
                       w_in_ref, bl_ref, lnf_g_ref, lnf_b_ref, wf_ref, bf_ref,
                       acc_ref)

    @pl.when(pl.program_id(1) == pl.num_programs(1) - 1)
    def _():
        conv_out = _conv_epilogue(acc_ref[...], right_ref[...],
                                  lnp_g_ref[...], lnp_b_ref[...],
                                  wo1_ref[...], bo1_ref[...],
                                  wo2_ref[...], bo2_ref[...])
        t = jnp.tanh(_dot(conv_out, w1o_ref[...]) + b1o_ref[...])
        logits = jnp.sum(t * w2row_ref[...], axis=-1, keepdims=True)
        prob = 1.0 / (1.0 + jnp.exp(-logits))
        # Small graphs: lane-dense broadcast (unmasked stores); large graphs:
        # o_ref is (rt, 1) so this is a plain 1-lane column store (128x fewer bytes).
        o_ref[...] = jnp.broadcast_to(prob, o_ref.shape)


# ----------------------------------------------------------------------------- pallas wrappers
def embed(x, p, n_p):
    n, f = x.shape
    t = min(n_p, NODE_TILE)
    x_p = _pad_rows(x, n_p)
    g, bn, w1, b1, w2, b2 = p
    return pl.pallas_call(
        embedding_kernel,
        out_shape=jax.ShapeDtypeStruct((n_p, EMB), jnp.float32),
        grid=(n_p // t,),
        in_specs=[pl.BlockSpec((t, f), lambda i: (i, 0)),
                  _const1((1, f)), _const1((1, f)),
                  _const1((f, EMB)), _const1((1, EMB)),
                  _const1((EMB, EMB)), _const1((1, EMB))],
        out_specs=pl.BlockSpec((t, EMB), lambda i: (i, 0)),
        compiler_params=pltpu.CompilerParams(dimension_semantics=("parallel",)),
    )(x_p, g, bn, w1, b1, w2, b2)


def bipartite_conv(conv_p, left, right, src, dst, head=None):
    """One BipartiteGraphConvolution layer.

    left/right: padded (rows, EMB) node tables; src/dst index only valid rows.
    Grid: (right_row_tiles ["parallel"], edge_tiles ["arbitrary"]).  The per-chunk
    accumulator and output block stay resident across the edge axis; edge tiles
    whose dst band misses the chunk are skipped via scalar-prefetched min/max.
    """
    n_right_p = right.shape[0]
    rt = min(n_right_p, NODE_TILE)
    e = src.shape[0]
    te, e_p = _edge_tiling(e)
    nr_tiles, ne_tiles = n_right_p // rt, e_p // te

    # Sort edges by destination so each edge tile covers a narrow dst band
    # (enables per-tile skip; changes f32 summation order only).
    order = jnp.argsort(dst)
    src_s, dst_s = src[order], dst[order]

    # Endpoint gather + lane-concat in glue -> one (E, 128) operand for the
    # fused K=128 message matmul.
    # TODO(synk): move this gather in-kernel (VMEM-resident node tables) to
    # avoid the (E,128) HBM round trip between pallas_calls.
    gathered = _pad_rows(jnp.concatenate([right[dst_s], left[src_s]], axis=-1), e_p)

    # Scatter targets (-1 padding never matches a row) + per-tile dst band.
    dst_pad = jnp.full((e_p,), -1, jnp.int32).at[:e].set(dst_s)
    dst_tiles = dst_pad.reshape(ne_tiles, te)
    tile_min = dst_tiles.min(axis=1)   # padded lanes give -1: conservative, still correct
    tile_max = dst_tiles.max(axis=1)
    dst_scat = dst_pad.reshape(1, e_p)

    weights = list(conv_p) + (list(head) if head is not None else [])
    args = [tile_min, tile_max, dst_scat, gathered, right, *weights]
    in_specs = [pl.BlockSpec((1, te), lambda r, e, mn, mx: (0, e)),
                pl.BlockSpec((te, 2 * EMB), lambda r, e, mn, mx: (e, 0)),
                pl.BlockSpec((rt, EMB), lambda r, e, mn, mx: (r, 0))]
    in_specs += [pl.BlockSpec(w.shape, lambda r, e, mn, mx: (0, 0)) for w in weights]

    if head is None:
        kernel = conv_kernel
        out_w = EMB
    else:
        kernel = conv_output_kernel
        out_w = 128 if n_right_p <= 4096 else 1   # avoid write amplification at scale

    out_shape = jax.ShapeDtypeStruct((n_right_p, out_w), jnp.float32)
    out_spec = pl.BlockSpec((rt, out_w), lambda r, e, mn, mx: (r, 0))

    return pl.pallas_call(
        kernel,
        out_shape=out_shape,
        grid_spec=pltpu.PrefetchScalarGridSpec(
            num_scalar_prefetch=2,
            grid=(nr_tiles, ne_tiles),
            in_specs=in_specs,
            out_specs=out_spec,
            scratch_shapes=[pltpu.VMEM((rt, EMB), jnp.float32)]),
        compiler_params=pltpu.CompilerParams(
            dimension_semantics=("parallel", "arbitrary"),
            vmem_limit_bytes=_conv_vmem_limit(rt, te, out_w, weights)),
    )(*args)


def _prep_conv(p, edge_bias):
    """Trace-time weight prep: stack both pairs of K=64 weights into K=128
    matrices and fold the (constant) edge term into the message bias."""
    (wl, bl, we, wr, lnf_g, lnf_b, wf, bf, lnp_g, lnp_b,
     wo1a, wo1b, bo1, wo2, bo2) = p
    w_in = jnp.concatenate([wl, wr], axis=0)    # (128, 64): rows for [right_i | left_j]
    wo1 = jnp.concatenate([wo1a, wo1b], axis=0)  # (128, 64): rows for [post | right]
    bl_eff = bl + edge_bias * we                # LayerNorm(1-dim edge feature) == its bias
    return (w_in, bl_eff, lnf_g, lnf_b, wf, bf, lnp_g, lnp_b, wo1, bo1, wo2, bo2)


# ----------------------------------------------------------------------------- parameters
def _uniform(key, shape, fan_in):
    bound = 1.0 / math.sqrt(fan_in)
    return jax.random.uniform(key, shape, jnp.float32, -bound, bound)


def _ln_params(k, n):
    k0, k1 = jax.random.split(k)
    g = 1.0 + 0.01 * jax.random.normal(k0, (1, n), jnp.float32)
    b = 0.01 * jax.random.normal(k1, (1, n), jnp.float32)
    return g, b


def init_embedding_params(key, nfeats):
    ks = jax.random.split(key, 5)
    g, bn = _ln_params(ks[0], nfeats)
    w1 = _uniform(ks[1], (nfeats, EMB), nfeats)
    b1 = _uniform(ks[2], (1, EMB), nfeats)
    w2 = _uniform(ks[3], (EMB, EMB), EMB)
    b2 = _uniform(ks[4], (1, EMB), EMB)
    return (g, bn, w1, b1, w2, b2)


def init_conv_params(key):
    ks = jax.random.split(key, 13)
    wl = _uniform(ks[0], (EMB, EMB), EMB)
    bl = _uniform(ks[1], (1, EMB), EMB)
    we = _uniform(ks[2], (1, EMB), 1)                 # Linear(1, EMB, bias=False)
    wr = _uniform(ks[3], (EMB, EMB), EMB)             # Linear(EMB, EMB, bias=False)
    lnf_g, lnf_b = _ln_params(ks[4], EMB)
    wf = _uniform(ks[5], (EMB, EMB), EMB)
    bf = _uniform(ks[6], (1, EMB), EMB)
    lnp_g, lnp_b = _ln_params(ks[7], EMB)
    wo1a = _uniform(ks[8], (EMB, EMB), 2 * EMB)       # Linear(2*EMB, EMB) split in halves
    wo1b = _uniform(ks[9], (EMB, EMB), 2 * EMB)
    bo1 = _uniform(ks[10], (1, EMB), 2 * EMB)
    wo2 = _uniform(ks[11], (EMB, EMB), EMB)
    bo2 = _uniform(ks[12], (1, EMB), EMB)
    return (wl, bl, we, wr, lnf_g, lnf_b, wf, bf, lnp_g, lnp_b, wo1a, wo1b, bo1, wo2, bo2)


def init_policy_params(key, cons_nfeats, edge_nfeats, var_nfeats):
    ks = jax.random.split(key, 8)
    return {
        "cons_emb": init_embedding_params(ks[0], cons_nfeats),
        "edge_emb": _ln_params(ks[1], edge_nfeats),
        "var_emb": init_embedding_params(ks[2], var_nfeats),
        "conv_v_to_c": init_conv_params(ks[3]),
        "conv_c_to_v": init_conv_params(ks[4]),
        "conv_v_to_c2": init_conv_params(ks[5]),
        "conv_c_to_v2": init_conv_params(ks[6]),
        "output": (
            _uniform(jax.random.fold_in(ks[7], 0), (EMB, EMB), EMB),
            _uniform(jax.random.fold_in(ks[7], 1), (1, EMB), EMB),
            _uniform(jax.random.fold_in(ks[7], 2), (1, EMB), EMB),  # row of Linear(EMB,1,no bias)
        ),
    }


# ----------------------------------------------------------------------------- forward (Pallas)
@jax.jit
def policy_forward(params, constraint_features, edge_indices, edge_features, variable_features):
    # NOTE: LayerNorm over the 1-dim edge feature collapses to its bias, so the
    # edge feature *values* do not affect the output (matches torch semantics).
    del edge_features
    n_cons = constraint_features.shape[0]
    n_vars = variable_features.shape[0]
    n_cons_p = _pad_count(n_cons)
    n_vars_p = _pad_count(n_vars)
    c_idx = edge_indices[0].astype(jnp.int32)     # constraint endpoint of each edge
    v_idx = edge_indices[1].astype(jnp.int32)     # variable endpoint of each edge

    cons = embed(constraint_features, params["cons_emb"], n_cons_p)   # (n_cons_p, EMB)
    var = embed(variable_features, params["var_emb"], n_vars_p)       # (n_vars_p, EMB)

    edge_bias = params["edge_emb"][1][0, 0]
    conv1 = _prep_conv(params["conv_v_to_c"], edge_bias)
    conv2 = _prep_conv(params["conv_c_to_v"], edge_bias)
    conv3 = _prep_conv(params["conv_v_to_c2"], edge_bias)
    conv4 = _prep_conv(params["conv_c_to_v2"], edge_bias)

    # conv_v_to_c: left=variables (src v_idx), right=constraints (dst c_idx) [reversed edges]
    cons = bipartite_conv(conv1, var, cons, src=v_idx, dst=c_idx)
    # conv_c_to_v: left=constraints (src c_idx), right=variables (dst v_idx)
    var = bipartite_conv(conv2, cons, var, src=c_idx, dst=v_idx)
    cons = bipartite_conv(conv3, var, cons, src=v_idx, dst=c_idx)
    # Final layer: output head fused into the conv kernel.
    probs = bipartite_conv(conv4, cons, var, src=c_idx, dst=v_idx, head=params["output"])
    return probs[:n_vars, 0]                                          # squeeze(-1)


# ----------------------------------------------------------------------------- pure-JAX reference
def ref_forward(params, constraint_features, edge_indices, edge_features, variable_features):
    def emb(x, p):
        g, bn, w1, b1, w2, b2 = p
        x = _ln(x, g, bn)
        return jnp.tanh(jnp.tanh(x @ w1 + b1) @ w2 + b2)

    def conv(p, left, edge, right, src, dst):
        wl, bl, we, wr, lnf_g, lnf_b, wf, bf, lnp_g, lnp_b, wo1a, wo1b, bo1, wo2, bo2 = p
        joint = right[dst] @ wl + bl + edge * we + left[src] @ wr
        msg = jnp.maximum(_ln(joint, lnf_g, lnf_b), 0.0) @ wf + bf
        agg = jax.ops.segment_sum(msg, dst, num_segments=right.shape[0])
        post = _ln(agg, lnp_g, lnp_b)
        h = jnp.maximum(post @ wo1a + right @ wo1b + bo1, 0.0)
        return h @ wo2 + bo2

    c_idx, v_idx = edge_indices[0], edge_indices[1]
    cons = emb(constraint_features, params["cons_emb"])
    var = emb(variable_features, params["var_emb"])
    edge = _ln(edge_features, *params["edge_emb"])
    cons = conv(params["conv_v_to_c"], var, edge, cons, v_idx, c_idx)
    var = conv(params["conv_c_to_v"], cons, edge, var, c_idx, v_idx)
    cons = conv(params["conv_v_to_c2"], var, edge, cons, v_idx, c_idx)
    var = conv(params["conv_c_to_v2"], cons, edge, var, c_idx, v_idx)
    w1, b1, w2row = params["output"]
    h = jnp.tanh(var @ w1 + b1)
    logits = jnp.sum(h * w2row, axis=-1)
    return 1.0 / (1.0 + jnp.exp(-logits))


# ----------------------------------------------------------------------------- main
if __name__ == "__main__":
    cons_nfeats, edge_nfeats, var_nfeats = 4, 1, 6
    n_cons, n_vars, n_edges = 16, 24, 48

    key = jax.random.PRNGKey(0)
    k_par, k_c, k_v, k_e, k_ic, k_iv = jax.random.split(key, 6)

    params = init_policy_params(k_par, cons_nfeats, edge_nfeats, var_nfeats)

    constraint_features = jax.random.normal(k_c, (n_cons, cons_nfeats), jnp.float32)
    variable_features = jax.random.normal(k_v, (n_vars, var_nfeats), jnp.float32)
    edge_features = jax.random.normal(k_e, (n_edges, edge_nfeats), jnp.float32)
    edge_indices = jnp.stack([
        jax.random.randint(k_ic, (n_edges,), 0, n_cons, jnp.int32),   # row 0: constraint idx
        jax.random.randint(k_iv, (n_edges,), 0, n_vars, jnp.int32),   # row 1: variable idx
    ], axis=0)

    out = policy_forward(params, constraint_features, edge_indices, edge_features,
                         variable_features)
    out = jax.block_until_ready(out)

    ref = jax.block_until_ready(
        ref_forward(params, constraint_features, edge_indices, edge_features,
                    variable_features))

    assert out.shape == (n_vars,), out.shape
    assert bool(jnp.all(jnp.isfinite(out)))
    assert bool(jnp.allclose(out, ref, atol=2e-3, rtol=2e-3)), (out, ref)
    print("KERNEL_OK")
</pallas_src>

<mosaic_0001>
module attributes {stable_mosaic.version = 11 : i64} {
  func.func @embedding_kernel(%arg0: i32, %arg1: memref<16x4xf32, #tpu.memory_space<vmem>>, %arg2: memref<1x4xf32, #tpu.memory_space<vmem>>, %arg3: memref<1x4xf32, #tpu.memory_space<vmem>>, %arg4: memref<4x64xf32, #tpu.memory_space<vmem>>, %arg5: memref<1x64xf32, #tpu.memory_space<vmem>>, %arg6: memref<64x64xf32, #tpu.memory_space<vmem>>, %arg7: memref<1x64xf32, #tpu.memory_space<vmem>>, %arg8: memref<16x64xf32, #tpu.memory_space<vmem>>) attributes {dimension_semantics = [#tpu.dimension_semantics<parallel>], iteration_bounds = array<i64: 1>, scalar_prefetch = 0 : i64, scratch_operands = 0 : i64, tpu.core_type = #tpu.core_type<tc>, window_params = [{transform_indices = @transform_0, window_bounds = array<i64: 16, 4>}, {pipeline_mode = #tpu.pipeline_mode<synchronous>, transform_indices = @transform_1, window_bounds = array<i64: 1, 4>}, {pipeline_mode = #tpu.pipeline_mode<synchronous>, transform_indices = @transform_2, window_bounds = array<i64: 1, 4>}, {pipeline_mode = #tpu.pipeline_mode<synchronous>, transform_indices = @transform_3, window_bounds = array<i64: 4, 64>}, {pipeline_mode = #tpu.pipeline_mode<synchronous>, transform_indices = @transform_4, window_bounds = array<i64: 1, 64>}, {pipeline_mode = #tpu.pipeline_mode<synchronous>, transform_indices = @transform_5, window_bounds = array<i64: 64, 64>}, {pipeline_mode = #tpu.pipeline_mode<synchronous>, transform_indices = @transform_6, window_bounds = array<i64: 1, 64>}, {transform_indices = @transform_7, window_bounds = array<i64: 16, 64>}]} {
    %c0 = arith.constant 0 : index
    %c0_0 = arith.constant 0 : index
    %0 = vector.load %arg1[%c0, %c0_0] : memref<16x4xf32, #tpu.memory_space<vmem>>, vector<16x4xf32>
    %c0_1 = arith.constant 0 : index
    %c0_2 = arith.constant 0 : index
    %1 = vector.load %arg2[%c0_1, %c0_2] : memref<1x4xf32, #tpu.memory_space<vmem>>, vector<1x4xf32>
    %c0_3 = arith.constant 0 : index
    %c0_4 = arith.constant 0 : index
    %2 = vector.load %arg3[%c0_3, %c0_4] : memref<1x4xf32, #tpu.memory_space<vmem>>, vector<1x4xf32>
    %cst = arith.constant dense<0.000000e+00> : vector<16xf32>
    %3 = vector.multi_reduction <add>, %0, %cst [1] : vector<16x4xf32> to vector<16xf32>
    %4 = vector.shape_cast %3 : vector<16xf32> to vector<16x1xf32>
    %cst_5 = arith.constant 4.000000e+00 : f32
    %5 = vector.broadcast %cst_5 : f32 to vector<16x1xf32>
    %6 = arith.divf %4, %5 : vector<16x1xf32>
    %7 = vector.broadcast %6 : vector<16x1xf32> to vector<16x4xf32>
    %8 = arith.subf %0, %7 : vector<16x4xf32>
    %9 = arith.mulf %8, %8 : vector<16x4xf32>
    %cst_6 = arith.constant dense<0.000000e+00> : vector<16xf32>
    %10 = vector.multi_reduction <add>, %9, %cst_6 [1] : vector<16x4xf32> to vector<16xf32>
    %11 = vector.shape_cast %10 : vector<16xf32> to vector<16x1xf32>
    %cst_7 = arith.constant 4.000000e+00 : f32
    %12 = vector.broadcast %cst_7 : f32 to vector<16x1xf32>
    %13 = arith.divf %11, %12 : vector<16x1xf32>
    %14 = vector.broadcast %6 : vector<16x1xf32> to vector<16x4xf32>
    %15 = arith.subf %0, %14 : vector<16x4xf32>
    %cst_8 = arith.constant 9.99999974E-6 : f32
    %16 = vector.broadcast %cst_8 : f32 to vector<16x1xf32>
    %17 = arith.addf %13, %16 : vector<16x1xf32>
    %18 = math.rsqrt %17 : vector<16x1xf32>
    %19 = vector.broadcast %18 : vector<16x1xf32> to vector<16x4xf32>
    %20 = arith.mulf %15, %19 : vector<16x4xf32>
    %21 = vector.broadcast %1 : vector<1x4xf32> to vector<16x4xf32>
    %22 = arith.mulf %20, %21 : vector<16x4xf32>
    %23 = vector.broadcast %2 : vector<1x4xf32> to vector<16x4xf32>
    %24 = arith.addf %22, %23 : vector<16x4xf32>
    %c0_9 = arith.constant 0 : index
    %c0_10 = arith.constant 0 : index
    %25 = vector.load %arg4[%c0_9, %c0_10] : memref<4x64xf32, #tpu.memory_space<vmem>>, vector<4x64xf32>
    %cst_11 = arith.constant dense<0.000000e+00> : vector<16x64xf32>
    %26 = tpu.matmul %24, %25, %cst_11 {dimension_numbers = #tpu.dot_dimension_numbers<[1], [0], [0], [1], [0, 0, 1, 1], [], []>} : vector<16x4xf32>, vector<4x64xf32>, vector<16x64xf32> -> vector<16x64xf32>
    %c0_12 = arith.constant 0 : index
    %c0_13 = arith.constant 0 : index
    %27 = vector.load %arg5[%c0_12, %c0_13] : memref<1x64xf32, #tpu.memory_space<vmem>>, vector<1x64xf32>
    %28 = vector.broadcast %27 : vector<1x64xf32> to vector<16x64xf32>
    %29 = arith.addf %26, %28 : vector<16x64xf32>
    %30 = math.tanh %29 : vector<16x64xf32>
    %c0_14 = arith.constant 0 : index
    %c0_15 = arith.constant 0 : index
    %31 = vector.load %arg6[%c0_14, %c0_15] : memref<64x64xf32, #tpu.memory_space<vmem>>, vector<64x64xf32>
    %cst_16 = arith.constant dense<0.000000e+00> : vector<16x64xf32>
    %32 = tpu.matmul %30, %31, %cst_16 {dimension_numbers = #tpu.dot_dimension_numbers<[1], [0], [0], [1], [0, 0, 1, 1], [], []>} : vector<16x64xf32>, vector<64x64xf32>, vector<16x64xf32> -> vector<16x64xf32>
    %c0_17 = arith.constant 0 : index
    %c0_18 = arith.constant 0 : index
    %33 = vector.load %arg7[%c0_17, %c0_18] : memref<1x64xf32, #tpu.memory_space<vmem>>, vector<1x64xf32>
    %34 = vector.broadcast %33 : vector<1x64xf32> to vector<16x64xf32>
    %35 = arith.addf %32, %34 : vector<16x64xf32>
    %36 = math.tanh %35 : vector<16x64xf32>
    %c0_19 = arith.constant 0 : index
    %c0_20 = arith.constant 0 : index
    %37 = vector.load %arg8[%c0_19, %c0_20] : memref<16x64xf32, #tpu.memory_space<vmem>>, vector<16x64xf32>
    tpu.vector_store %arg8[%c0_19, %c0_20], %36 {strides = array<i32>} : memref<16x64xf32, #tpu.memory_space<vmem>>, vector<16x64xf32>,
    return
  }
  func.func @transform_0(%arg0: i32) -> (i32, i32) {
    %c0_i32 = arith.constant 0 : i32
    %c0_i32_0 = arith.constant 0 : i32
    return %arg0, %c0_i32 : i32, i32
  }
  func.func @transform_1(%arg0: i32) -> (i32, i32) {
    %c0_i32 = arith.constant 0 : i32
    %c0_i32_0 = arith.constant 0 : i32
    %c0_i32_1 = arith.constant 0 : i32
    return %c0_i32, %c0_i32_0 : i32, i32
  }
  func.func @transform_2(%arg0: i32) -> (i32, i32) {
    %c0_i32 = arith.constant 0 : i32
    %c0_i32_0 = arith.constant 0 : i32
    %c0_i32_1 = arith.constant 0 : i32
    return %c0_i32, %c0_i32_0 : i32, i32
  }
  func.func @transform_3(%arg0: i32) -> (i32, i32) {
    %c0_i32 = arith.constant 0 : i32
    %c0_i32_0 = arith.constant 0 : i32
    %c0_i32_1 = arith.constant 0 : i32
    return %c0_i32, %c0_i32_0 : i32, i32
  }
  func.func @transform_4(%arg0: i32) -> (i32, i32) {
    %c0_i32 = arith.constant 0 : i32
    %c0_i32_0 = arith.constant 0 : i32
    %c0_i32_1 = arith.constant 0 : i32
    return %c0_i32, %c0_i32_0 : i32, i32
  }
  func.func @transform_5(%arg0: i32) -> (i32, i32) {
    %c0_i32 = arith.constant 0 : i32
    %c0_i32_0 = arith.constant 0 : i32
    %c0_i32_1 = arith.constant 0 : i32
    return %c0_i32, %c0_i32_0 : i32, i32
  }
  func.func @transform_6(%arg0: i32) -> (i32, i32) {
    %c0_i32 = arith.constant 0 : i32
    %c0_i32_0 = arith.constant 0 : i32
    %c0_i32_1 = arith.constant 0 : i32
    return %c0_i32, %c0_i32_0 : i32, i32
  }
  func.func @transform_7(%arg0: i32) -> (i32, i32) {
    %c0_i32 = arith.constant 0 : i32
    %c0_i32_0 = arith.constant 0 : i32
    return %arg0, %c0_i32 : i32, i32
  }
}

module attributes {stable_mosaic.version = 11 : i64} {
  func.func @embedding_kernel(%arg0: i32, %arg1: memref<24x6xf32, #tpu.memory_space<vmem>>, %arg2: memref<1x6xf32, #tpu.memory_space<vmem>>, %arg3: memref<1x6xf32, #tpu.memory_space<vmem>>, %arg4: memref<6x64xf32, #tpu.memory_space<vmem>>, %arg5: memref<1x64xf32, #tpu.memory_space<vmem>>, %arg6: memref<64x64xf32, #tpu.memory_space<vmem>>, %arg7: memref<1x64xf32, #tpu.memory_space<vmem>>, %arg8: memref<24x64xf32, #tpu.memory_space<vmem>>) attributes {dimension_semantics = [#tpu.dimension_semantics<parallel>], iteration_bounds = array<i64: 1>, scalar_prefetch = 0 : i64, scratch_operands = 0 : i64, tpu.core_type = #tpu.core_type<tc>, window_params = [{transform_indices = @transform_0, window_bounds = array<i64: 24, 6>}, {pipeline_mode = #tpu.pipeline_mode<synchronous>, transform_indices = @transform_1, window_bounds = array<i64: 1, 6>}, {pipeline_mode = #tpu.pipeline_mode<synchronous>, transform_indices = @transform_2, window_bounds = array<i64: 1, 6>}, {pipeline_mode = #tpu.pipeline_mode<synchronous>, transform_indices = @transform_3, window_bounds = array<i64: 6, 64>}, {pipeline_mode = #tpu.pipeline_mode<synchronous>, transform_indices = @transform_4, window_bounds = array<i64: 1, 64>}, {pipeline_mode = #tpu.pipeline_mode<synchronous>, transform_indices = @transform_5, window_bounds = array<i64: 64, 64>}, {pipeline_mode = #tpu.pipeline_mode<synchronous>, transform_indices = @transform_6, window_bounds = array<i64: 1, 64>}, {transform_indices = @transform_7, window_bounds = array<i64: 24, 64>}]} {
    %c0 = arith.constant 0 : index
    %c0_0 = arith.constant 0 : index
    %0 = vector.load %arg1[%c0, %c0_0] : memref<24x6xf32, #tpu.memory_space<vmem>>, vector<24x6xf32>
    %c0_1 = arith.constant 0 : index
    %c0_2 = arith.constant 0 : index
    %1 = vector.load %arg2[%c0_1, %c0_2] : memref<1x6xf32, #tpu.memory_space<vmem>>, vector<1x6xf32>
    %c0_3 = arith.constant 0 : index
    %c0_4 = arith.constant 0 : index
    %2 = vector.load %arg3[%c0_3, %c0_4] : memref<1x6xf32, #tpu.memory_space<vmem>>, vector<1x6xf32>
    %cst = arith.constant dense<0.000000e+00> : vector<24xf32>
    %3 = vector.multi_reduction <add>, %0, %cst [1] : vector<24x6xf32> to vector<24xf32>
    %4 = vector.shape_cast %3 : vector<24xf32> to vector<24x1xf32>
    %cst_5 = arith.constant 6.000000e+00 : f32
    %5 = vector.broadcast %cst_5 : f32 to vector<24x1xf32>
    %6 = arith.divf %4, %5 : vector<24x1xf32>
    %7 = vector.broadcast %6 : vector<24x1xf32> to vector<24x6xf32>
    %8 = arith.subf %0, %7 : vector<24x6xf32>
    %9 = arith.mulf %8, %8 : vector<24x6xf32>
    %cst_6 = arith.constant dense<0.000000e+00> : vector<24xf32>
    %10 = vector.multi_reduction <add>, %9, %cst_6 [1] : vector<24x6xf32> to vector<24xf32>
    %11 = vector.shape_cast %10 : vector<24xf32> to vector<24x1xf32>
    %cst_7 = arith.constant 6.000000e+00 : f32
    %12 = vector.broadcast %cst_7 : f32 to vector<24x1xf32>
    %13 = arith.divf %11, %12 : vector<24x1xf32>
    %14 = vector.broadcast %6 : vector<24x1xf32> to vector<24x6xf32>
    %15 = arith.subf %0, %14 : vector<24x6xf32>
    %cst_8 = arith.constant 9.99999974E-6 : f32
    %16 = vector.broadcast %cst_8 : f32 to vector<24x1xf32>
    %17 = arith.addf %13, %16 : vector<24x1xf32>
    %18 = math.rsqrt %17 : vector<24x1xf32>
    %19 = vector.broadcast %18 : vector<24x1xf32> to vector<24x6xf32>
    %20 = arith.mulf %15, %19 : vector<24x6xf32>
    %21 = vector.broadcast %1 : vector<1x6xf32> to vector<24x6xf32>
    %22 = arith.mulf %20, %21 : vector<24x6xf32>
    %23 = vector.broadcast %2 : vector<1x6xf32> to vector<24x6xf32>
    %24 = arith.addf %22, %23 : vector<24x6xf32>
    %c0_9 = arith.constant 0 : index
    %c0_10 = arith.constant 0 : index
    %25 = vector.load %arg4[%c0_9, %c0_10] : memref<6x64xf32, #tpu.memory_space<vmem>>, vector<6x64xf32>
    %cst_11 = arith.constant dense<0.000000e+00> : vector<24x64xf32>
    %26 = tpu.matmul %24, %25, %cst_11 {dimension_numbers = #tpu.dot_dimension_numbers<[1], [0], [0], [1], [0, 0, 1, 1], [], []>} : vector<24x6xf32>, vector<6x64xf32>, vector<24x64xf32> -> vector<24x64xf32>
    %c0_12 = arith.constant 0 : index
    %c0_13 = arith.constant 0 : index
    %27 = vector.load %arg5[%c0_12, %c0_13] : memref<1x64xf32, #tpu.memory_space<vmem>>, vector<1x64xf32>
    %28 = vector.broadcast %27 : vector<1x64xf32> to vector<24x64xf32>
    %29 = arith.addf %26, %28 : vector<24x64xf32>
    %30 = math.tanh %29 : vector<24x64xf32>
    %c0_14 = arith.constant 0 : index
    %c0_15 = arith.constant 0 : index
    %31 = vector.load %arg6[%c0_14, %c0_15] : memref<64x64xf32, #tpu.memory_space<vmem>>, vector<64x64xf32>
    %cst_16 = arith.constant dense<0.000000e+00> : vector<24x64xf32>
    %32 = tpu.matmul %30, %31, %cst_16 {dimension_numbers = #tpu.dot_dimension_numbers<[1], [0], [0], [1], [0, 0, 1, 1], [], []>} : vector<24x64xf32>, vector<64x64xf32>, vector<24x64xf32> -> vector<24x64xf32>
    %c0_17 = arith.constant 0 : index
    %c0_18 = arith.constant 0 : index
    %33 = vector.load %arg7[%c0_17, %c0_18] : memref<1x64xf32, #tpu.memory_space<vmem>>, vector<1x64xf32>
    %34 = vector.broadcast %33 : vector<1x64xf32> to vector<24x64xf32>
    %35 = arith.addf %32, %34 : vector<24x64xf32>
    %36 = math.tanh %35 : vector<24x64xf32>
    %c0_19 = arith.constant 0 : index
    %c0_20 = arith.constant 0 : index
    %37 = vector.load %arg8[%c0_19, %c0_20] : memref<24x64xf32, #tpu.memory_space<vmem>>, vector<24x64xf32>
    tpu.vector_store %arg8[%c0_19, %c0_20], %36 {strides = array<i32>} : memref<24x64xf32, #tpu.memory_space<vmem>>, vector<24x64xf32>,
    return
  }
  func.func @transform_0(%arg0: i32) -> (i32, i32) {
    %c0_i32 = arith.constant 0 : i32
    %c0_i32_0 = arith.constant 0 : i32
    return %arg0, %c0_i32 : i32, i32
  }
  func.func @transform_1(%arg0: i32) -> (i32, i32) {
    %c0_i32 = arith.constant 0 : i32
    %c0_i32_0 = arith.constant 0 : i32
    %c0_i32_1 = arith.constant 0 : i32
    return %c0_i32, %c0_i32_0 : i32, i32
  }
  func.func @transform_2(%arg0: i32) -> (i32, i32) {
    %c0_i32 = arith.constant 0 : i32
    %c0_i32_0 = arith.constant 0 : i32
    %c0_i32_1 = arith.constant 0 : i32
    return %c0_i32, %c0_i32_0 : i32, i32
  }
  func.func @transform_3(%arg0: i32) -> (i32, i32) {
    %c0_i32 = arith.constant 0 : i32
    %c0_i32_0 = arith.constant 0 : i32
    %c0_i32_1 = arith.constant 0 : i32
    return %c0_i32, %c0_i32_0 : i32, i32
  }
  func.func @transform_4(%arg0: i32) -> (i32, i32) {
    %c0_i32 = arith.constant 0 : i32
    %c0_i32_0 = arith.constant 0 : i32
    %c0_i32_1 = arith.constant 0 : i32
    return %c0_i32, %c0_i32_0 : i32, i32
  }
  func.func @transform_5(%arg0: i32) -> (i32, i32) {
    %c0_i32 = arith.constant 0 : i32
    %c0_i32_0 = arith.constant 0 : i32
    %c0_i32_1 = arith.constant 0 : i32
    return %c0_i32, %c0_i32_0 : i32, i32
  }
  func.func @transform_6(%arg0: i32) -> (i32, i32) {
    %c0_i32 = arith.constant 0 : i32
    %c0_i32_0 = arith.constant 0 : i32
    %c0_i32_1 = arith.constant 0 : i32
    return %c0_i32, %c0_i32_0 : i32, i32
  }
  func.func @transform_7(%arg0: i32) -> (i32, i32) {
    %c0_i32 = arith.constant 0 : i32
    %c0_i32_0 = arith.constant 0 : i32
    return %arg0, %c0_i32 : i32, i32
  }
}

module attributes {stable_mosaic.version = 11 : i64} {
  func.func @conv_kernel(%arg0: i32, %arg1: i32, %arg2: memref<1xi32, #tpu.memory_space<smem>>, %arg3: memref<1xi32, #tpu.memory_space<smem>>, %arg4: memref<1x48xi32, #tpu.memory_space<vmem>>, %arg5: memref<48x128xf32, #tpu.memory_space<vmem>>, %arg6: memref<16x64xf32, #tpu.memory_space<vmem>>, %arg7: memref<128x64xf32, #tpu.memory_space<vmem>>, %arg8: memref<1x64xf32, #tpu.memory_space<vmem>>, %arg9: memref<1x64xf32, #tpu.memory_space<vmem>>, %arg10: memref<1x64xf32, #tpu.memory_space<vmem>>, %arg11: memref<64x64xf32, #tpu.memory_space<vmem>>, %arg12: memref<1x64xf32, #tpu.memory_space<vmem>>, %arg13: memref<1x64xf32, #tpu.memory_space<vmem>>, %arg14: memref<1x64xf32, #tpu.memory_space<vmem>>, %arg15: memref<128x64xf32, #tpu.memory_space<vmem>>, %arg16: memref<1x64xf32, #tpu.memory_space<vmem>>, %arg17: memref<64x64xf32, #tpu.memory_space<vmem>>, %arg18: memref<1x64xf32, #tpu.memory_space<vmem>>, %arg19: memref<16x64xf32, #tpu.memory_space<vmem>>, %arg20: memref<16x64xf32, #tpu.memory_space<vmem>>) attributes {dimension_semantics = [#tpu.dimension_semantics<parallel>, #tpu.dimension_semantics<arbitrary>], iteration_bounds = array<i64: 1, 1>, scalar_prefetch = 2 : i64, scratch_operands = 1 : i64, tpu.core_type = #tpu.core_type<tc>, window_params = [{transform_indices = @transform_0, window_bounds = array<i64: 1, 48>}, {transform_indices = @transform_1, window_bounds = array<i64: 48, 128>}, {transform_indices = @transform_2, window_bounds = array<i64: 16, 64>}, {pipeline_mode = #tpu.pipeline_mode<synchronous>, transform_indices = @transform_3, window_bounds = array<i64: 128, 64>}, {pipeline_mode = #tpu.pipeline_mode<synchronous>, transform_indices = @transform_4, window_bounds = array<i64: 1, 64>}, {pipeline_mode = #tpu.pipeline_mode<synchronous>, transform_indices = @transform_5, window_bounds = array<i64: 1, 64>}, {pipeline_mode = #tpu.pipeline_mode<synchronous>, transform_indices = @transform_6, window_bounds = array<i64: 1, 64>}, {pipeline_mode = #tpu.pipeline_mode<synchronous>, transform_indices = @transform_7, window_bounds = array<i64: 64, 64>}, {pipeline_mode = #tpu.pipeline_mode<synchronous>, transform_indices = @transform_8, window_bounds = array<i64: 1, 64>}, {pipeline_mode = #tpu.pipeline_mode<synchronous>, transform_indices = @transform_9, window_bounds = array<i64: 1, 64>}, {pipeline_mode = #tpu.pipeline_mode<synchronous>, transform_indices = @transform_10, window_bounds = array<i64: 1, 64>}, {pipeline_mode = #tpu.pipeline_mode<synchronous>, transform_indices = @transform_11, window_bounds = array<i64: 128, 64>}, {pipeline_mode = #tpu.pipeline_mode<synchronous>, transform_indices = @transform_12, window_bounds = array<i64: 1, 64>}, {pipeline_mode = #tpu.pipeline_mode<synchronous>, transform_indices = @transform_13, window_bounds = array<i64: 64, 64>}, {pipeline_mode = #tpu.pipeline_mode<synchronous>, transform_indices = @transform_14, window_bounds = array<i64: 1, 64>}, {transform_indices = @transform_15, window_bounds = array<i64: 16, 64>}]} {
    %c0_i32 = arith.constant 0 : i32
    %0 = arith.cmpi eq, %arg1, %c0_i32 : i32
    %1 = arith.extui %0 : i1 to i32
    %c0_i32_0 = arith.constant 0 : i32
    %2 = arith.cmpi ne, %1, %c0_i32_0 : i32
    scf.if %2 {
      %cst = arith.constant 0.000000e+00 : f32
      %17 = vector.broadcast %cst : f32 to vector<16x64xf32>
      %c0 = arith.constant 0 : index
      %c0_5 = arith.constant 0 : index
      %18 = vector.load %arg20[%c0, %c0_5] : memref<16x64xf32, #tpu.memory_space<vmem>>, vector<16x64xf32>
      tpu.vector_store %arg20[%c0, %c0_5], %17 {strides = array<i32>} : memref<16x64xf32, #tpu.memory_space<vmem>>, vector<16x64xf32>,
    } else {
    }
    %c16_i32 = arith.constant 16 : i32
    %3 = arith.muli %arg0, %c16_i32 : i32
    %4 = arith.index_cast %arg1 : i32 to index
    %5 = memref.load %arg3[%4] : memref<1xi32, #tpu.memory_space<smem>>
    %6 = arith.cmpi sge, %5, %3 : i32
    %7 = arith.index_cast %arg1 : i32 to index
    %8 = memref.load %arg2[%7] : memref<1xi32, #tpu.memory_space<smem>>
    %c16_i32_1 = arith.constant 16 : i32
    %9 = arith.addi %3, %c16_i32_1 : i32
    %10 = arith.cmpi slt, %8, %9 : i32
    %11 = arith.andi %6, %10 : i1
    %12 = arith.extui %11 : i1 to i32
    %c0_i32_2 = arith.constant 0 : i32
    %13 = arith.cmpi ne, %12, %c0_i32_2 : i32
    scf.if %13 {
      %c0 = arith.constant 0 : index
      %c0_5 = arith.constant 0 : index
      %17 = vector.load %arg5[%c0, %c0_5] : memref<48x128xf32, #tpu.memory_space<vmem>>, vector<48x128xf32>
      %c0_6 = arith.constant 0 : index
      %c0_7 = arith.constant 0 : index
      %18 = vector.load %arg7[%c0_6, %c0_7] : memref<128x64xf32, #tpu.memory_space<vmem>>, vector<128x64xf32>
      %cst = arith.constant dense<0.000000e+00> : vector<48x64xf32>
      %19 = tpu.matmul %17, %18, %cst {dimension_numbers = #tpu.dot_dimension_numbers<[1], [0], [0], [1], [0, 0, 1, 1], [], []>} : vector<48x128xf32>, vector<128x64xf32>, vector<48x64xf32> -> vector<48x64xf32>
      %c0_8 = arith.constant 0 : index
      %c0_9 = arith.constant 0 : index
      %20 = vector.load %arg8[%c0_8, %c0_9] : memref<1x64xf32, #tpu.memory_space<vmem>>, vector<1x64xf32>
      %21 = vector.broadcast %20 : vector<1x64xf32> to vector<48x64xf32>
      %22 = arith.addf %19, %21 : vector<48x64xf32>
      %c0_10 = arith.constant 0 : index
      %c0_11 = arith.constant 0 : index
      %23 = vector.load %arg9[%c0_10, %c0_11] : memref<1x64xf32, #tpu.memory_space<vmem>>, vector<1x64xf32>
      %c0_12 = arith.constant 0 : index
      %c0_13 = arith.constant 0 : index
      %24 = vector.load %arg10[%c0_12, %c0_13] : memref<1x64xf32, #tpu.memory_space<vmem>>, vector<1x64xf32>
      %cst_14 = arith.constant dense<0.000000e+00> : vector<48xf32>
      %25 = vector.multi_reduction <add>, %22, %cst_14 [1] : vector<48x64xf32> to vector<48xf32>
      %26 = vector.shape_cast %25 : vector<48xf32> to vector<48x1xf32>
      %cst_15 = arith.constant 6.400000e+01 : f32
      %27 = vector.broadcast %cst_15 : f32 to vector<48x1xf32>
      %28 = arith.divf %26, %27 : vector<48x1xf32>
      %29 = vector.broadcast %28 : vector<48x1xf32> to vector<48x64xf32>
      %30 = arith.subf %22, %29 : vector<48x64xf32>
      %31 = arith.mulf %30, %30 : vector<48x64xf32>
      %cst_16 = arith.constant dense<0.000000e+00> : vector<48xf32>
      %32 = vector.multi_reduction <add>, %31, %cst_16 [1] : vector<48x64xf32> to vector<48xf32>
      %33 = vector.shape_cast %32 : vector<48xf32> to vector<48x1xf32>
      %cst_17 = arith.constant 6.400000e+01 : f32
      %34 = vector.broadcast %cst_17 : f32 to vector<48x1xf32>
      %35 = arith.divf %33, %34 : vector<48x1xf32>
      %36 = vector.broadcast %28 : vector<48x1xf32> to vector<48x64xf32>
      %37 = arith.subf %22, %36 : vector<48x64xf32>
      %cst_18 = arith.constant 9.99999974E-6 : f32
      %38 = vector.broadcast %cst_18 : f32 to vector<48x1xf32>
      %39 = arith.addf %35, %38 : vector<48x1xf32>
      %40 = math.rsqrt %39 : vector<48x1xf32>
      %41 = vector.broadcast %40 : vector<48x1xf32> to vector<48x64xf32>
      %42 = arith.mulf %37, %41 : vector<48x64xf32>
      %43 = vector.broadcast %23 : vector<1x64xf32> to vector<48x64xf32>
      %44 = arith.mulf %42, %43 : vector<48x64xf32>
      %45 = vector.broadcast %24 : vector<1x64xf32> to vector<48x64xf32>
      %46 = arith.addf %44, %45 : vector<48x64xf32>
      %cst_19 = arith.constant 0.000000e+00 : f32
      %47 = vector.broadcast %cst_19 : f32 to vector<48x64xf32>
      %48 = arith.maximumf %46, %47 : vector<48x64xf32>
      %c0_20 = arith.constant 0 : index
      %c0_21 = arith.constant 0 : index
      %49 = vector.load %arg11[%c0_20, %c0_21] : memref<64x64xf32, #tpu.memory_space<vmem>>, vector<64x64xf32>
      %cst_22 = arith.constant dense<0.000000e+00> : vector<48x64xf32>
      %50 = tpu.matmul %48, %49, %cst_22 {dimension_numbers = #tpu.dot_dimension_numbers<[1], [0], [0], [1], [0, 0, 1, 1], [], []>} : vector<48x64xf32>, vector<64x64xf32>, vector<48x64xf32> -> vector<48x64xf32>
      %c0_23 = arith.constant 0 : index
      %c0_24 = arith.constant 0 : index
      %51 = vector.load %arg12[%c0_23, %c0_24] : memref<1x64xf32, #tpu.memory_space<vmem>>, vector<1x64xf32>
      %52 = vector.broadcast %51 : vector<1x64xf32> to vector<48x64xf32>
      %53 = arith.addf %50, %52 : vector<48x64xf32>
      %54 = tpu.iota {dimensions = array<i32: 0>} : vector<16x1xi32>
      %55 = vector.broadcast %3 : i32 to vector<16x1xi32>
      %56 = arith.addi %55, %54 : vector<16x1xi32>
      %c0_25 = arith.constant 0 : index
      %c0_26 = arith.constant 0 : index
      %57 = vector.load %arg4[%c0_25, %c0_26] : memref<1x48xi32, #tpu.memory_space<vmem>>, vector<1x48xi32>
      %58 = vector.broadcast %56 : vector<16x1xi32> to vector<16x48xi32>
      %59 = vector.broadcast %57 : vector<1x48xi32> to vector<16x48xi32>
      %60 = arith.cmpi eq, %58, %59 : vector<16x48xi32>
      %61 = arith.extui %60 : vector<16x48xi1> to vector<16x48xi32>
      %62 = arith.sitofp %61 : vector<16x48xi32> to vector<16x48xf32>
      %c0_27 = arith.constant 0 : index
      %c0_28 = arith.constant 0 : index
      %63 = vector.load %arg20[%c0_27, %c0_28] : memref<16x64xf32, #tpu.memory_space<vmem>>, vector<16x64xf32>
      %cst_29 = arith.constant dense<0.000000e+00> : vector<16x64xf32>
      %64 = tpu.matmul %62, %53, %cst_29 {dimension_numbers = #tpu.dot_dimension_numbers<[1], [0], [0], [1], [0, 0, 1, 1], [], []>} : vector<16x48xf32>, vector<48x64xf32>, vector<16x64xf32> -> vector<16x64xf32>
      %65 = arith.addf %63, %64 : vector<16x64xf32>
      %c0_30 = arith.constant 0 : index
      %c0_31 = arith.constant 0 : index
      %66 = vector.load %arg20[%c0_30, %c0_31] : memref<16x64xf32, #tpu.memory_space<vmem>>, vector<16x64xf32>
      tpu.vector_store %arg20[%c0_30, %c0_31], %65 {strides = array<i32>} : memref<16x64xf32, #tpu.memory_space<vmem>>, vector<16x64xf32>,
    } else {
    }
    %c0_i32_3 = arith.constant 0 : i32
    %14 = arith.cmpi eq, %arg1, %c0_i32_3 : i32
    %15 = arith.extui %14 : i1 to i32
    %c0_i32_4 = arith.constant 0 : i32
    %16 = arith.cmpi ne, %15, %c0_i32_4 : i32
    scf.if %16 {
      %c0 = arith.constant 0 : index
      %c0_5 = arith.constant 0 : index
      %17 = vector.load %arg20[%c0, %c0_5] : memref<16x64xf32, #tpu.memory_space<vmem>>, vector<16x64xf32>
      %c0_6 = arith.constant 0 : index
      %c0_7 = arith.constant 0 : index
      %18 = vector.load %arg6[%c0_6, %c0_7] : memref<16x64xf32, #tpu.memory_space<vmem>>, vector<16x64xf32>
      %c0_8 = arith.constant 0 : index
      %c0_9 = arith.constant 0 : index
      %19 = vector.load %arg13[%c0_8, %c0_9] : memref<1x64xf32, #tpu.memory_space<vmem>>, vector<1x64xf32>
      %c0_10 = arith.constant 0 : index
      %c0_11 = arith.constant 0 : index
      %20 = vector.load %arg14[%c0_10, %c0_11] : memref<1x64xf32, #tpu.memory_space<vmem>>, vector<1x64xf32>
      %c0_12 = arith.constant 0 : index
      %c0_13 = arith.constant 0 : index
      %21 = vector.load %arg15[%c0_12, %c0_13] : memref<128x64xf32, #tpu.memory_space<vmem>>, vector<128x64xf32>
      %c0_14 = arith.constant 0 : index
      %c0_15 = arith.constant 0 : index
      %22 = vector.load %arg16[%c0_14, %c0_15] : memref<1x64xf32, #tpu.memory_space<vmem>>, vector<1x64xf32>
      %c0_16 = arith.constant 0 : index
      %c0_17 = arith.constant 0 : index
      %23 = vector.load %arg17[%c0_16, %c0_17] : memref<64x64xf32, #tpu.memory_space<vmem>>, vector<64x64xf32>
      %c0_18 = arith.constant 0 : index
      %c0_19 = arith.constant 0 : index
      %24 = vector.load %arg18[%c0_18, %c0_19] : memref<1x64xf32, #tpu.memory_space<vmem>>, vector<1x64xf32>
      %cst = arith.constant dense<0.000000e+00> : vector<16xf32>
      %25 = vector.multi_reduction <add>, %17, %cst [1] : vector<16x64xf32> to vector<16xf32>
      %26 = vector.shape_cast %25 : vector<16xf32> to vector<16x1xf32>
      %cst_20 = arith.constant 6.400000e+01 : f32
      %27 = vector.broadcast %cst_20 : f32 to vector<16x1xf32>
      %28 = arith.divf %26, %27 : vector<16x1xf32>
      %29 = vector.broadcast %28 : vector<16x1xf32> to vector<16x64xf32>
      %30 = arith.subf %17, %29 : vector<16x64xf32>
      %31 = arith.mulf %30, %30 : vector<16x64xf32>
      %cst_21 = arith.constant dense<0.000000e+00> : vector<16xf32>
      %32 = vector.multi_reduction <add>, %31, %cst_21 [1] : vector<16x64xf32> to vector<16xf32>
      %33 = vector.shape_cast %32 : vector<16xf32> to vector<16x1xf32>
      %cst_22 = arith.constant 6.400000e+01 : f32
      %34 = vector.broadcast %cst_22 : f32 to vector<16x1xf32>
      %35 = arith.divf %33, %34 : vector<16x1xf32>
      %36 = vector.broadcast %28 : vector<16x1xf32> to vector<16x64xf32>
      %37 = arith.subf %17, %36 : vector<16x64xf32>
      %cst_23 = arith.constant 9.99999974E-6 : f32
      %38 = vector.broadcast %cst_23 : f32 to vector<16x1xf32>
      %39 = arith.addf %35, %38 : vector<16x1xf32>
      %40 = math.rsqrt %39 : vector<16x1xf32>
      %41 = vector.broadcast %40 : vector<16x1xf32> to vector<16x64xf32>
      %42 = arith.mulf %37, %41 : vector<16x64xf32>
      %43 = vector.broadcast %19 : vector<1x64xf32> to vector<16x64xf32>
      %44 = arith.mulf %42, %43 : vector<16x64xf32>
      %45 = vector.broadcast %20 : vector<1x64xf32> to vector<16x64xf32>
      %46 = arith.addf %44, %45 : vector<16x64xf32>
      %47 = tpu.concatenate %46, %18 in 1 : vector<16x64xf32>, vector<16x64xf32> -> vector<16x128xf32>
      %cst_24 = arith.constant dense<0.000000e+00> : vector<16x64xf32>
      %48 = tpu.matmul %47, %21, %cst_24 {dimension_numbers = #tpu.dot_dimension_numbers<[1], [0], [0], [1], [0, 0, 1, 1], [], []>} : vector<16x128xf32>, vector<128x64xf32>, vector<16x64xf32> -> vector<16x64xf32>
      %49 = vector.broadcast %22 : vector<1x64xf32> to vector<16x64xf32>
      %50 = arith.addf %48, %49 : vector<16x64xf32>
      %cst_25 = arith.constant 0.000000e+00 : f32
      %51 = vector.broadcast %cst_25 : f32 to vector<16x64xf32>
      %52 = arith.maximumf %50, %51 : vector<16x64xf32>
      %cst_26 = arith.constant dense<0.000000e+00> : vector<16x64xf32>
      %53 = tpu.matmul %52, %23, %cst_26 {dimension_numbers = #tpu.dot_dimension_numbers<[1], [0], [0], [1], [0, 0, 1, 1], [], []>} : vector<16x64xf32>, vector<64x64xf32>, vector<16x64xf32> -> vector<16x64xf32>
      %54 = vector.broadcast %24 : vector<1x64xf32> to vector<16x64xf32>
      %55 = arith.addf %53, %54 : vector<16x64xf32>
      %c0_27 = arith.constant 0 : index
      %c0_28 = arith.constant 0 : index
      %56 = vector.load %arg19[%c0_27, %c0_28] : memref<16x64xf32, #tpu.memory_space<vmem>>, vector<16x64xf32>
      tpu.vector_store %arg19[%c0_27, %c0_28], %55 {strides = array<i32>} : memref<16x64xf32, #tpu.memory_space<vmem>>, vector<16x64xf32>,
    } else {
    }
    return
  }
  func.func @transform_0(%arg0: i32, %arg1: i32, %arg2: memref<1xi32, #tpu.memory_space<smem>>, %arg3: memref<1xi32, #tpu.memory_space<smem>>) -> (i32, i32) {
    %c0_i32 = arith.constant 0 : i32
    %c0_i32_0 = arith.constant 0 : i32
    return %c0_i32, %arg1 : i32, i32
  }
  func.func @transform_1(%arg0: i32, %arg1: i32, %arg2: memref<1xi32, #tpu.memory_space<smem>>, %arg3: memref<1xi32, #tpu.memory_space<smem>>) -> (i32, i32) {
    %c0_i32 = arith.constant 0 : i32
    %c0_i32_0 = arith.constant 0 : i32
    return %arg1, %c0_i32 : i32, i32
  }
  func.func @transform_2(%arg0: i32, %arg1: i32, %arg2: memref<1xi32, #tpu.memory_space<smem>>, %arg3: memref<1xi32, #tpu.memory_space<smem>>) -> (i32, i32) {
    %c0_i32 = arith.constant 0 : i32
    %c0_i32_0 = arith.constant 0 : i32
    return %arg0, %c0_i32 : i32, i32
  }
  func.func @transform_3(%arg0: i32, %arg1: i32, %arg2: memref<1xi32, #tpu.memory_space<smem>>, %arg3: memref<1xi32, #tpu.memory_space<smem>>) -> (i32, i32) {
    %c0_i32 = arith.constant 0 : i32
    %c0_i32_0 = arith.constant 0 : i32
    %c0_i32_1 = arith.constant 0 : i32
    return %c0_i32, %c0_i32_0 : i32, i32
  }
  func.func @transform_4(%arg0: i32, %arg1: i32, %arg2: memref<1xi32, #tpu.memory_space<smem>>, %arg3: memref<1xi32, #tpu.memory_space<smem>>) -> (i32, i32) {
    %c0_i32 = arith.constant 0 : i32
    %c0_i32_0 = arith.constant 0 : i32
    %c0_i32_1 = arith.constant 0 : i32
    return %c0_i32, %c0_i32_0 : i32, i32
  }
  func.func @transform_5(%arg0: i32, %arg1: i32, %arg2: memref<1xi32, #tpu.memory_space<smem>>, %arg3: memref<1xi32, #tpu.memory_space<smem>>) -> (i32, i32) {
    %c0_i32 = arith.constant 0 : i32
    %c0_i32_0 = arith.constant 0 : i32
    %c0_i32_1 = arith.constant 0 : i32
    return %c0_i32, %c0_i32_0 : i32, i32
  }
  func.func @transform_6(%arg0: i32, %arg1: i32, %arg2: memref<1xi32, #tpu.memory_space<smem>>, %arg3: memref<1xi32, #tpu.memory_space<smem>>) -> (i32, i32) {
    %c0_i32 = arith.constant 0 : i32
    %c0_i32_0 = arith.constant 0 : i32
    %c0_i32_1 = arith.constant 0 : i32
    return %c0_i32, %c0_i32_0 : i32, i32
  }
  func.func @transform_7(%arg0: i32, %arg1: i32, %arg2: memref<1xi32, #tpu.memory_space<smem>>, %arg3: memref<1xi32, #tpu.memory_space<smem>>) -> (i32, i32) {
    %c0_i32 = arith.constant 0 : i32
    %c0_i32_0 = arith.constant 0 : i32
    %c0_i32_1 = arith.constant 0 : i32
    return %c0_i32, %c0_i32_0 : i32, i32
  }
  func.func @transform_8(%arg0: i32, %arg1: i32, %arg2: memref<1xi32, #tpu.memory_space<smem>>, %arg3: memref<1xi32, #tpu.memory_space<smem>>) -> (i32, i32) {
    %c0_i32 = arith.constant 0 : i32
    %c0_i32_0 = arith.constant 0 : i32
    %c0_i32_1 = arith.constant 0 : i32
    return %c0_i32, %c0_i32_0 : i32, i32
  }
  func.func @transform_9(%arg0: i32, %arg1: i32, %arg2: memref<1xi32, #tpu.memory_space<smem>>, %arg3: memref<1xi32, #tpu.memory_space<smem>>) -> (i32, i32) {
    %c0_i32 = arith.constant 0 : i32
    %c0_i32_0 = arith.constant 0 : i32
    %c0_i32_1 = arith.constant 0 : i32
    return %c0_i32, %c0_i32_0 : i32, i32
  }
  func.func @transform_10(%arg0: i32, %arg1: i32, %arg2: memref<1xi32, #tpu.memory_space<smem>>, %arg3: memref<1xi32, #tpu.memory_space<smem>>) -> (i32, i32) {
    %c0_i32 = arith.constant 0 : i32
    %c0_i32_0 = arith.constant 0 : i32
    %c0_i32_1 = arith.constant 0 : i32
    return %c0_i32, %c0_i32_0 : i32, i32
  }
  func.func @transform_11(%arg0: i32, %arg1: i32, %arg2: memref<1xi32, #tpu.memory_space<smem>>, %arg3: memref<1xi32, #tpu.memory_space<smem>>) -> (i32, i32) {
    %c0_i32 = arith.constant 0 : i32
    %c0_i32_0 = arith.constant 0 : i32
    %c0_i32_1 = arith.constant 0 : i32
    return %c0_i32, %c0_i32_0 : i32, i32
  }
  func.func @transform_12(%arg0: i32, %arg1: i32, %arg2: memref<1xi32, #tpu.memory_space<smem>>, %arg3: memref<1xi32, #tpu.memory_space<smem>>) -> (i32, i32) {
    %c0_i32 = arith.constant 0 : i32
    %c0_i32_0 = arith.constant 0 : i32
    %c0_i32_1 = arith.constant 0 : i32
    return %c0_i32, %c0_i32_0 : i32, i32
  }
  func.func @transform_13(%arg0: i32, %arg1: i32, %arg2: memref<1xi32, #tpu.memory_space<smem>>, %arg3: memref<1xi32, #tpu.memory_space<smem>>) -> (i32, i32) {
    %c0_i32 = arith.constant 0 : i32
    %c0_i32_0 = arith.constant 0 : i32
    %c0_i32_1 = arith.constant 0 : i32
    return %c0_i32, %c0_i32_0 : i32, i32
  }
  func.func @transform_14(%arg0: i32, %arg1: i32, %arg2: memref<1xi32, #tpu.memory_space<smem>>, %arg3: memref<1xi32, #tpu.memory_space<smem>>) -> (i32, i32) {
    %c0_i32 = arith.constant 0 : i32
    %c0_i32_0 = arith.constant 0 : i32
    %c0_i32_1 = arith.constant 0 : i32
    return %c0_i32, %c0_i32_0 : i32, i32
  }
  func.func @transform_15(%arg0: i32, %arg1: i32, %arg2: memref<1xi32, #tpu.memory_space<smem>>, %arg3: memref<1xi32, #tpu.memory_space<smem>>) -> (i32, i32) {
    %c0_i32 = arith.constant 0 : i32
    %c0_i32_0 = arith.constant 0 : i32
    return %arg0, %c0_i32 : i32, i32
  }
}

module attributes {stable_mosaic.version = 11 : i64} {
  func.func @conv_kernel(%arg0: i32, %arg1: i32, %arg2: memref<1xi32, #tpu.memory_space<smem>>, %arg3: memref<1xi32, #tpu.memory_space<smem>>, %arg4: memref<1x48xi32, #tpu.memory_space<vmem>>, %arg5: memref<48x128xf32, #tpu.memory_space<vmem>>, %arg6: memref<24x64xf32, #tpu.memory_space<vmem>>, %arg7: memref<128x64xf32, #tpu.memory_space<vmem>>, %arg8: memref<1x64xf32, #tpu.memory_space<vmem>>, %arg9: memref<1x64xf32, #tpu.memory_space<vmem>>, %arg10: memref<1x64xf32, #tpu.memory_space<vmem>>, %arg11: memref<64x64xf32, #tpu.memory_space<vmem>>, %arg12: memref<1x64xf32, #tpu.memory_space<vmem>>, %arg13: memref<1x64xf32, #tpu.memory_space<vmem>>, %arg14: memref<1x64xf32, #tpu.memory_space<vmem>>, %arg15: memref<128x64xf32, #tpu.memory_space<vmem>>, %arg16: memref<1x64xf32, #tpu.memory_space<vmem>>, %arg17: memref<64x64xf32, #tpu.memory_space<vmem>>, %arg18: memref<1x64xf32, #tpu.memory_space<vmem>>, %arg19: memref<24x64xf32, #tpu.memory_space<vmem>>, %arg20: memref<24x64xf32, #tpu.memory_space<vmem>>) attributes {dimension_semantics = [#tpu.dimension_semantics<parallel>, #tpu.dimension_semantics<arbitrary>], iteration_bounds = array<i64: 1, 1>, scalar_prefetch = 2 : i64, scratch_operands = 1 : i64, tpu.core_type = #tpu.core_type<tc>, window_params = [{transform_indices = @transform_0, window_bounds = array<i64: 1, 48>}, {transform_indices = @transform_1, window_bounds = array<i64: 48, 128>}, {transform_indices = @transform_2, window_bounds = array<i64: 24, 64>}, {pipeline_mode = #tpu.pipeline_mode<synchronous>, transform_indices = @transform_3, window_bounds = array<i64: 128, 64>}, {pipeline_mode = #tpu.pipeline_mode<synchronous>, transform_indices = @transform_4, window_bounds = array<i64: 1, 64>}, {pipeline_mode = #tpu.pipeline_mode<synchronous>, transform_indices = @transform_5, window_bounds = array<i64: 1, 64>}, {pipeline_mode = #tpu.pipeline_mode<synchronous>, transform_indices = @transform_6, window_bounds = array<i64: 1, 64>}, {pipeline_mode = #tpu.pipeline_mode<synchronous>, transform_indices = @transform_7, window_bounds = array<i64: 64, 64>}, {pipeline_mode = #tpu.pipeline_mode<synchronous>, transform_indices = @transform_8, window_bounds = array<i64: 1, 64>}, {pipeline_mode = #tpu.pipeline_mode<synchronous>, transform_indices = @transform_9, window_bounds = array<i64: 1, 64>}, {pipeline_mode = #tpu.pipeline_mode<synchronous>, transform_indices = @transform_10, window_bounds = array<i64: 1, 64>}, {pipeline_mode = #tpu.pipeline_mode<synchronous>, transform_indices = @transform_11, window_bounds = array<i64: 128, 64>}, {pipeline_mode = #tpu.pipeline_mode<synchronous>, transform_indices = @transform_12, window_bounds = array<i64: 1, 64>}, {pipeline_mode = #tpu.pipeline_mode<synchronous>, transform_indices = @transform_13, window_bounds = array<i64: 64, 64>}, {pipeline_mode = #tpu.pipeline_mode<synchronous>, transform_indices = @transform_14, window_bounds = array<i64: 1, 64>}, {transform_indices = @transform_15, window_bounds = array<i64: 24, 64>}]} {
    %c0_i32 = arith.constant 0 : i32
    %0 = arith.cmpi eq, %arg1, %c0_i32 : i32
    %1 = arith.extui %0 : i1 to i32
    %c0_i32_0 = arith.constant 0 : i32
    %2 = arith.cmpi ne, %1, %c0_i32_0 : i32
    scf.if %2 {
      %cst = arith.constant 0.000000e+00 : f32
      %17 = vector.broadcast %cst : f32 to vector<24x64xf32>
      %c0 = arith.constant 0 : index
      %c0_5 = arith.constant 0 : index
      %18 = vector.load %arg20[%c0, %c0_5] : memref<24x64xf32, #tpu.memory_space<vmem>>, vector<24x64xf32>
      tpu.vector_store %arg20[%c0, %c0_5], %17 {strides = array<i32>} : memref<24x64xf32, #tpu.memory_space<vmem>>, vector<24x64xf32>,
    } else {
    }
    %c24_i32 = arith.constant 24 : i32
    %3 = arith.muli %arg0, %c24_i32 : i32
    %4 = arith.index_cast %arg1 : i32 to index
    %5 = memref.load %arg3[%4] : memref<1xi32, #tpu.memory_space<smem>>
    %6 = arith.cmpi sge, %5, %3 : i32
    %7 = arith.index_cast %arg1 : i32 to index
    %8 = memref.load %arg2[%7] : memref<1xi32, #tpu.memory_space<smem>>
    %c24_i32_1 = arith.constant 24 : i32
    %9 = arith.addi %3, %c24_i32_1 : i32
    %10 = arith.cmpi slt, %8, %9 : i32
    %11 = arith.andi %6, %10 : i1
    %12 = arith.extui %11 : i1 to i32
    %c0_i32_2 = arith.constant 0 : i32
    %13 = arith.cmpi ne, %12, %c0_i32_2 : i32
    scf.if %13 {
      %c0 = arith.constant 0 : index
      %c0_5 = arith.constant 0 : index
      %17 = vector.load %arg5[%c0, %c0_5] : memref<48x128xf32, #tpu.memory_space<vmem>>, vector<48x128xf32>
      %c0_6 = arith.constant 0 : index
      %c0_7 = arith.constant 0 : index
      %18 = vector.load %arg7[%c0_6, %c0_7] : memref<128x64xf32, #tpu.memory_space<vmem>>, vector<128x64xf32>
      %cst = arith.constant dense<0.000000e+00> : vector<48x64xf32>
      %19 = tpu.matmul %17, %18, %cst {dimension_numbers = #tpu.dot_dimension_numbers<[1], [0], [0], [1], [0, 0, 1, 1], [], []>} : vector<48x128xf32>, vector<128x64xf32>, vector<48x64xf32> -> vector<48x64xf32>
      %c0_8 = arith.constant 0 : index
      %c0_9 = arith.constant 0 : index
      %20 = vector.load %arg8[%c0_8, %c0_9] : memref<1x64xf32, #tpu.memory_space<vmem>>, vector<1x64xf32>
      %21 = vector.broadcast %20 : vector<1x64xf32> to vector<48x64xf32>
      %22 = arith.addf %19, %21 : vector<48x64xf32>
      %c0_10 = arith.constant 0 : index
      %c0_11 = arith.constant 0 : index
      %23 = vector.load %arg9[%c0_10, %c0_11] : memref<1x64xf32, #tpu.memory_space<vmem>>, vector<1x64xf32>
      %c0_12 = arith.constant 0 : index
      %c0_13 = arith.constant 0 : index
      %24 = vector.load %arg10[%c0_12, %c0_13] : memref<1x64xf32, #tpu.memory_space<vmem>>, vector<1x64xf32>
      %cst_14 = arith.constant dense<0.000000e+00> : vector<48xf32>
      %25 = vector.multi_reduction <add>, %22, %cst_14 [1] : vector<48x64xf32> to vector<48xf32>
      %26 = vector.shape_cast %25 : vector<48xf32> to vector<48x1xf32>
      %cst_15 = arith.constant 6.400000e+01 : f32
      %27 = vector.broadcast %cst_15 : f32 to vector<48x1xf32>
      %28 = arith.divf %26, %27 : vector<48x1xf32>
      %29 = vector.broadcast %28 : vector<48x1xf32> to vector<48x64xf32>
      %30 = arith.subf %22, %29 : vector<48x64xf32>
      %31 = arith.mulf %30, %30 : vector<48x64xf32>
      %cst_16 = arith.constant dense<0.000000e+00> : vector<48xf32>
      %32 = vector.multi_reduction <add>, %31, %cst_16 [1] : vector<48x64xf32> to vector<48xf32>
      %33 = vector.shape_cast %32 : vector<48xf32> to vector<48x1xf32>
      %cst_17 = arith.constant 6.400000e+01 : f32
      %34 = vector.broadcast %cst_17 : f32 to vector<48x1xf32>
      %35 = arith.divf %33, %34 : vector<48x1xf32>
      %36 = vector.broadcast %28 : vector<48x1xf32> to vector<48x64xf32>
      %37 = arith.subf %22, %36 : vector<48x64xf32>
      %cst_18 = arith.constant 9.99999974E-6 : f32
      %38 = vector.broadcast %cst_18 : f32 to vector<48x1xf32>
      %39 = arith.addf %35, %38 : vector<48x1xf32>
      %40 = math.rsqrt %39 : vector<48x1xf32>
      %41 = vector.broadcast %40 : vector<48x1xf32> to vector<48x64xf32>
      %42 = arith.mulf %37, %41 : vector<48x64xf32>
      %43 = vector.broadcast %23 : vector<1x64xf32> to vector<48x64xf32>
      %44 = arith.mulf %42, %43 : vector<48x64xf32>
      %45 = vector.broadcast %24 : vector<1x64xf32> to vector<48x64xf32>
      %46 = arith.addf %44, %45 : vector<48x64xf32>
      %cst_19 = arith.constant 0.000000e+00 : f32
      %47 = vector.broadcast %cst_19 : f32 to vector<48x64xf32>
      %48 = arith.maximumf %46, %47 : vector<48x64xf32>
      %c0_20 = arith.constant 0 : index
      %c0_21 = arith.constant 0 : index
      %49 = vector.load %arg11[%c0_20, %c0_21] : memref<64x64xf32, #tpu.memory_space<vmem>>, vector<64x64xf32>
      %cst_22 = arith.constant dense<0.000000e+00> : vector<48x64xf32>
      %50 = tpu.matmul %48, %49, %cst_22 {dimension_numbers = #tpu.dot_dimension_numbers<[1], [0], [0], [1], [0, 0, 1, 1], [], []>} : vector<48x64xf32>, vector<64x64xf32>, vector<48x64xf32> -> vector<48x64xf32>
      %c0_23 = arith.constant 0 : index
      %c0_24 = arith.constant 0 : index
      %51 = vector.load %arg12[%c0_23, %c0_24] : memref<1x64xf32, #tpu.memory_space<vmem>>, vector<1x64xf32>
      %52 = vector.broadcast %51 : vector<1x64xf32> to vector<48x64xf32>
      %53 = arith.addf %50, %52 : vector<48x64xf32>
      %54 = tpu.iota {dimensions = array<i32: 0>} : vector<24x1xi32>
      %55 = vector.broadcast %3 : i32 to vector<24x1xi32>
      %56 = arith.addi %55, %54 : vector<24x1xi32>
      %c0_25 = arith.constant 0 : index
      %c0_26 = arith.constant 0 : index
      %57 = vector.load %arg4[%c0_25, %c0_26] : memref<1x48xi32, #tpu.memory_space<vmem>>, vector<1x48xi32>
      %58 = vector.broadcast %56 : vector<24x1xi32> to vector<24x48xi32>
      %59 = vector.broadcast %57 : vector<1x48xi32> to vector<24x48xi32>
      %60 = arith.cmpi eq, %58, %59 : vector<24x48xi32>
      %61 = arith.extui %60 : vector<24x48xi1> to vector<24x48xi32>
      %62 = arith.sitofp %61 : vector<24x48xi32> to vector<24x48xf32>
      %c0_27 = arith.constant 0 : index
      %c0_28 = arith.constant 0 : index
      %63 = vector.load %arg20[%c0_27, %c0_28] : memref<24x64xf32, #tpu.memory_space<vmem>>, vector<24x64xf32>
      %cst_29 = arith.constant dense<0.000000e+00> : vector<24x64xf32>
      %64 = tpu.matmul %62, %53, %cst_29 {dimension_numbers = #tpu.dot_dimension_numbers<[1], [0], [0], [1], [0, 0, 1, 1], [], []>} : vector<24x48xf32>, vector<48x64xf32>, vector<24x64xf32> -> vector<24x64xf32>
      %65 = arith.addf %63, %64 : vector<24x64xf32>
      %c0_30 = arith.constant 0 : index
      %c0_31 = arith.constant 0 : index
      %66 = vector.load %arg20[%c0_30, %c0_31] : memref<24x64xf32, #tpu.memory_space<vmem>>, vector<24x64xf32>
      tpu.vector_store %arg20[%c0_30, %c0_31], %65 {strides = array<i32>} : memref<24x64xf32, #tpu.memory_space<vmem>>, vector<24x64xf32>,
    } else {
    }
    %c0_i32_3 = arith.constant 0 : i32
    %14 = arith.cmpi eq, %arg1, %c0_i32_3 : i32
    %15 = arith.extui %14 : i1 to i32
    %c0_i32_4 = arith.constant 0 : i32
    %16 = arith.cmpi ne, %15, %c0_i32_4 : i32
    scf.if %16 {
      %c0 = arith.constant 0 : index
      %c0_5 = arith.constant 0 : index
      %17 = vector.load %arg20[%c0, %c0_5] : memref<24x64xf32, #tpu.memory_space<vmem>>, vector<24x64xf32>
      %c0_6 = arith.constant 0 : index
      %c0_7 = arith.constant 0 : index
      %18 = vector.load %arg6[%c0_6, %c0_7] : memref<24x64xf32, #tpu.memory_space<vmem>>, vector<24x64xf32>
      %c0_8 = arith.constant 0 : index
      %c0_9 = arith.constant 0 : index
      %19 = vector.load %arg13[%c0_8, %c0_9] : memref<1x64xf32, #tpu.memory_space<vmem>>, vector<1x64xf32>
      %c0_10 = arith.constant 0 : index
      %c0_11 = arith.constant 0 : index
      %20 = vector.load %arg14[%c0_10, %c0_11] : memref<1x64xf32, #tpu.memory_space<vmem>>, vector<1x64xf32>
      %c0_12 = arith.constant 0 : index
      %c0_13 = arith.constant 0 : index
      %21 = vector.load %arg15[%c0_12, %c0_13] : memref<128x64xf32, #tpu.memory_space<vmem>>, vector<128x64xf32>
      %c0_14 = arith.constant 0 : index
      %c0_15 = arith.constant 0 : index
      %22 = vector.load %arg16[%c0_14, %c0_15] : memref<1x64xf32, #tpu.memory_space<vmem>>, vector<1x64xf32>
      %c0_16 = arith.constant 0 : index
      %c0_17 = arith.constant 0 : index
      %23 = vector.load %arg17[%c0_16, %c0_17] : memref<64x64xf32, #tpu.memory_space<vmem>>, vector<64x64xf32>
      %c0_18 = arith.constant 0 : index
      %c0_19 = arith.constant 0 : index
      %24 = vector.load %arg18[%c0_18, %c0_19] : memref<1x64xf32, #tpu.memory_space<vmem>>, vector<1x64xf32>
      %cst = arith.constant dense<0.000000e+00> : vector<24xf32>
      %25 = vector.multi_reduction <add>, %17, %cst [1] : vector<24x64xf32> to vector<24xf32>
      %26 = vector.shape_cast %25 : vector<24xf32> to vector<24x1xf32>
      %cst_20 = arith.constant 6.400000e+01 : f32
      %27 = vector.broadcast %cst_20 : f32 to vector<24x1xf32>
      %28 = arith.divf %26, %27 : vector<24x1xf32>
      %29 = vector.broadcast %28 : vector<24x1xf32> to vector<24x64xf32>
      %30 = arith.subf %17, %29 : vector<24x64xf32>
      %31 = arith.mulf %30, %30 : vector<24x64xf32>
      %cst_21 = arith.constant dense<0.000000e+00> : vector<24xf32>
      %32 = vector.multi_reduction <add>, %31, %cst_21 [1] : vector<24x64xf32> to vector<24xf32>
      %33 = vector.shape_cast %32 : vector<24xf32> to vector<24x1xf32>
      %cst_22 = arith.constant 6.400000e+01 : f32
      %34 = vector.broadcast %cst_22 : f32 to vector<24x1xf32>
      %35 = arith.divf %33, %34 : vector<24x1xf32>
      %36 = vector.broadcast %28 : vector<24x1xf32> to vector<24x64xf32>
      %37 = arith.subf %17, %36 : vector<24x64xf32>
      %cst_23 = arith.constant 9.99999974E-6 : f32
      %38 = vector.broadcast %cst_23 : f32 to vector<24x1xf32>
      %39 = arith.addf %35, %38 : vector<24x1xf32>
      %40 = math.rsqrt %39 : vector<24x1xf32>
      %41 = vector.broadcast %40 : vector<24x1xf32> to vector<24x64xf32>
      %42 = arith.mulf %37, %41 : vector<24x64xf32>
      %43 = vector.broadcast %19 : vector<1x64xf32> to vector<24x64xf32>
      %44 = arith.mulf %42, %43 : vector<24x64xf32>
      %45 = vector.broadcast %20 : vector<1x64xf32> to vector<24x64xf32>
      %46 = arith.addf %44, %45 : vector<24x64xf32>
      %47 = tpu.concatenate %46, %18 in 1 : vector<24x64xf32>, vector<24x64xf32> -> vector<24x128xf32>
      %cst_24 = arith.constant dense<0.000000e+00> : vector<24x64xf32>
      %48 = tpu.matmul %47, %21, %cst_24 {dimension_numbers = #tpu.dot_dimension_numbers<[1], [0], [0], [1], [0, 0, 1, 1], [], []>} : vector<24x128xf32>, vector<128x64xf32>, vector<24x64xf32> -> vector<24x64xf32>
      %49 = vector.broadcast %22 : vector<1x64xf32> to vector<24x64xf32>
      %50 = arith.addf %48, %49 : vector<24x64xf32>
      %cst_25 = arith.constant 0.000000e+00 : f32
      %51 = vector.broadcast %cst_25 : f32 to vector<24x64xf32>
      %52 = arith.maximumf %50, %51 : vector<24x64xf32>
      %cst_26 = arith.constant dense<0.000000e+00> : vector<24x64xf32>
      %53 = tpu.matmul %52, %23, %cst_26 {dimension_numbers = #tpu.dot_dimension_numbers<[1], [0], [0], [1], [0, 0, 1, 1], [], []>} : vector<24x64xf32>, vector<64x64xf32>, vector<24x64xf32> -> vector<24x64xf32>
      %54 = vector.broadcast %24 : vector<1x64xf32> to vector<24x64xf32>
      %55 = arith.addf %53, %54 : vector<24x64xf32>
      %c0_27 = arith.constant 0 : index
      %c0_28 = arith.constant 0 : index
      %56 = vector.load %arg19[%c0_27, %c0_28] : memref<24x64xf32, #tpu.memory_space<vmem>>, vector<24x64xf32>
      tpu.vector_store %arg19[%c0_27, %c0_28], %55 {strides = array<i32>} : memref<24x64xf32, #tpu.memory_space<vmem>>, vector<24x64xf32>,
    } else {
    }
    return
  }
  func.func @transform_0(%arg0: i32, %arg1: i32, %arg2: memref<1xi32, #tpu.memory_space<smem>>, %arg3: memref<1xi32, #tpu.memory_space<smem>>) -> (i32, i32) {
    %c0_i32 = arith.constant 0 : i32
    %c0_i32_0 = arith.constant 0 : i32
    return %c0_i32, %arg1 : i32, i32
  }
  func.func @transform_1(%arg0: i32, %arg1: i32, %arg2: memref<1xi32, #tpu.memory_space<smem>>, %arg3: memref<1xi32, #tpu.memory_space<smem>>) -> (i32, i32) {
    %c0_i32 = arith.constant 0 : i32
    %c0_i32_0 = arith.constant 0 : i32
    return %arg1, %c0_i32 : i32, i32
  }
  func.func @transform_2(%arg0: i32, %arg1: i32, %arg2: memref<1xi32, #tpu.memory_space<smem>>, %arg3: memref<1xi32, #tpu.memory_space<smem>>) -> (i32, i32) {
    %c0_i32 = arith.constant 0 : i32
    %c0_i32_0 = arith.constant 0 : i32
    return %arg0, %c0_i32 : i32, i32
  }
  func.func @transform_3(%arg0: i32, %arg1: i32, %arg2: memref<1xi32, #tpu.memory_space<smem>>, %arg3: memref<1xi32, #tpu.memory_space<smem>>) -> (i32, i32) {
    %c0_i32 = arith.constant 0 : i32
    %c0_i32_0 = arith.constant 0 : i32
    %c0_i32_1 = arith.constant 0 : i32
    return %c0_i32, %c0_i32_0 : i32, i32
  }
  func.func @transform_4(%arg0: i32, %arg1: i32, %arg2: memref<1xi32, #tpu.memory_space<smem>>, %arg3: memref<1xi32, #tpu.memory_space<smem>>) -> (i32, i32) {
    %c0_i32 = arith.constant 0 : i32
    %c0_i32_0 = arith.constant 0 : i32
    %c0_i32_1 = arith.constant 0 : i32
    return %c0_i32, %c0_i32_0 : i32, i32
  }
  func.func @transform_5(%arg0: i32, %arg1: i32, %arg2: memref<1xi32, #tpu.memory_space<smem>>, %arg3: memref<1xi32, #tpu.memory_space<smem>>) -> (i32, i32) {
    %c0_i32 = arith.constant 0 : i32
    %c0_i32_0 = arith.constant 0 : i32
    %c0_i32_1 = arith.constant 0 : i32
    return %c0_i32, %c0_i32_0 : i32, i32
  }
  func.func @transform_6(%arg0: i32, %arg1: i32, %arg2: memref<1xi32, #tpu.memory_space<smem>>, %arg3: memref<1xi32, #tpu.memory_space<smem>>) -> (i32, i32) {
    %c0_i32 = arith.constant 0 : i32
    %c0_i32_0 = arith.constant 0 : i32
    %c0_i32_1 = arith.constant 0 : i32
    return %c0_i32, %c0_i32_0 : i32, i32
  }
  func.func @transform_7(%arg0: i32, %arg1: i32, %arg2: memref<1xi32, #tpu.memory_space<smem>>, %arg3: memref<1xi32, #tpu.memory_space<smem>>) -> (i32, i32) {
    %c0_i32 = arith.constant 0 : i32
    %c0_i32_0 = arith.constant 0 : i32
    %c0_i32_1 = arith.constant 0 : i32
    return %c0_i32, %c0_i32_0 : i32, i32
  }
  func.func @transform_8(%arg0: i32, %arg1: i32, %arg2: memref<1xi32, #tpu.memory_space<smem>>, %arg3: memref<1xi32, #tpu.memory_space<smem>>) -> (i32, i32) {
    %c0_i32 = arith.constant 0 : i32
    %c0_i32_0 = arith.constant 0 : i32
    %c0_i32_1 = arith.constant 0 : i32
    return %c0_i32, %c0_i32_0 : i32, i32
  }
  func.func @transform_9(%arg0: i32, %arg1: i32, %arg2: memref<1xi32, #tpu.memory_space<smem>>, %arg3: memref<1xi32, #tpu.memory_space<smem>>) -> (i32, i32) {
    %c0_i32 = arith.constant 0 : i32
    %c0_i32_0 = arith.constant 0 : i32
    %c0_i32_1 = arith.constant 0 : i32
    return %c0_i32, %c0_i32_0 : i32, i32
  }
  func.func @transform_10(%arg0: i32, %arg1: i32, %arg2: memref<1xi32, #tpu.memory_space<smem>>, %arg3: memref<1xi32, #tpu.memory_space<smem>>) -> (i32, i32) {
    %c0_i32 = arith.constant 0 : i32
    %c0_i32_0 = arith.constant 0 : i32
    %c0_i32_1 = arith.constant 0 : i32
    return %c0_i32, %c0_i32_0 : i32, i32
  }
  func.func @transform_11(%arg0: i32, %arg1: i32, %arg2: memref<1xi32, #tpu.memory_space<smem>>, %arg3: memref<1xi32, #tpu.memory_space<smem>>) -> (i32, i32) {
    %c0_i32 = arith.constant 0 : i32
    %c0_i32_0 = arith.constant 0 : i32
    %c0_i32_1 = arith.constant 0 : i32
    return %c0_i32, %c0_i32_0 : i32, i32
  }
  func.func @transform_12(%arg0: i32, %arg1: i32, %arg2: memref<1xi32, #tpu.memory_space<smem>>, %arg3: memref<1xi32, #tpu.memory_space<smem>>) -> (i32, i32) {
    %c0_i32 = arith.constant 0 : i32
    %c0_i32_0 = arith.constant 0 : i32
    %c0_i32_1 = arith.constant 0 : i32
    return %c0_i32, %c0_i32_0 : i32, i32
  }
  func.func @transform_13(%arg0: i32, %arg1: i32, %arg2: memref<1xi32, #tpu.memory_space<smem>>, %arg3: memref<1xi32, #tpu.memory_space<smem>>) -> (i32, i32) {
    %c0_i32 = arith.constant 0 : i32
    %c0_i32_0 = arith.constant 0 : i32
    %c0_i32_1 = arith.constant 0 : i32
    return %c0_i32, %c0_i32_0 : i32, i32
  }
  func.func @transform_14(%arg0: i32, %arg1: i32, %arg2: memref<1xi32, #tpu.memory_space<smem>>, %arg3: memref<1xi32, #tpu.memory_space<smem>>) -> (i32, i32) {
    %c0_i32 = arith.constant 0 : i32
    %c0_i32_0 = arith.constant 0 : i32
    %c0_i32_1 = arith.constant 0 : i32
    return %c0_i32, %c0_i32_0 : i32, i32
  }
  func.func @transform_15(%arg0: i32, %arg1: i32, %arg2: memref<1xi32, #tpu.memory_space<smem>>, %arg3: memref<1xi32, #tpu.memory_space<smem>>) -> (i32, i32) {
    %c0_i32 = arith.constant 0 : i32
    %c0_i32_0 = arith.constant 0 : i32
    return %arg0, %c0_i32 : i32, i32
  }
}

module attributes {stable_mosaic.version = 11 : i64} {
  func.func @conv_output_kernel(%arg0: i32, %arg1: i32, %arg2: memref<1xi32, #tpu.memory_space<smem>>, %arg3: memref<1xi32, #tpu.memory_space<smem>>, %arg4: memref<1x48xi32, #tpu.memory_space<vmem>>, %arg5: memref<48x128xf32, #tpu.memory_space<vmem>>, %arg6: memref<24x64xf32, #tpu.memory_space<vmem>>, %arg7: memref<128x64xf32, #tpu.memory_space<vmem>>, %arg8: memref<1x64xf32, #tpu.memory_space<vmem>>, %arg9: memref<1x64xf32, #tpu.memory_space<vmem>>, %arg10: memref<1x64xf32, #tpu.memory_space<vmem>>, %arg11: memref<64x64xf32, #tpu.memory_space<vmem>>, %arg12: memref<1x64xf32, #tpu.memory_space<vmem>>, %arg13: memref<1x64xf32, #tpu.memory_space<vmem>>, %arg14: memref<1x64xf32, #tpu.memory_space<vmem>>, %arg15: memref<128x64xf32, #tpu.memory_space<vmem>>, %arg16: memref<1x64xf32, #tpu.memory_space<vmem>>, %arg17: memref<64x64xf32, #tpu.memory_space<vmem>>, %arg18: memref<1x64xf32, #tpu.memory_space<vmem>>, %arg19: memref<64x64xf32, #tpu.memory_space<vmem>>, %arg20: memref<1x64xf32, #tpu.memory_space<vmem>>, %arg21: memref<1x64xf32, #tpu.memory_space<vmem>>, %arg22: memref<24x128xf32, #tpu.memory_space<vmem>>, %arg23: memref<24x64xf32, #tpu.memory_space<vmem>>) attributes {dimension_semantics = [#tpu.dimension_semantics<parallel>, #tpu.dimension_semantics<arbitrary>], iteration_bounds = array<i64: 1, 1>, scalar_prefetch = 2 : i64, scratch_operands = 1 : i64, tpu.core_type = #tpu.core_type<tc>, window_params = [{transform_indices = @transform_0, window_bounds = array<i64: 1, 48>}, {transform_indices = @transform_1, window_bounds = array<i64: 48, 128>}, {transform_indices = @transform_2, window_bounds = array<i64: 24, 64>}, {pipeline_mode = #tpu.pipeline_mode<synchronous>, transform_indices = @transform_3, window_bounds = array<i64: 128, 64>}, {pipeline_mode = #tpu.pipeline_mode<synchronous>, transform_indices = @transform_4, window_bounds = array<i64: 1, 64>}, {pipeline_mode = #tpu.pipeline_mode<synchronous>, transform_indices = @transform_5, window_bounds = array<i64: 1, 64>}, {pipeline_mode = #tpu.pipeline_mode<synchronous>, transform_indices = @transform_6, window_bounds = array<i64: 1, 64>}, {pipeline_mode = #tpu.pipeline_mode<synchronous>, transform_indices = @transform_7, window_bounds = array<i64: 64, 64>}, {pipeline_mode = #tpu.pipeline_mode<synchronous>, transform_indices = @transform_8, window_bounds = array<i64: 1, 64>}, {pipeline_mode = #tpu.pipeline_mode<synchronous>, transform_indices = @transform_9, window_bounds = array<i64: 1, 64>}, {pipeline_mode = #tpu.pipeline_mode<synchronous>, transform_indices = @transform_10, window_bounds = array<i64: 1, 64>}, {pipeline_mode = #tpu.pipeline_mode<synchronous>, transform_indices = @transform_11, window_bounds = array<i64: 128, 64>}, {pipeline_mode = #tpu.pipeline_mode<synchronous>, transform_indices = @transform_12, window_bounds = array<i64: 1, 64>}, {pipeline_mode = #tpu.pipeline_mode<synchronous>, transform_indices = @transform_13, window_bounds = array<i64: 64, 64>}, {pipeline_mode = #tpu.pipeline_mode<synchronous>, transform_indices = @transform_14, window_bounds = array<i64: 1, 64>}, {pipeline_mode = #tpu.pipeline_mode<synchronous>, transform_indices = @transform_15, window_bounds = array<i64: 64, 64>}, {pipeline_mode = #tpu.pipeline_mode<synchronous>, transform_indices = @transform_16, window_bounds = array<i64: 1, 64>}, {pipeline_mode = #tpu.pipeline_mode<synchronous>, transform_indices = @transform_17, window_bounds = array<i64: 1, 64>}, {transform_indices = @transform_18, window_bounds = array<i64: 24, 128>}]} {
    %c0_i32 = arith.constant 0 : i32
    %0 = arith.cmpi eq, %arg1, %c0_i32 : i32
    %1 = arith.extui %0 : i1 to i32
    %c0_i32_0 = arith.constant 0 : i32
    %2 = arith.cmpi ne, %1, %c0_i32_0 : i32
    scf.if %2 {
      %cst = arith.constant 0.000000e+00 : f32
      %17 = vector.broadcast %cst : f32 to vector<24x64xf32>
      %c0 = arith.constant 0 : index
      %c0_5 = arith.constant 0 : index
      %18 = vector.load %arg23[%c0, %c0_5] : memref<24x64xf32, #tpu.memory_space<vmem>>, vector<24x64xf32>
      tpu.vector_store %arg23[%c0, %c0_5], %17 {strides = array<i32>} : memref<24x64xf32, #tpu.memory_space<vmem>>, vector<24x64xf32>,
    } else {
    }
    %c24_i32 = arith.constant 24 : i32
    %3 = arith.muli %arg0, %c24_i32 : i32
    %4 = arith.index_cast %arg1 : i32 to index
    %5 = memref.load %arg3[%4] : memref<1xi32, #tpu.memory_space<smem>>
    %6 = arith.cmpi sge, %5, %3 : i32
    %7 = arith.index_cast %arg1 : i32 to index
    %8 = memref.load %arg2[%7] : memref<1xi32, #tpu.memory_space<smem>>
    %c24_i32_1 = arith.constant 24 : i32
    %9 = arith.addi %3, %c24_i32_1 : i32
    %10 = arith.cmpi slt, %8, %9 : i32
    %11 = arith.andi %6, %10 : i1
    %12 = arith.extui %11 : i1 to i32
    %c0_i32_2 = arith.constant 0 : i32
    %13 = arith.cmpi ne, %12, %c0_i32_2 : i32
    scf.if %13 {
      %c0 = arith.constant 0 : index
      %c0_5 = arith.constant 0 : index
      %17 = vector.load %arg5[%c0, %c0_5] : memref<48x128xf32, #tpu.memory_space<vmem>>, vector<48x128xf32>
      %c0_6 = arith.constant 0 : index
      %c0_7 = arith.constant 0 : index
      %18 = vector.load %arg7[%c0_6, %c0_7] : memref<128x64xf32, #tpu.memory_space<vmem>>, vector<128x64xf32>
      %cst = arith.constant dense<0.000000e+00> : vector<48x64xf32>
      %19 = tpu.matmul %17, %18, %cst {dimension_numbers = #tpu.dot_dimension_numbers<[1], [0], [0], [1], [0, 0, 1, 1], [], []>} : vector<48x128xf32>, vector<128x64xf32>, vector<48x64xf32> -> vector<48x64xf32>
      %c0_8 = arith.constant 0 : index
      %c0_9 = arith.constant 0 : index
      %20 = vector.load %arg8[%c0_8, %c0_9] : memref<1x64xf32, #tpu.memory_space<vmem>>, vector<1x64xf32>
      %21 = vector.broadcast %20 : vector<1x64xf32> to vector<48x64xf32>
      %22 = arith.addf %19, %21 : vector<48x64xf32>
      %c0_10 = arith.constant 0 : index
      %c0_11 = arith.constant 0 : index
      %23 = vector.load %arg9[%c0_10, %c0_11] : memref<1x64xf32, #tpu.memory_space<vmem>>, vector<1x64xf32>
      %c0_12 = arith.constant 0 : index
      %c0_13 = arith.constant 0 : index
      %24 = vector.load %arg10[%c0_12, %c0_13] : memref<1x64xf32, #tpu.memory_space<vmem>>, vector<1x64xf32>
      %cst_14 = arith.constant dense<0.000000e+00> : vector<48xf32>
      %25 = vector.multi_reduction <add>, %22, %cst_14 [1] : vector<48x64xf32> to vector<48xf32>
      %26 = vector.shape_cast %25 : vector<48xf32> to vector<48x1xf32>
      %cst_15 = arith.constant 6.400000e+01 : f32
      %27 = vector.broadcast %cst_15 : f32 to vector<48x1xf32>
      %28 = arith.divf %26, %27 : vector<48x1xf32>
      %29 = vector.broadcast %28 : vector<48x1xf32> to vector<48x64xf32>
      %30 = arith.subf %22, %29 : vector<48x64xf32>
      %31 = arith.mulf %30, %30 : vector<48x64xf32>
      %cst_16 = arith.constant dense<0.000000e+00> : vector<48xf32>
      %32 = vector.multi_reduction <add>, %31, %cst_16 [1] : vector<48x64xf32> to vector<48xf32>
      %33 = vector.shape_cast %32 : vector<48xf32> to vector<48x1xf32>
      %cst_17 = arith.constant 6.400000e+01 : f32
      %34 = vector.broadcast %cst_17 : f32 to vector<48x1xf32>
      %35 = arith.divf %33, %34 : vector<48x1xf32>
      %36 = vector.broadcast %28 : vector<48x1xf32> to vector<48x64xf32>
      %37 = arith.subf %22, %36 : vector<48x64xf32>
      %cst_18 = arith.constant 9.99999974E-6 : f32
      %38 = vector.broadcast %cst_18 : f32 to vector<48x1xf32>
      %39 = arith.addf %35, %38 : vector<48x1xf32>
      %40 = math.rsqrt %39 : vector<48x1xf32>
      %41 = vector.broadcast %40 : vector<48x1xf32> to vector<48x64xf32>
      %42 = arith.mulf %37, %41 : vector<48x64xf32>
      %43 = vector.broadcast %23 : vector<1x64xf32> to vector<48x64xf32>
      %44 = arith.mulf %42, %43 : vector<48x64xf32>
      %45 = vector.broadcast %24 : vector<1x64xf32> to vector<48x64xf32>
      %46 = arith.addf %44, %45 : vector<48x64xf32>
      %cst_19 = arith.constant 0.000000e+00 : f32
      %47 = vector.broadcast %cst_19 : f32 to vector<48x64xf32>
      %48 = arith.maximumf %46, %47 : vector<48x64xf32>
      %c0_20 = arith.constant 0 : index
      %c0_21 = arith.constant 0 : index
      %49 = vector.load %arg11[%c0_20, %c0_21] : memref<64x64xf32, #tpu.memory_space<vmem>>, vector<64x64xf32>
      %cst_22 = arith.constant dense<0.000000e+00> : vector<48x64xf32>
      %50 = tpu.matmul %48, %49, %cst_22 {dimension_numbers = #tpu.dot_dimension_numbers<[1], [0], [0], [1], [0, 0, 1, 1], [], []>} : vector<48x64xf32>, vector<64x64xf32>, vector<48x64xf32> -> vector<48x64xf32>
      %c0_23 = arith.constant 0 : index
      %c0_24 = arith.constant 0 : index
      %51 = vector.load %arg12[%c0_23, %c0_24] : memref<1x64xf32, #tpu.memory_space<vmem>>, vector<1x64xf32>
      %52 = vector.broadcast %51 : vector<1x64xf32> to vector<48x64xf32>
      %53 = arith.addf %50, %52 : vector<48x64xf32>
      %54 = tpu.iota {dimensions = array<i32: 0>} : vector<24x1xi32>
      %55 = vector.broadcast %3 : i32 to vector<24x1xi32>
      %56 = arith.addi %55, %54 : vector<24x1xi32>
      %c0_25 = arith.constant 0 : index
      %c0_26 = arith.constant 0 : index
      %57 = vector.load %arg4[%c0_25, %c0_26] : memref<1x48xi32, #tpu.memory_space<vmem>>, vector<1x48xi32>
      %58 = vector.broadcast %56 : vector<24x1xi32> to vector<24x48xi32>
      %59 = vector.broadcast %57 : vector<1x48xi32> to vector<24x48xi32>
      %60 = arith.cmpi eq, %58, %59 : vector<24x48xi32>
      %61 = arith.extui %60 : vector<24x48xi1> to vector<24x48xi32>
      %62 = arith.sitofp %61 : vector<24x48xi32> to vector<24x48xf32>
      %c0_27 = arith.constant 0 : index
      %c0_28 = arith.constant 0 : index
      %63 = vector.load %arg23[%c0_27, %c0_28] : memref<24x64xf32, #tpu.memory_space<vmem>>, vector<24x64xf32>
      %cst_29 = arith.constant dense<0.000000e+00> : vector<24x64xf32>
      %64 = tpu.matmul %62, %53, %cst_29 {dimension_numbers = #tpu.dot_dimension_numbers<[1], [0], [0], [1], [0, 0, 1, 1], [], []>} : vector<24x48xf32>, vector<48x64xf32>, vector<24x64xf32> -> vector<24x64xf32>
      %65 = arith.addf %63, %64 : vector<24x64xf32>
      %c0_30 = arith.constant 0 : index
      %c0_31 = arith.constant 0 : index
      %66 = vector.load %arg23[%c0_30, %c0_31] : memref<24x64xf32, #tpu.memory_space<vmem>>, vector<24x64xf32>
      tpu.vector_store %arg23[%c0_30, %c0_31], %65 {strides = array<i32>} : memref<24x64xf32, #tpu.memory_space<vmem>>, vector<24x64xf32>,
    } else {
    }
    %c0_i32_3 = arith.constant 0 : i32
    %14 = arith.cmpi eq, %arg1, %c0_i32_3 : i32
    %15 = arith.extui %14 : i1 to i32
    %c0_i32_4 = arith.constant 0 : i32
    %16 = arith.cmpi ne, %15, %c0_i32_4 : i32
    scf.if %16 {
      %c0 = arith.constant 0 : index
      %c0_5 = arith.constant 0 : index
      %17 = vector.load %arg23[%c0, %c0_5] : memref<24x64xf32, #tpu.memory_space<vmem>>, vector<24x64xf32>
      %c0_6 = arith.constant 0 : index
      %c0_7 = arith.constant 0 : index
      %18 = vector.load %arg6[%c0_6, %c0_7] : memref<24x64xf32, #tpu.memory_space<vmem>>, vector<24x64xf32>
      %c0_8 = arith.constant 0 : index
      %c0_9 = arith.constant 0 : index
      %19 = vector.load %arg13[%c0_8, %c0_9] : memref<1x64xf32, #tpu.memory_space<vmem>>, vector<1x64xf32>
      %c0_10 = arith.constant 0 : index
      %c0_11 = arith.constant 0 : index
      %20 = vector.load %arg14[%c0_10, %c0_11] : memref<1x64xf32, #tpu.memory_space<vmem>>, vector<1x64xf32>
      %c0_12 = arith.constant 0 : index
      %c0_13 = arith.constant 0 : index
      %21 = vector.load %arg15[%c0_12, %c0_13] : memref<128x64xf32, #tpu.memory_space<vmem>>, vector<128x64xf32>
      %c0_14 = arith.constant 0 : index
      %c0_15 = arith.constant 0 : index
      %22 = vector.load %arg16[%c0_14, %c0_15] : memref<1x64xf32, #tpu.memory_space<vmem>>, vector<1x64xf32>
      %c0_16 = arith.constant 0 : index
      %c0_17 = arith.constant 0 : index
      %23 = vector.load %arg17[%c0_16, %c0_17] : memref<64x64xf32, #tpu.memory_space<vmem>>, vector<64x64xf32>
      %c0_18 = arith.constant 0 : index
      %c0_19 = arith.constant 0 : index
      %24 = vector.load %arg18[%c0_18, %c0_19] : memref<1x64xf32, #tpu.memory_space<vmem>>, vector<1x64xf32>
      %cst = arith.constant dense<0.000000e+00> : vector<24xf32>
      %25 = vector.multi_reduction <add>, %17, %cst [1] : vector<24x64xf32> to vector<24xf32>
      %26 = vector.shape_cast %25 : vector<24xf32> to vector<24x1xf32>
      %cst_20 = arith.constant 6.400000e+01 : f32
      %27 = vector.broadcast %cst_20 : f32 to vector<24x1xf32>
      %28 = arith.divf %26, %27 : vector<24x1xf32>
      %29 = vector.broadcast %28 : vector<24x1xf32> to vector<24x64xf32>
      %30 = arith.subf %17, %29 : vector<24x64xf32>
      %31 = arith.mulf %30, %30 : vector<24x64xf32>
      %cst_21 = arith.constant dense<0.000000e+00> : vector<24xf32>
      %32 = vector.multi_reduction <add>, %31, %cst_21 [1] : vector<24x64xf32> to vector<24xf32>
      %33 = vector.shape_cast %32 : vector<24xf32> to vector<24x1xf32>
      %cst_22 = arith.constant 6.400000e+01 : f32
      %34 = vector.broadcast %cst_22 : f32 to vector<24x1xf32>
      %35 = arith.divf %33, %34 : vector<24x1xf32>
      %36 = vector.broadcast %28 : vector<24x1xf32> to vector<24x64xf32>
      %37 = arith.subf %17, %36 : vector<24x64xf32>
      %cst_23 = arith.constant 9.99999974E-6 : f32
      %38 = vector.broadcast %cst_23 : f32 to vector<24x1xf32>
      %39 = arith.addf %35, %38 : vector<24x1xf32>
      %40 = math.rsqrt %39 : vector<24x1xf32>
      %41 = vector.broadcast %40 : vector<24x1xf32> to vector<24x64xf32>
      %42 = arith.mulf %37, %41 : vector<24x64xf32>
      %43 = vector.broadcast %19 : vector<1x64xf32> to vector<24x64xf32>
      %44 = arith.mulf %42, %43 : vector<24x64xf32>
      %45 = vector.broadcast %20 : vector<1x64xf32> to vector<24x64xf32>
      %46 = arith.addf %44, %45 : vector<24x64xf32>
      %47 = tpu.concatenate %46, %18 in 1 : vector<24x64xf32>, vector<24x64xf32> -> vector<24x128xf32>
      %cst_24 = arith.constant dense<0.000000e+00> : vector<24x64xf32>
      %48 = tpu.matmul %47, %21, %cst_24 {dimension_numbers = #tpu.dot_dimension_numbers<[1], [0], [0], [1], [0, 0, 1, 1], [], []>} : vector<24x128xf32>, vector<128x64xf32>, vector<24x64xf32> -> vector<24x64xf32>
      %49 = vector.broadcast %22 : vector<1x64xf32> to vector<24x64xf32>
      %50 = arith.addf %48, %49 : vector<24x64xf32>
      %cst_25 = arith.constant 0.000000e+00 : f32
      %51 = vector.broadcast %cst_25 : f32 to vector<24x64xf32>
      %52 = arith.maximumf %50, %51 : vector<24x64xf32>
      %cst_26 = arith.constant dense<0.000000e+00> : vector<24x64xf32>
      %53 = tpu.matmul %52, %23, %cst_26 {dimension_numbers = #tpu.dot_dimension_numbers<[1], [0], [0], [1], [0, 0, 1, 1], [], []>} : vector<24x64xf32>, vector<64x64xf32>, vector<24x64xf32> -> vector<24x64xf32>
      %54 = vector.broadcast %24 : vector<1x64xf32> to vector<24x64xf32>
      %55 = arith.addf %53, %54 : vector<24x64xf32>
      %c0_27 = arith.constant 0 : index
      %c0_28 = arith.constant 0 : index
      %56 = vector.load %arg19[%c0_27, %c0_28] : memref<64x64xf32, #tpu.memory_space<vmem>>, vector<64x64xf32>
      %cst_29 = arith.constant dense<0.000000e+00> : vector<24x64xf32>
      %57 = tpu.matmul %55, %56, %cst_29 {dimension_numbers = #tpu.dot_dimension_numbers<[1], [0], [0], [1], [0, 0, 1, 1], [], []>} : vector<24x64xf32>, vector<64x64xf32>, vector<24x64xf32> -> vector<24x64xf32>
      %c0_30 = arith.constant 0 : index
      %c0_31 = arith.constant 0 : index
      %58 = vector.load %arg20[%c0_30, %c0_31] : memref<1x64xf32, #tpu.memory_space<vmem>>, vector<1x64xf32>
      %59 = vector.broadcast %58 : vector<1x64xf32> to vector<24x64xf32>
      %60 = arith.addf %57, %59 : vector<24x64xf32>
      %61 = math.tanh %60 : vector<24x64xf32>
      %c0_32 = arith.constant 0 : index
      %c0_33 = arith.constant 0 : index
      %62 = vector.load %arg21[%c0_32, %c0_33] : memref<1x64xf32, #tpu.memory_space<vmem>>, vector<1x64xf32>
      %63 = vector.broadcast %62 : vector<1x64xf32> to vector<24x64xf32>
      %64 = arith.mulf %61, %63 : vector<24x64xf32>
      %cst_34 = arith.constant dense<0.000000e+00> : vector<24xf32>
      %65 = vector.multi_reduction <add>, %64, %cst_34 [1] : vector<24x64xf32> to vector<24xf32>
      %66 = vector.shape_cast %65 : vector<24xf32> to vector<24x1xf32>
      %cst_35 = arith.constant 0.000000e+00 : f32
      %67 = vector.broadcast %cst_35 : f32 to vector<24x1xf32>
      %68 = arith.subf %67, %66 : vector<24x1xf32>
      %69 = math.exp %68 : vector<24x1xf32>
      %cst_36 = arith.constant 1.000000e+00 : f32
      %70 = vector.broadcast %cst_36 : f32 to vector<24x1xf32>
      %71 = arith.addf %70, %69 : vector<24x1xf32>
      %cst_37 = arith.constant 1.000000e+00 : f32
      %72 = vector.broadcast %cst_37 : f32 to vector<24x1xf32>
      %73 = arith.divf %72, %71 : vector<24x1xf32>
      %74 = vector.shape_cast %73 : vector<24x1xf32> to vector<24x1xf32>
      %75 = vector.broadcast %74 : vector<24x1xf32> to vector<24x128xf32>
      %c0_38 = arith.constant 0 : index
      %c0_39 = arith.constant 0 : index
      %76 = vector.load %arg22[%c0_38, %c0_39] : memref<24x128xf32, #tpu.memory_space<vmem>>, vector<24x128xf32>
      tpu.vector_store %arg22[%c0_38, %c0_39], %75 {strides = array<i32>} : memref<24x128xf32, #tpu.memory_space<vmem>>, vector<24x128xf32>,
    } else {
    }
    return
  }
  func.func @transform_0(%arg0: i32, %arg1: i32, %arg2: memref<1xi32, #tpu.memory_space<smem>>, %arg3: memref<1xi32, #tpu.memory_space<smem>>) -> (i32, i32) {
    %c0_i32 = arith.constant 0 : i32
    %c0_i32_0 = arith.constant 0 : i32
    return %c0_i32, %arg1 : i32, i32
  }
  func.func @transform_1(%arg0: i32, %arg1: i32, %arg2: memref<1xi32, #tpu.memory_space<smem>>, %arg3: memref<1xi32, #tpu.memory_space<smem>>) -> (i32, i32) {
    %c0_i32 = arith.constant 0 : i32
    %c0_i32_0 = arith.constant 0 : i32
    return %arg1, %c0_i32 : i32, i32
  }
  func.func @transform_2(%arg0: i32, %arg1: i32, %arg2: memref<1xi32, #tpu.memory_space<smem>>, %arg3: memref<1xi32, #tpu.memory_space<smem>>) -> (i32, i32) {
    %c0_i32 = arith.constant 0 : i32
    %c0_i32_0 = arith.constant 0 : i32
    return %arg0, %c0_i32 : i32, i32
  }
  func.func @transform_3(%arg0: i32, %arg1: i32, %arg2: memref<1xi32, #tpu.memory_space<smem>>, %arg3: memref<1xi32, #tpu.memory_space<smem>>) -> (i32, i32) {
    %c0_i32 = arith.constant 0 : i32
    %c0_i32_0 = arith.constant 0 : i32
    %c0_i32_1 = arith.constant 0 : i32
    return %c0_i32, %c0_i32_0 : i32, i32
  }
  func.func @transform_4(%arg0: i32, %arg1: i32, %arg2: memref<1xi32, #tpu.memory_space<smem>>, %arg3: memref<1xi32, #tpu.memory_space<smem>>) -> (i32, i32) {
    %c0_i32 = arith.constant 0 : i32
    %c0_i32_0 = arith.constant 0 : i32
    %c0_i32_1 = arith.constant 0 : i32
    return %c0_i32, %c0_i32_0 : i32, i32
  }
  func.func @transform_5(%arg0: i32, %arg1: i32, %arg2: memref<1xi32, #tpu.memory_space<smem>>, %arg3: memref<1xi32, #tpu.memory_space<smem>>) -> (i32, i32) {
    %c0_i32 = arith.constant 0 : i32
    %c0_i32_0 = arith.constant 0 : i32
    %c0_i32_1 = arith.constant 0 : i32
    return %c0_i32, %c0_i32_0 : i32, i32
  }
  func.func @transform_6(%arg0: i32, %arg1: i32, %arg2: memref<1xi32, #tpu.memory_space<smem>>, %arg3: memref<1xi32, #tpu.memory_space<smem>>) -> (i32, i32) {
    %c0_i32 = arith.constant 0 : i32
    %c0_i32_0 = arith.constant 0 : i32
    %c0_i32_1 = arith.constant 0 : i32
    return %c0_i32, %c0_i32_0 : i32, i32
  }
  func.func @transform_7(%arg0: i32, %arg1: i32, %arg2: memref<1xi32, #tpu.memory_space<smem>>, %arg3: memref<1xi32, #tpu.memory_space<smem>>) -> (i32, i32) {
    %c0_i32 = arith.constant 0 : i32
    %c0_i32_0 = arith.constant 0 : i32
    %c0_i32_1 = arith.constant 0 : i32
    return %c0_i32, %c0_i32_0 : i32, i32
  }
  func.func @transform_8(%arg0: i32, %arg1: i32, %arg2: memref<1xi32, #tpu.memory_space<smem>>, %arg3: memref<1xi32, #tpu.memory_space<smem>>) -> (i32, i32) {
    %c0_i32 = arith.constant 0 : i32
    %c0_i32_0 = arith.constant 0 : i32
    %c0_i32_1 = arith.constant 0 : i32
    return %c0_i32, %c0_i32_0 : i32, i32
  }
  func.func @transform_9(%arg0: i32, %arg1: i32, %arg2: memref<1xi32, #tpu.memory_space<smem>>, %arg3: memref<1xi32, #tpu.memory_space<smem>>) -> (i32, i32) {
    %c0_i32 = arith.constant 0 : i32
    %c0_i32_0 = arith.constant 0 : i32
    %c0_i32_1 = arith.constant 0 : i32
    return %c0_i32, %c0_i32_0 : i32, i32
  }
  func.func @transform_10(%arg0: i32, %arg1: i32, %arg2: memref<1xi32, #tpu.memory_space<smem>>, %arg3: memref<1xi32, #tpu.memory_space<smem>>) -> (i32, i32) {
    %c0_i32 = arith.constant 0 : i32
    %c0_i32_0 = arith.constant 0 : i32
    %c0_i32_1 = arith.constant 0 : i32
    return %c0_i32, %c0_i32_0 : i32, i32
  }
  func.func @transform_11(%arg0: i32, %arg1: i32, %arg2: memref<1xi32, #tpu.memory_space<smem>>, %arg3: memref<1xi32, #tpu.memory_space<smem>>) -> (i32, i32) {
    %c0_i32 = arith.constant 0 : i32
    %c0_i32_0 = arith.constant 0 : i32
    %c0_i32_1 = arith.constant 0 : i32
    return %c0_i32, %c0_i32_0 : i32, i32
  }
  func.func @transform_12(%arg0: i32, %arg1: i32, %arg2: memref<1xi32, #tpu.memory_space<smem>>, %arg3: memref<1xi32, #tpu.memory_space<smem>>) -> (i32, i32) {
    %c0_i32 = arith.constant 0 : i32
    %c0_i32_0 = arith.constant 0 : i32
    %c0_i32_1 = arith.constant 0 : i32
    return %c0_i32, %c0_i32_0 : i32, i32
  }
  func.func @transform_13(%arg0: i32, %arg1: i32, %arg2: memref<1xi32, #tpu.memory_space<smem>>, %arg3: memref<1xi32, #tpu.memory_space<smem>>) -> (i32, i32) {
    %c0_i32 = arith.constant 0 : i32
    %c0_i32_0 = arith.constant 0 : i32
    %c0_i32_1 = arith.constant 0 : i32
    return %c0_i32, %c0_i32_0 : i32, i32
  }
  func.func @transform_14(%arg0: i32, %arg1: i32, %arg2: memref<1xi32, #tpu.memory_space<smem>>, %arg3: memref<1xi32, #tpu.memory_space<smem>>) -> (i32, i32) {
    %c0_i32 = arith.constant 0 : i32
    %c0_i32_0 = arith.constant 0 : i32
    %c0_i32_1 = arith.constant 0 : i32
    return %c0_i32, %c0_i32_0 : i32, i32
  }
  func.func @transform_15(%arg0: i32, %arg1: i32, %arg2: memref<1xi32, #tpu.memory_space<smem>>, %arg3: memref<1xi32, #tpu.memory_space<smem>>) -> (i32, i32) {
    %c0_i32 = arith.constant 0 : i32
    %c0_i32_0 = arith.constant 0 : i32
    %c0_i32_1 = arith.constant 0 : i32
    return %c0_i32, %c0_i32_0 : i32, i32
  }
  func.func @transform_16(%arg0: i32, %arg1: i32, %arg2: memref<1xi32, #tpu.memory_space<smem>>, %arg3: memref<1xi32, #tpu.memory_space<smem>>) -> (i32, i32) {
    %c0_i32 = arith.constant 0 : i32
    %c0_i32_0 = arith.constant 0 : i32
    %c0_i32_1 = arith.constant 0 : i32
    return %c0_i32, %c0_i32_0 : i32, i32
  }
  func.func @transform_17(%arg0: i32, %arg1: i32, %arg2: memref<1xi32, #tpu.memory_space<smem>>, %arg3: memref<1xi32, #tpu.memory_space<smem>>) -> (i32, i32) {
    %c0_i32 = arith.constant 0 : i32
    %c0_i32_0 = arith.constant 0 : i32
    %c0_i32_1 = arith.constant 0 : i32
    return %c0_i32, %c0_i32_0 : i32, i32
  }
  func.func @transform_18(%arg0: i32, %arg1: i32, %arg2: memref<1xi32, #tpu.memory_space<smem>>, %arg3: memref<1xi32, #tpu.memory_space<smem>>) -> (i32, i32) {
    %c0_i32 = arith.constant 0 : i32
    %c0_i32_0 = arith.constant 0 : i32
    return %arg0, %c0_i32 : i32, i32
  }
}

</mosaic_0001>

<bundles_post_ra>
// kernel: policy_forward.6
= control target key start
LH: loop header
LB: loop body
LE: loop exit
PB: predicated region body
PF: predicated region fallthrough
CT: control target
= control target key end

     0   :  { %vm30_vm0 = vcmask 31744   ;;  %vm88_vm1 = vcmask 1043456   ;;  %vm184_vm2 = vcmask 523264   ;;  %s449_s0 = inlined_call_operand.vmem [shape: f32[16,4], index: 0, kind: input, shape index: {}]   ;;  %s450_s3 = inlined_call_operand.vmem [shape: f32[4,64], index: 3, kind: input, shape index: {}]   ;;  %s451_s1 = inlined_call_operand.vmem [shape: f32[1,4], index: 1, kind: input, shape index: {}]   ;;  %s452_s2 = inlined_call_operand.vmem [shape: f32[1,4], index: 2, kind: input, shape index: {}]   ;;  %s453_s5 = inlined_call_operand.vmem [shape: f32[64,64], index: 5, kind: input, shape index: {}]   ;;  %s454_s4 = inlined_call_operand.vmem [shape: f32[1,64], index: 4, kind: input, shape index: {}]   ;;  %s455_s6 = inlined_call_operand.vmem [shape: f32[1,64], index: 6, kind: input, shape index: {}]   ;;  %s456_s7 = inlined_call_operand.vmem [shape: f32[16,64], index: 7, kind: output, shape index: {}]  }
   0x1   :  { %v26_v0 = vld [vmem:[%s449_s0] sm:$0xff]  ;;  %v27_v1 = vld [vmem:[%s449_s0 + $0x8] sm:$0xff]  ;;  %v171_v34 = vld [vmem:[%s453_s5 + $0x10] sm:$0xff] }
   0x2   :  { %v31_v2 = vsel %vm30_vm0, %v26_v0, 0.0  ;;  %v34_v3 = vsel %vm30_vm0, %v27_v1, 0.0  ;;  %v74_v14 = vld [vmem:[%s450_s3] sm:$0xf]  ;;  %v170_v32 = vld [vmem:[%s453_s5 + $0x8] sm:$0xff]  ;;  %v172_v35 = vld [vmem:[%s453_s5 + $0x18] sm:$0xff] }
   0x3   :  { %32 = vadd.xlane.f32.xlu0 %v31_v2  ;;  %296 = vmatprep.subr.msk.mxu0 %vm88_vm1, %v74_v14  ;;  %v274_v22 = vld [vmem:[%s451_s1] ss:$0 sm:$0xff]  ;;  %v324_v36 = vpack.c.bf16 %v172_v35, %v171_v34  ;;  %v174_v38 = vld [vmem:[%s453_s5 + $0x28] sm:$0xff]  ;;  %v175_v39 = vld [vmem:[%s453_s5 + $0x30] sm:$0xff] }
   0x4   :  { %297 = vmatpush3.msk.msra.mxu0 %vm88_vm1, %v74_v14  ;;  %v275_v24 = vld [vmem:[%s452_s2] ss:$0 sm:$0xff]  ;;  %v176_v41 = vld [vmem:[%s453_s5 + $0x38] sm:$0xff] }
   0x5   :  { %v169_v31 = vld [vmem:[%s453_s5] sm:$0xff]  ;;  %v332_v42 = vpack.c.bf16 %v176_v41, %v175_v39 }
   0x6   :  { %v320_v33 = vpack.c.bf16 %v170_v32, %v169_v31  ;;  %v173_v37 = vld [vmem:[%s453_s5 + $0x20] sm:$0xff] }
   0x7   :  { %35 = vadd.xlane.f32.xlu0 %v34_v3  ;;  %v328_v40 = vpack.c.bf16 %v174_v38, %v173_v37  ;;  %v276_v43 = vld [vmem:[%s454_s4] ss:$0 sm:$0xff] }
   0x8   :  { %321 = vmatprep.subr.bf16.mxu1 %v320_v33  ;;  %v280_v50 = vld [vmem:[%s455_s6] ss:$0 sm:$0xff] }
   0x9   :  { %323 = vmatpush3.bf16.msra.mxu1 %v320_v33 }
   0xa   :  { %325 = vmatprep.subr.bf16.mxu1 %v324_v36 }
   0xd   :  { %327 = vmatpush3.bf16.msra.mxu1 %v324_v36 }
   0xe   :  { %329 = vmatprep.subr.bf16.mxu1 %v328_v40 }
  0x11   :  { %331 = vmatpush3.bf16.msra.mxu1 %v328_v40 }
  0x12   :  { %333 = vmatprep.subr.bf16.mxu1 %v332_v42 }
  0x15   :  { %335 = vmatpush3.bf16.msra.mxu1 %v332_v42 }
  0x90   :  { %v33_v4 = vpop.xlane.xlu0 %32 }
  0x91   :  { %v38_v5 = vmul.f32 0.25, %v33_v4 }
  0x93   :  { %v40_v6 = vsub.f32 %v26_v0, %v38_v5 }
  0x94   :  { %v36_v7 = vpop.xlane.xlu0 %35 }
  0x95   :  { %v39_v8 = vmul.f32 0.25, %v36_v7  ;;  %v42_v9 = vmul.f32 %v40_v6, %v40_v6 }
  0x97   :  { %v41_v10 = vsub.f32 %v27_v1, %v39_v8  ;;  %v44_v11 = vsel %vm30_vm0, %v42_v9, 0.0 }
  0x98   :  { %45 = vadd.xlane.f32.xlu1 %v44_v11 }
  0x99   :  { %v43_v12 = vmul.f32 %v41_v10, %v41_v10 }
  0x9b   :  { %v47_v13 = vsel %vm30_vm0, %v43_v12, 0.0 }
  0x9c   :  { %48 = vadd.xlane.f32.xlu1 %v47_v13 }
 0x125   :  { %v46_v15 = vpop.xlane.xlu1 %45 }
 0x126   :  { %v50_v16 = vmul.f32 0.25, %v46_v15 }
 0x128   :  { %v52_v17 = vadd.f32 1e-05, %v50_v16 }
 0x129   :  { %v49_v18 = vpop.xlane.xlu1 %48 }
 0x12a   :  { %336 = vrsqrt.f32 %v52_v17  ;;  %v51_v19 = vmul.f32 0.25, %v49_v18 }
 0x12c   :  { %v53_v20 = vadd.f32 1e-05, %v51_v19 }
 0x12e   :  { %338 = vrsqrt.f32 %v53_v20 }
 0x134   :  { %v337_v21 = vpop.eup %336 }
 0x135   :  { %v56_v23 = vmul.f32 %v337_v21, %v40_v6 }
 0x137   :  { %v64_v25 = vmul.f32 %v274_v22, %v56_v23 }
 0x138   :  { %v339_v26 = vpop.eup %338 }
 0x139   :  { %v57_v27 = vmul.f32 %v339_v26, %v41_v10  ;;  %v72_v28 = vadd.f32 %v275_v24, %v64_v25 }
 0x13b   :  { %v65_v29 = vmul.f32 %v274_v22, %v57_v27  ;;  %298 = vmatprep.mubr.msk.f32.mxu0 %vm30_vm0, %v72_v28 }
 0x13d   :  { %v73_v30 = vadd.f32 %v275_v24, %v65_v29 }
 0x13f   :  { %299 = vmatmul.mubr.msk.f32.vlgmr.msra.gmra.mrb[0].mxu0 %vm30_vm0, %v73_v30 }
 0x212   :  { %v300_v44 = vpop.f32.mrb[0].mxu0 }
 0x213   :  { %v164_v45 = vadd.f32 %v300_v44, %v276_v43  ;;  %v158_v46 = vpop.f32.mrb[1].mxu0 }
 0x214   :  { %v159_v47 = vadd.f32 %v276_v43, %v158_v46 }
 0x216   :  { %340 = vtanh.f32 %v159_v47 }
 0x217   :  { %342 = vtanh.f32 %v164_v45 }
 0x220   :  { %v341_v48 = vpop.eup %340 }
 0x221   :  { %v343_v49 = vpop.eup %342  ;;  %317 = vmatprep.mubr.msk.f32.mxu1 %vm184_vm2, %v341_v48 }
 0x222   :  { %318 = vmatmul.mubr.msk.f32.vlgmr.msra.gmra.mrb[0].mxu1 %vm184_vm2, %v343_v49 }
 0x2f5   :  { %v319_v51 = vpop.f32.mrb[0].mxu1 }
 0x2f6   :  { %v263_v52 = vadd.f32 %v319_v51, %v280_v50  ;;  %v257_v53 = vpop.f32.mrb[1].mxu1 }
 0x2f7   :  { %v258_v54 = vadd.f32 %v280_v50, %v257_v53 }
 0x2f8   :  { %344 = vtanh.f32 %v263_v52 }
 0x2f9   :  { %346 = vtanh.f32 %v258_v54 }
 0x302   :  { %v345_v55 = vpop.eup %344 }
 0x303   :  { %v347_v56 = vpop.eup %346  ;;  %269 = vst.msk [vmem:[%s456_s7 + $0x8] sm:$0xff] %vm184_vm2, %v345_v55 }
 0x304   :  { %268 = vst.msk [vmem:[%s456_s7] sm:$0xff] %vm184_vm2, %v347_v56 }

// kernel: policy_forward.7
= control target key start
LH: loop header
LB: loop body
LE: loop exit
PB: predicated region body
PF: predicated region fallthrough
CT: control target
= control target key end

     0   :  { %vm31_vm0 = vcmask 48128   ;;  %vm107_vm1 = vcmask 1045504   ;;  %v412_v21 = vmov 0.0   ;;  %vm413_vm2 = vmmov 0   ;;  %s540_s0 = inlined_call_operand.vmem [shape: f32[24,6], index: 0, kind: input, shape index: {}]   ;;  %s541_s3 = inlined_call_operand.vmem [shape: f32[6,64], index: 3, kind: input, shape index: {}]   ;;  %s542_s5 = inlined_call_operand.vmem [shape: f32[64,64], index: 5, kind: input, shape index: {}]   ;;  %s543_s1 = inlined_call_operand.vmem [shape: f32[1,6], index: 1, kind: input, shape index: {}]   ;;  %s544_s2 = inlined_call_operand.vmem [shape: f32[1,6], index: 2, kind: input, shape index: {}]   ;;  %s545_s4 = inlined_call_operand.vmem [shape: f32[1,64], index: 4, kind: input, shape index: {}]   ;;  %s546_s6 = inlined_call_operand.vmem [shape: f32[1,64], index: 6, kind: input, shape index: {}]   ;;  %s547_s7 = inlined_call_operand.vmem [shape: f32[24,64], index: 7, kind: output, shape index: {}]  }
   0x1   :  { %v26_v0 = vld [vmem:[%s540_s0] sm:$0xff]  ;;  %v28_v1 = vld [vmem:[%s540_s0 + $0x10] sm:$0xff]  ;;  %v27_v2 = vld [vmem:[%s540_s0 + $0x8] sm:$0xff]  ;;  %335 = vmatprep.subr.mxu0 %v412_v21  ;;  %337 = vmatprep.mubr.msk.f32.mxu0 %vm413_vm2, %v412_v21  ;;  %v414_v23 = vmov 0.0|0.0   ;;  %vm209_vm3 = vcmask 523264  }
   0x2   :  { %v32_v3 = vsel %vm31_vm0, %v26_v0, 0.0  ;;  %v38_v4 = vsel %vm31_vm0, %v28_v1, 0.0  ;;  %v35_v5 = vsel %vm31_vm0, %v27_v2, 0.0  ;;  %v90_v22 = vld [vmem:[%s541_s3] sm:$0x3f]  ;;  %365 = vmatprep.mubr.msk.f32.mxu1 %vm413_vm2, %v412_v21  ;;  %v195_v25 = vld [vmem:[%s542_s5 + $0x8] sm:$0xff]  ;;  %383 = vmatprep.subr.bf16.mxu1 %v414_v23 }
   0x3   :  { %33 = vadd.xlane.f32.xlu0 %v32_v3  ;;  %39 = vadd.xlane.f32.xlu1 %v38_v4  ;;  %v194_v24 = vld [vmem:[%s542_s5] sm:$0xff]  ;;  %v196_v50 = vld [vmem:[%s542_s5 + $0x10] sm:$0xff]  ;;  %v197_v51 = vld [vmem:[%s542_s5 + $0x18] sm:$0xff] }
   0x4   :  { %336 = vmatpush3.msk.msra.mxu0 %vm107_vm1, %v90_v22  ;;  %v372_v26 = vpack.c.bf16 %v195_v25, %v194_v24  ;;  %v309_v37 = vld [vmem:[%s543_s1] ss:$0 sm:$0xff]  ;;  %v375_v52 = vpack.c.bf16 %v197_v51, %v196_v50  ;;  %v199_v54 = vld [vmem:[%s542_s5 + $0x28] sm:$0xff]  ;;  %v200_v56 = vld [vmem:[%s542_s5 + $0x30] sm:$0xff] }
   0x5   :  { %371 = vmatprep.subr.bf16.mxu0 %v414_v23  ;;  %v310_v39 = vld [vmem:[%s544_s2] ss:$0 sm:$0xff]  ;;  %v201_v57 = vld [vmem:[%s542_s5 + $0x38] sm:$0xff] }
   0x6   :  { %387 = vmatpush3.bf16.msra.mxu1 %v372_v26  ;;  %v198_v53 = vld [vmem:[%s542_s5 + $0x20] sm:$0xff]  ;;  %v381_v58 = vpack.c.bf16 %v201_v57, %v200_v56 }
   0x7   :  { %36 = vadd.xlane.f32.xlu0 %v35_v5  ;;  %384 = vmatprep.subr.bf16.mxu1 %v414_v23  ;;  %v378_v55 = vpack.c.bf16 %v199_v54, %v198_v53  ;;  %v311_v59 = vld [vmem:[%s545_s4] ss:$0 sm:$0xff] }
   0xa   :  { %388 = vmatpush3.bf16.msra.mxu1 %v375_v52 }
   0xb   :  { %385 = vmatprep.subr.bf16.mxu1 %v414_v23 }
   0xe   :  { %389 = vmatpush3.bf16.msra.mxu1 %v378_v55 }
   0xf   :  { %386 = vmatprep.subr.bf16.mxu1 %v414_v23 }
  0x12   :  { %390 = vmatpush3.bf16.msra.mxu1 %v381_v58 }
  0x90   :  { %v34_v6 = vpop.xlane.xlu0 %33  ;;  %v40_v7 = vpop.xlane.xlu1 %39 }
  0x91   :  { %v42_v8 = vmul.f32 0.16666667, %v34_v6  ;;  %v44_v9 = vmul.f32 0.16666667, %v40_v7 }
  0x93   :  { %v45_v10 = vsub.f32 %v26_v0, %v42_v8  ;;  %v47_v11 = vsub.f32 %v28_v1, %v44_v9  ;;  %v316_v8 = vld [vmem:[%s546_s6] ss:$0 sm:$0xff] }
  0x94   :  { %v37_v12 = vpop.xlane.xlu0 %36 }
  0x95   :  { %v43_v13 = vmul.f32 0.16666667, %v37_v12  ;;  %v48_v14 = vmul.f32 %v45_v10, %v45_v10  ;;  %v50_v15 = vmul.f32 %v47_v11, %v47_v11 }
  0x97   :  { %v46_v16 = vsub.f32 %v27_v2, %v43_v13  ;;  %v51_v17 = vsel %vm31_vm0, %v48_v14, 0.0  ;;  %v57_v18 = vsel %vm31_vm0, %v50_v15, 0.0 }
  0x98   :  { %52 = vadd.xlane.f32.xlu1 %v51_v17 }
  0x99   :  { %v49_v19 = vmul.f32 %v46_v16, %v46_v16 }
  0x9b   :  { %v54_v20 = vsel %vm31_vm0, %v49_v19, 0.0 }
  0x9c   :  { %58 = vadd.xlane.f32.xlu1 %v57_v18  ;;  %55 = vadd.xlane.f32.xlu0 %v54_v20 }
 0x125   :  { %v53_v27 = vpop.xlane.xlu1 %52 }
 0x126   :  { %v60_v28 = vmul.f32 0.16666667, %v53_v27 }
 0x128   :  { %v63_v29 = vadd.f32 1e-05, %v60_v28 }
 0x129   :  { %v59_v30 = vpop.xlane.xlu1 %58  ;;  %v56_v31 = vpop.xlane.xlu0 %55 }
 0x12a   :  { %394 = vrsqrt.f32 %v63_v29  ;;  %v62_v32 = vmul.f32 0.16666667, %v59_v30  ;;  %v61_v33 = vmul.f32 0.16666667, %v56_v31 }
 0x12c   :  { %v65_v34 = vadd.f32 1e-05, %v62_v32  ;;  %v64_v35 = vadd.f32 1e-05, %v61_v33 }
 0x12e   :  { %396 = vrsqrt.f32 %v65_v34 }
 0x12f   :  { %398 = vrsqrt.f32 %v64_v35 }
 0x134   :  { %v395_v36 = vpop.eup %394 }
 0x135   :  { %v69_v38 = vmul.f32 %v395_v36, %v45_v10 }
 0x137   :  { %v78_v40 = vmul.f32 %v309_v37, %v69_v38 }
 0x138   :  { %v397_v41 = vpop.eup %396 }
 0x139   :  { %v399_v42 = vpop.eup %398  ;;  %v87_v43 = vadd.f32 %v310_v39, %v78_v40  ;;  %v71_v45 = vmul.f32 %v397_v41, %v47_v11 }
 0x13a   :  { %v70_v44 = vmul.f32 %v399_v42, %v46_v16 }
 0x13b   :  { %338 = vmatmul.mubr.msk.f32.vlgmr.msra.gmra.mrb[0].mxu0 %vm31_vm0, %v87_v43  ;;  %v80_v48 = vmul.f32 %v309_v37, %v71_v45 }
 0x13c   :  { %340 = vmatprep.mubr.msk.f32.mxu0 %vm413_vm2, %v412_v21  ;;  %v79_v46 = vmul.f32 %v309_v37, %v70_v44  ;;  %373 = vmatpush3.bf16.msra.mxu0 %v372_v26 }
 0x13d   :  { %374 = vmatprep.subr.bf16.mxu0 %v414_v23  ;;  %v89_v49 = vadd.f32 %v310_v39, %v80_v48 }
 0x13e   :  { %v88_v47 = vadd.f32 %v310_v39, %v79_v46 }
 0x140   :  { %341 = vmatmul.mubr.msk.f32.gmra.mrb[2].mxu0 %vm31_vm0, %v88_v47 }
 0x141   :  { %343 = vmatprep.mubr.msk.f32.mxu0 %vm413_vm2, %v412_v21  ;;  %376 = vmatpush3.bf16.msra.mxu0 %v375_v52 }
 0x142   :  { %377 = vmatprep.subr.bf16.mxu0 %v414_v23 }
 0x144   :  { %344 = vmatmul.mubr.msk.f32.gmra.mrb[4].mxu0 %vm31_vm0, %v89_v49 }
 0x145   :  { %362 = vmatprep.mubr.msk.f32.mxu0 %vm413_vm2, %v412_v21  ;;  %379 = vmatpush3.bf16.msra.mxu0 %v378_v55 }
 0x146   :  { %380 = vmatprep.subr.bf16.mxu0 %v414_v23 }
 0x149   :  { %382 = vmatpush3.bf16.msra.mxu0 %v381_v58 }
 0x20e   :  { %v177_v60 = vpop.f32.mrb[0].mxu0 }
 0x20f   :  { %v178_v61 = vadd.f32 %v311_v59, %v177_v60  ;;  %v339_v62 = vpop.f32.mrb[1].mxu0 }
 0x211   :  { %400 = vtanh.f32 %v178_v61 }
 0x213   :  { %v182_v63 = vpop.f32.mrb[2].mxu0 }
 0x214   :  { %v183_v0 = vadd.f32 %v311_v59, %v182_v63  ;;  %v342_v1 = vpop.f32.mrb[3].mxu0 }
 0x216   :  { %402 = vtanh.f32 %v183_v0 }
 0x217   :  { %v187_v2 = vpop.f32.mrb[4].mxu0 }
 0x218   :  { %v188_v3 = vadd.f32 %v311_v59, %v187_v2  ;;  %v345_v4 = vpop.f32.mrb[5].mxu0 }
 0x21a   :  { %404 = vtanh.f32 %v188_v3 }
 0x21b   :  { %v401_v5 = vpop.eup %400 }
 0x21c   :  { %363 = vmatmul.mubr.msk.f32.vlgmr.msra.gmra.mrb[6].mxu0 %vm209_vm3, %v401_v5 }
 0x220   :  { %v403_v6 = vpop.eup %402 }
 0x221   :  { %366 = vmatmul.mubr.msk.f32.vlgmr.msra.gmra.mrb[0].mxu1 %vm209_vm3, %v403_v6 }
 0x222   :  { %368 = vmatprep.mubr.msk.f32.mxu1 %vm413_vm2, %v412_v21 }
 0x224   :  { %v405_v7 = vpop.eup %404 }
 0x225   :  { %369 = vmatmul.mubr.msk.f32.gmra.mrb[2].mxu1 %vm209_vm3, %v405_v7 }
 0x2ef   :  { %v285_v9 = vpop.f32.mrb[6].mxu0 }
 0x2f0   :  { %v286_v10 = vadd.f32 %v316_v8, %v285_v9  ;;  %v364_v11 = vpop.f32.mrb[7].mxu0 }
 0x2f2   :  { %406 = vtanh.f32 %v286_v10 }
 0x2f4   :  { %v290_v12 = vpop.f32.mrb[0].mxu1 }
 0x2f5   :  { %v291_v13 = vadd.f32 %v316_v8, %v290_v12  ;;  %v367_v14 = vpop.f32.mrb[1].mxu1 }
 0x2f7   :  { %408 = vtanh.f32 %v291_v13 }
 0x2f8   :  { %v295_v15 = vpop.f32.mrb[2].mxu1 }
 0x2f9   :  { %v296_v16 = vadd.f32 %v316_v8, %v295_v15  ;;  %v370_v17 = vpop.f32.mrb[3].mxu1 }
 0x2fb   :  { %410 = vtanh.f32 %v296_v16 }
 0x2fc   :  { %v407_v18 = vpop.eup %406 }
 0x2fd   :  { %302 = vst.msk [vmem:[%s547_s7] sm:$0xff] %vm209_vm3, %v407_v18 }
 0x301   :  { %v409_v19 = vpop.eup %408 }
 0x302   :  { %303 = vst.msk [vmem:[%s547_s7 + $0x8] sm:$0xff] %vm209_vm3, %v409_v19 }
 0x305   :  { %v411_v20 = vpop.eup %410 }
 0x306   :  { %304 = vst.msk [vmem:[%s547_s7 + $0x10] sm:$0xff] %vm209_vm3, %v411_v20 }

// kernel: policy_forward.8
= control target key start
LH: loop header
LB: loop body
LE: loop exit
PB: predicated region body
PF: predicated region fallthrough
CT: control target
= control target key end

     0   :  { %vm58_vm0 = vcmask 523264   ;;  %v1165_v0 = vmov 0.0   ;;  %s1539_s0 = inlined_call_operand.<no memory space> [shape: s32[1], index: 0, kind: input, shape index: {}]   ;;  %s1540_s1 = inlined_call_operand.<no memory space> [shape: s32[1], index: 1, kind: input, shape index: {}]   ;;  %s1541_s2 = inlined_call_operand.vmem [shape: s32[1,48], index: 2, kind: input, shape index: {}]   ;;  %s1542_s3 = inlined_call_operand.vmem [shape: f32[48,128], index: 3, kind: input, shape index: {}]   ;;  %s1543_s4 = inlined_call_operand.vmem [shape: f32[16,64], index: 4, kind: input, shape index: {}]   ;;  %s1544_s5 = inlined_call_operand.vmem [shape: f32[128,64], index: 5, kind: input, shape index: {}]   ;;  %s1545_s6 = inlined_call_operand.vmem [shape: f32[1,64], index: 6, kind: input, shape index: {}]   ;;  %s1546_s7 = inlined_call_operand.vmem [shape: f32[1,64], index: 7, kind: input, shape index: {}]   ;;  %s1547_s8 = inlined_call_operand.vmem [shape: f32[1,64], index: 8, kind: input, shape index: {}]   ;;  %s1548_s9 = inlined_call_operand.vmem [shape: f32[64,64], index: 9, kind: input, shape index: {}]   ;;  %s1549_s10 = inlined_call_operand.vmem [shape: f32[1,64], index: 10, kind: input, shape index: {}]   ;;  %s1550_s11 = inlined_call_operand.vmem [shape: f32[1,64], index: 11, kind: input, shape index: {}]   ;;  %s1551_s12 = inlined_call_operand.vmem [shape: f32[1,64], index: 12, kind: input, shape index: {}]   ;;  %s1552_s13 = inlined_call_operand.vmem [shape: f32[128,64], index: 13, kind: input, shape index: {}]   ;;  %s1553_s14 = inlined_call_operand.vmem [shape: f32[1,64], index: 14, kind: input, shape index: {}]   ;;  %s1554_s15 = inlined_call_operand.vmem [shape: f32[64,64], index: 15, kind: input, shape index: {}]   ;;  %s1555_s16 = inlined_call_operand.vmem [shape: f32[1,64], index: 16, kind: input, shape index: {}]   ;;  %s1556_s17 = inlined_call_operand.vmem [shape: f32[16,64], index: 17, kind: output, shape index: {}]  }
   0x1   :  { %1557 = sst [smem:[#allocation6_spill]] %s1539_s0  ;;  %59 = vst.msk [vmem:[#allocation2] sm:$0xff] %vm58_vm0, %v1165_v0  ;;  %60 = vst.msk [vmem:[#allocation2 + $0x8] sm:$0xff] %vm58_vm0, %v1165_v0 }
   0x2   :  { %1558 = sst [smem:[#allocation7_spill]] %s1540_s1  ;;  %s1560_s29 = sld [smem:[#allocation6_spill]] }
   0x3   :  { %s1559_s26 = sld [smem:[#allocation7_spill]] }
   0x8   :  { %p66_p1 = scmp.lt.s32.totalorder %s1560_s29, 16 }
   0x9   :  { %p63_p0 = scmp.ge.s32.totalorder %s1559_s26, 0 }
   0xb   :  { %p67_p2 = pnand %p66_p1, %p63_p0 }
   0xc   :  { %v77_v1 = vld [vmem:[%s1544_s5] sm:$0xff] (!%p67_p2)  ;;  %v78_v2 = vld [vmem:[%s1544_s5 + $0x8] sm:$0xff] (!%p67_p2)  ;;  %v79_v3 = vld [vmem:[%s1544_s5 + $0x10] sm:$0xff] (!%p67_p2)  ;;  %vm454_vm1 = vcmask (!%p67_p2), 392192  }
   0xd   :  { %70 = sbr.rel (%p67_p2) target bundleno = 1026 (0x402), region = 69  ;;  %v1033_v4 = vpack.c.bf16 (!%p67_p2), %v78_v2, %v77_v1  ;;  %v80_v5 = vld [vmem:[%s1544_s5 + $0x18] sm:$0xff] (!%p67_p2)  ;;  %v81_v7 = vld [vmem:[%s1544_s5 + $0x20] sm:$0xff] (!%p67_p2)  ;;  %v82_v8 = vld [vmem:[%s1544_s5 + $0x28] sm:$0xff] (!%p67_p2) }
   0xe   :  { %v1037_v6 = vpack.c.bf16 (!%p67_p2), %v80_v5, %v79_v3  ;;  %v1041_v9 = vpack.c.bf16 (!%p67_p2), %v82_v8, %v81_v7  ;;  %v71_v10 = vld [vmem:[%s1542_s3] sm:$0xff] (!%p67_p2)  ;;  %v83_v11 = vld [vmem:[%s1544_s5 + $0x30] sm:$0xff] (!%p67_p2)  ;;  %v84_v12 = vld [vmem:[%s1544_s5 + $0x38] sm:$0xff] (!%p67_p2) }
   0xf   :  { %1034 = vmatprep.subr.bf16.mxu0 (!%p67_p2), %v1033_v4  ;;  %930 = vmatprep.mubr.f32.mxu0 (!%p67_p2), %v71_v10  ;;  %v1045_v13 = vpack.c.bf16 (!%p67_p2), %v84_v12, %v83_v11  ;;  %v85_v14 = vld [vmem:[%s1544_s5 + $0x40] sm:$0xff] (!%p67_p2)  ;;  %v86_v15 = vld [vmem:[%s1544_s5 + $0x48] sm:$0xff] (!%p67_p2)  ;;  %v87_v17 = vld [vmem:[%s1544_s5 + $0x50] sm:$0xff] (!%p67_p2) }
  0x10   :  { %1036 = vmatpush3.bf16.msra.mxu0 (!%p67_p2), %v1033_v4  ;;  %v1049_v16 = vpack.c.bf16 (!%p67_p2), %v86_v15, %v85_v14  ;;  %v88_v18 = vld [vmem:[%s1544_s5 + $0x58] sm:$0xff] (!%p67_p2)  ;;  %v89_v20 = vld [vmem:[%s1544_s5 + $0x60] sm:$0xff] (!%p67_p2)  ;;  %v90_v21 = vld [vmem:[%s1544_s5 + $0x68] sm:$0xff] (!%p67_p2) }
  0x11   :  { %1038 = vmatprep.subr.bf16.mxu0 (!%p67_p2), %v1037_v6  ;;  %v1053_v19 = vpack.c.bf16 (!%p67_p2), %v88_v18, %v87_v17  ;;  %v1057_v22 = vpack.c.bf16 (!%p67_p2), %v90_v21, %v89_v20  ;;  %v91_v23 = vld [vmem:[%s1544_s5 + $0x70] sm:$0xff] (!%p67_p2)  ;;  %v92_v24 = vld [vmem:[%s1544_s5 + $0x78] sm:$0xff] (!%p67_p2)  ;;  %v72_v26 = vld [vmem:[%s1542_s3 + $0x8] sm:$0xff] (!%p67_p2) }
  0x12   :  { %v1061_v25 = vpack.c.bf16 (!%p67_p2), %v92_v24, %v91_v23  ;;  %v73_v27 = vld [vmem:[%s1542_s3 + $0x10] sm:$0xff] (!%p67_p2)  ;;  %v74_v28 = vld [vmem:[%s1542_s3 + $0x18] sm:$0xff] (!%p67_p2)  ;;  %v75_v29 = vld [vmem:[%s1542_s3 + $0x20] sm:$0xff] (!%p67_p2) }
  0x13   :  { %v76_v30 = vld [vmem:[%s1542_s3 + $0x28] sm:$0xff] (!%p67_p2)  ;;  %v805_v31 = vld [vmem:[%s1545_s6] ss:$0 sm:$0xff] (!%p67_p2)  ;;  %v310_v20 = vld [vmem:[%s1548_s9 + $0x18] sm:$0xff] (!%p67_p2) }
  0x14   :  { %1040 = vmatpush3.bf16.msra.mxu0 %v1037_v6  ;;  %v308_v17 = vld [vmem:[%s1548_s9 + $0x8] sm:$0xff]  ;;  %v313_v24 = vld [vmem:[%s1548_s9 + $0x30] sm:$0xff] }
  0x15   :  { %1042 = vmatprep.subr.bf16.mxu0 %v1041_v9  ;;  %v312_v23 = vld [vmem:[%s1548_s9 + $0x28] sm:$0xff] }
  0x18   :  { %1044 = vmatpush3.bf16.msra.mxu0 %v1041_v9 }
  0x19   :  { %1046 = vmatprep.subr.bf16.mxu0 %v1045_v13 }
  0x1c   :  { %1048 = vmatpush3.bf16.msra.mxu0 %v1045_v13 }
  0x1d   :  { %1050 = vmatprep.subr.bf16.mxu0 %v1049_v16 }
  0x20   :  { %1052 = vmatpush3.bf16.msra.mxu0 %v1049_v16  ;;  %v307_v16 = vld [vmem:[%s1548_s9] sm:$0xff] }
  0x21   :  { %1054 = vmatprep.subr.bf16.mxu0 %v1053_v19  ;;  %v1065_v18 = vpack.c.bf16 %v308_v17, %v307_v16 }
  0x23   :  { %1066 = vmatprep.subr.bf16.mxu1 %v1065_v18 }
  0x24   :  { %1056 = vmatpush3.bf16.msra.mxu0 %v1053_v19  ;;  %1068 = vmatpush3.bf16.msra.mxu1 %v1065_v18  ;;  %v309_v19 = vld [vmem:[%s1548_s9 + $0x10] sm:$0xff]  ;;  %v1166_v18 = vmov 0.0  }
  0x25   :  { %1058 = vmatprep.subr.bf16.mxu0 %v1057_v22  ;;  %v1069_v21 = vpack.c.bf16 %v310_v20, %v309_v19 }
  0x27   :  { %1070 = vmatprep.subr.bf16.mxu1 %v1069_v21 }
  0x28   :  { %1060 = vmatpush3.bf16.msra.mxu0 %v1057_v22  ;;  %v311_v22 = vld [vmem:[%s1548_s9 + $0x20] sm:$0xff]  ;;  %1072 = vmatpush3.bf16.msra.mxu1 %v1069_v21 }
  0x29   :  { %1062 = vmatprep.subr.bf16.mxu0 %v1061_v25  ;;  %v808_v21 = vld [vmem:[%s1549_s10] ss:$0 sm:$0xff] }
  0x2c   :  { %1064 = vmatpush3.bf16.msra.mxu0 %v1061_v25  ;;  %v1073_v25 = vpack.c.bf16 %v312_v23, %v311_v22 }
  0x2e   :  { %1074 = vmatprep.subr.bf16.mxu1 %v1073_v25 }
  0x2f   :  { %931 = vmatmul.mubr.f32.vlgmr.msra.gmra.mrb[0].mxu0 %v72_v26  ;;  %v314_v26 = vld [vmem:[%s1548_s9 + $0x38] sm:$0xff]  ;;  %1076 = vmatpush3.bf16.msra.mxu1 %v1073_v25 }
  0x30   :  { %933 = vmatprep.mubr.f32.mxu0 %v73_v27  ;;  %v1077_v27 = vpack.c.bf16 %v314_v26, %v313_v24 }
  0x32   :  { %1078 = vmatprep.subr.bf16.mxu1 %v1077_v27 }
  0x33   :  { %934 = vmatmul.mubr.f32.gmra.mrb[2].mxu0 %v74_v28  ;;  %1080 = vmatpush3.bf16.msra.mxu1 %v1077_v27 }
  0x34   :  { %936 = vmatprep.mubr.f32.mxu0 %v75_v29 }
  0x37   :  { %937 = vmatmul.mubr.f32.gmra.mrb[4].mxu0 %v76_v30 }
 0x102   :  { %v932_v32 = vpop.f32.mrb[0].mxu0 }
 0x103   :  { %v166_v33 = vpop.f32.mrb[1].mxu0  ;;  %v172_v35 = vadd.f32 %v932_v32, %v805_v31 }
 0x104   :  { %v167_v34 = vadd.f32 %v805_v31, %v166_v33 }
 0x105   :  { %v201_v43 = vsel %vm58_vm0, %v172_v35, 0.0 }
 0x106   :  { %v935_v36 = vpop.f32.mrb[2].mxu0  ;;  %v198_v37 = vsel %vm58_vm0, %v167_v34, 0.0 }
 0x107   :  { %v176_v38 = vpop.f32.mrb[3].mxu0  ;;  %199 = vadd.xlane.f32.xlu0 %v198_v37  ;;  %v182_v40 = vadd.f32 %v935_v36, %v805_v31 }
 0x108   :  { %v177_v39 = vadd.f32 %v805_v31, %v176_v38 }
 0x109   :  { %v207_v47 = vsel %vm58_vm0, %v182_v40, 0.0 }
 0x10a   :  { %v938_v41 = vpop.f32.mrb[4].mxu0  ;;  %v204_v42 = vsel %vm58_vm0, %v177_v39, 0.0 }
 0x10b   :  { %v186_v44 = vpop.f32.mrb[5].mxu0  ;;  %205 = vadd.xlane.f32.xlu1 %v204_v42  ;;  %202 = vadd.xlane.f32.xlu0 %v201_v43  ;;  %v192_v46 = vadd.f32 %v938_v41, %v805_v31 }
 0x10c   :  { %v187_v45 = vadd.f32 %v805_v31, %v186_v44 }
 0x10d   :  { %v213_v49 = vsel %vm58_vm0, %v192_v46, 0.0 }
 0x10e   :  { %v210_v48 = vsel %vm58_vm0, %v187_v45, 0.0 }
 0x10f   :  { %208 = vadd.xlane.f32.xlu1 %v207_v47  ;;  %211 = vadd.xlane.f32.xlu0 %v210_v48  ;;  %v806_v47 = vld [vmem:[%s1546_s7] ss:$0 sm:$0xff] }
 0x113   :  { %214 = vadd.xlane.f32.xlu1 %v213_v49  ;;  %v807_v49 = vld [vmem:[%s1547_s8] ss:$0 sm:$0xff] }
 0x194   :  { %v200_v50 = vpop.xlane.xlu0 %199 }
 0x195   :  { %v217_v51 = vmul.f32 0.015625, %v200_v50 }
 0x197   :  { %v1341_v52 = vsub.f32 %v167_v34, %v217_v51 }
 0x198   :  { %v206_v53 = vpop.xlane.xlu1 %205  ;;  %v203_v54 = vpop.xlane.xlu0 %202 }
 0x199   :  { %v219_v55 = vmul.f32 0.015625, %v206_v53  ;;  %v218_v56 = vmul.f32 0.015625, %v203_v54  ;;  %v229_v57 = vmul.f32 %v1341_v52, %v1341_v52 }
 0x19b   :  { %v1345_v58 = vsub.f32 %v177_v39, %v219_v55  ;;  %v1347_v59 = vsub.f32 %v172_v35, %v218_v56  ;;  %v235_v60 = vsel %vm58_vm0, %v229_v57, 0.0 }
 0x19c   :  { %v209_v61 = vpop.xlane.xlu1 %208  ;;  %236 = vadd.xlane.f32.xlu0 %v235_v60  ;;  %v212_v62 = vpop.xlane.xlu0 %211 }
 0x19d   :  { %v220_v63 = vmul.f32 0.015625, %v209_v61  ;;  %v221_v0 = vmul.f32 0.015625, %v212_v62  ;;  %v231_v1 = vmul.f32 %v1345_v58, %v1345_v58  ;;  %v230_v2 = vmul.f32 %v1347_v59, %v1347_v59 }
 0x19f   :  { %v1354_v3 = vsub.f32 %v182_v40, %v220_v63  ;;  %v1356_v4 = vsub.f32 %v187_v45, %v221_v0  ;;  %v241_v5 = vsel %vm58_vm0, %v231_v1, 0.0  ;;  %v238_v6 = vsel %vm58_vm0, %v230_v2, 0.0 }
 0x1a0   :  { %v215_v7 = vpop.xlane.xlu1 %214  ;;  %242 = vadd.xlane.f32.xlu0 %v241_v5  ;;  %239 = vadd.xlane.f32.xlu1 %v238_v6 }
 0x1a1   :  { %v222_v8 = vmul.f32 0.015625, %v215_v7  ;;  %v232_v9 = vmul.f32 %v1354_v3, %v1354_v3  ;;  %v233_v10 = vmul.f32 %v1356_v4, %v1356_v4 }
 0x1a3   :  { %v1364_v11 = vsub.f32 %v192_v46, %v222_v8  ;;  %v244_v12 = vsel %vm58_vm0, %v232_v9, 0.0  ;;  %v247_v13 = vsel %vm58_vm0, %v233_v10, 0.0 }
 0x1a4   :  { %245 = vadd.xlane.f32.xlu1 %v244_v12  ;;  %248 = vadd.xlane.f32.xlu0 %v247_v13 }
 0x1a5   :  { %v234_v14 = vmul.f32 %v1364_v11, %v1364_v11 }
 0x1a7   :  { %v250_v15 = vsel %vm58_vm0, %v234_v14, 0.0 }
 0x1a8   :  { %251 = vadd.xlane.f32.xlu1 %v250_v15  ;;  %v435_v15 = vlaneseq }
 0x1aa   :  { %v436_v16 = vshrl.u32 %v435_v15, 7 }
 0x1ac   :  { %v437_v17 = vadd.s32 8, %v436_v16 }
 0x229   :  { %v237_v28 = vpop.xlane.xlu0 %236 }
 0x22a   :  { %v253_v29 = vmul.f32 0.015625, %v237_v28 }
 0x22c   :  { %v259_v30 = vadd.f32 1e-05, %v253_v29 }
 0x22d   :  { %v240_v31 = vpop.xlane.xlu1 %239  ;;  %v243_v32 = vpop.xlane.xlu0 %242 }
 0x22e   :  { %1144 = vrsqrt.f32 %v259_v30  ;;  %v254_v33 = vmul.f32 0.015625, %v240_v31  ;;  %v255_v34 = vmul.f32 0.015625, %v243_v32 }
 0x230   :  { %v260_v35 = vadd.f32 1e-05, %v254_v33  ;;  %v261_v36 = vadd.f32 1e-05, %v255_v34 }
 0x231   :  { %v246_v37 = vpop.xlane.xlu1 %245  ;;  %v249_v38 = vpop.xlane.xlu0 %248 }
 0x232   :  { %1146 = vrsqrt.f32 %v260_v35  ;;  %v256_v39 = vmul.f32 0.015625, %v246_v37  ;;  %v257_v40 = vmul.f32 0.015625, %v249_v38  ;;  %v453_v37 = vld [vmem:[#allocation2 + $0x8] sm:$0xff]  ;;  %v452_v38 = vld [vmem:[#allocation2] sm:$0xff] }
 0x233   :  { %1148 = vrsqrt.f32 %v261_v36 }
 0x234   :  { %v262_v41 = vadd.f32 1e-05, %v256_v39  ;;  %v263_v42 = vadd.f32 1e-05, %v257_v40 }
 0x235   :  { %v252_v43 = vpop.xlane.xlu1 %251 }
 0x236   :  { %1150 = vrsqrt.f32 %v262_v41  ;;  %v258_v44 = vmul.f32 0.015625, %v252_v43 }
 0x237   :  { %1152 = vrsqrt.f32 %v263_v42 }
 0x238   :  { %v1145_v45 = vpop.eup %1144  ;;  %v264_v46 = vadd.f32 1e-05, %v258_v44 }
 0x239   :  { %v271_v48 = vmul.f32 %v1145_v45, %v1341_v52 }
 0x23a   :  { %1154 = vrsqrt.f32 %v264_v46 }
 0x23b   :  { %v283_v50 = vmul.f32 %v806_v47, %v271_v48 }
 0x23c   :  { %v1147_v51 = vpop.eup %1146 }
 0x23d   :  { %v1149_v53 = vpop.eup %1148  ;;  %v295_v54 = vadd.f32 %v807_v49, %v283_v50  ;;  %v272_v55 = vmul.f32 %v1147_v51, %v1347_v59 }
 0x23e   :  { %v273_v56 = vmul.f32 %v1149_v53, %v1345_v58 }
 0x23f   :  { %v301_v57 = vmax.f32 %v295_v54, 0.0  ;;  %v284_v60 = vmul.f32 %v806_v47, %v272_v55 }
 0x240   :  { %v1151_v61 = vpop.eup %1150  ;;  %v285_v62 = vmul.f32 %v806_v47, %v273_v56 }
 0x241   :  { %v1153_v63 = vpop.eup %1152  ;;  %955 = vmatprep.mubr.msk.f32.mxu1 %vm58_vm0, %v301_v57  ;;  %v296_v52 = vadd.f32 %v807_v49, %v284_v60  ;;  %v274_v0 = vmul.f32 %v1151_v61, %v1354_v3 }
 0x242   :  { %v297_v1 = vadd.f32 %v807_v49, %v285_v62  ;;  %v275_v2 = vmul.f32 %v1153_v63, %v1356_v4 }
 0x243   :  { %v302_v5 = vmax.f32 %v296_v52, 0.0  ;;  %v286_v6 = vmul.f32 %v806_v47, %v274_v0 }
 0x244   :  { %v1155_v7 = vpop.eup %1154  ;;  %v303_v8 = vmax.f32 %v297_v1, 0.0  ;;  %v287_v59 = vmul.f32 %v806_v47, %v275_v2 }
 0x245   :  { %956 = vmatmul.mubr.msk.f32.vlgmr.msra.gmra.mrb[0].mxu1 %vm58_vm0, %v302_v5  ;;  %v298_v58 = vadd.f32 %v807_v49, %v286_v6  ;;  %v276_v9 = vmul.f32 %v1155_v7, %v1364_v11  ;;  %v815_v11 = vld [vmem:[%s1541_s2] ss:$0 sm:$0xff] }
 0x246   :  { %958 = vmatprep.mubr.msk.f32.mxu1 %vm58_vm0, %v303_v8  ;;  %v299_v10 = vadd.f32 %v807_v49, %v287_v59  ;;  %vm446_vm2 = vcmp.eq.s32.totalorder %v436_v16, %v815_v11  ;;  %vm447_vm3 = vcmp.eq.s32.totalorder %v437_v17, %v815_v11 }
 0x247   :  { %v304_v12 = vmax.f32 %v298_v58, 0.0  ;;  %v288_v13 = vmul.f32 %v806_v47, %v276_v9  ;;  %v816_v19 = vsel %vm446_vm2, 1.0, %v1166_v18  ;;  %v817_v20 = vsel %vm447_vm3, 1.0, %v1166_v18 }
 0x248   :  { %v305_v14 = vmax.f32 %v299_v10, 0.0 }
 0x249   :  { %959 = vmatmul.mubr.msk.f32.gmra.mrb[2].mxu1 %vm58_vm0, %v304_v12  ;;  %v300_v3 = vadd.f32 %v807_v49, %v288_v13 }
 0x24a   :  { %961 = vmatprep.mubr.msk.f32.mxu1 %vm58_vm0, %v305_v14 }
 0x24b   :  { %v306_v4 = vmax.f32 %v300_v3, 0.0 }
 0x24d   :  { %962 = vmatmul.mubr.msk.f32.gmra.mrb[4].mxu1 %vm58_vm0, %v306_v4 }
 0x24e   :  { %976 = vmatprep.mubr.msk.f32.mxu1 %vm454_vm1, %v816_v19 }
 0x318   :  { %v957_v22 = vpop.f32.mrb[0].mxu1 }
 0x319   :  { %v412_v23 = vadd.f32 %v957_v22, %v808_v21  ;;  %v406_v24 = vpop.f32.mrb[1].mxu1 }
 0x31a   :  { %v407_v25 = vadd.f32 %v808_v21, %v406_v24 }
 0x31c   :  { %v1081_v26 = vpack.c.bf16 %v412_v23, %v407_v25  ;;  %v960_v27 = vpop.f32.mrb[2].mxu1 }
 0x31d   :  { %v422_v28 = vadd.f32 %v960_v27, %v808_v21  ;;  %v416_v29 = vpop.f32.mrb[3].mxu1 }
 0x31e   :  { %v417_v30 = vadd.f32 %v808_v21, %v416_v29  ;;  %1082 = vmatprep.subr.bf16.mxu1 %v1081_v26 }
 0x31f   :  { %1084 = vmatpush3.bf16.msra.mxu1 %v1081_v26 }
 0x320   :  { %v1085_v31 = vpack.c.bf16 %v422_v28, %v417_v30  ;;  %v963_v32 = vpop.f32.mrb[4].mxu1 }
 0x321   :  { %v432_v33 = vadd.f32 %v963_v32, %v808_v21  ;;  %v426_v34 = vpop.f32.mrb[5].mxu1 }
 0x322   :  { %v427_v35 = vadd.f32 %v808_v21, %v426_v34  ;;  %1086 = vmatprep.subr.bf16.mxu1 %v1085_v31 }
 0x323   :  { %1088 = vmatpush3.bf16.msra.mxu1 %v1085_v31 }
 0x324   :  { %v1089_v36 = vpack.c.bf16 %v432_v33, %v427_v35 }
 0x326   :  { %1090 = vmatprep.subr.bf16.mxu1 %v1089_v36 }
 0x327   :  { %1092 = vmatpush3.bf16.msra.mxu1 %v1089_v36 }
 0x32a   :  { %977 = vmatmul.mubr.msk.f32.vlgmr.msra.gmra.mrb[6].mxu1 %vm454_vm1, %v817_v20 }
 0x3fd   :  { %v978_v39 = vpop.f32.mrb[6].mxu1 }
 0x3fe   :  { %v537_v40 = vadd.f32 %v978_v39, %v453_v37  ;;  %v527_v41 = vpop.f32.mrb[7].mxu1 }
 0x3ff   :  { %v536_v42 = vadd.f32 %v527_v41, %v452_v38 }
 0x400   :  { %539 = vst.msk [vmem:[#allocation2 + $0x8] sm:$0xff] %vm58_vm0, %v537_v40 }
 0x401   :  { %538 = vst.msk [vmem:[#allocation2] sm:$0xff] %vm58_vm0, %v536_v42 }
 0x402 PF:  { %v545_v47 = vld [vmem:[%s1543_s4] sm:$0xff]  ;;  %v546_v48 = vld [vmem:[%s1543_s4 + $0x8] sm:$0xff]  ;;  %v551_v53 = vld [vmem:[%s1552_s13 + $0x10] sm:$0xff]  ;;  %s1167_s4 = smov 64  }
 0x403   :  { %v549_v49 = vld [vmem:[%s1552_s13] sm:$0xff]  ;;  %v1156_v50 = vpack.i.bf16 %v546_v48, %v545_v47  ;;  %v550_v51 = vld [vmem:[%s1552_s13 + $0x8] sm:$0xff]  ;;  %v552_v54 = vld [vmem:[%s1552_s13 + $0x18] sm:$0xff] }
 0x404   :  { %v1093_v55 = vpack.c.bf16 %v550_v51, %v549_v49  ;;  %v1097_v56 = vpack.c.bf16 %v552_v54, %v551_v53  ;;  %v553_v6 = vld [vmem:[%s1552_s13 + $0x20] sm:$0xff]  ;;  %v554_v7 = vld [vmem:[%s1552_s13 + $0x28] sm:$0xff]  ;;  %v555_v59 = vld [vmem:[%s1552_s13 + $0x30] sm:$0xff] }
 0x405   :  { %v1101_v8 = vpack.c.bf16 %v554_v7, %v553_v6  ;;  %v556_v58 = vld [vmem:[%s1552_s13 + $0x38] sm:$0xff]  ;;  %v557_v10 = vld [vmem:[%s1552_s13 + $0x40] sm:$0xff]  ;;  %v558_v12 = vld [vmem:[%s1552_s13 + $0x48] sm:$0xff] }
 0x406   :  { %1094 = vmatprep.subr.bf16.mxu0 %v1093_v55  ;;  %v1105_v9 = vpack.c.bf16 %v556_v58, %v555_v59  ;;  %v1109_v13 = vpack.c.bf16 %v558_v12, %v557_v10  ;;  %v559_v14 = vld [vmem:[%s1552_s13 + $0x50] sm:$0xff]  ;;  %v560_v3 = vld [vmem:[%s1552_s13 + $0x58] sm:$0xff]  ;;  %v561_v15 = vld [vmem:[%s1552_s13 + $0x60] sm:$0xff] }
 0x407   :  { %v544_v44 = vld [vmem:[#allocation2 + $0x8] sm:$0xff]  ;;  %1096 = vmatpush3.bf16.msra.mxu0 %v1093_v55  ;;  %v1113_v4 = vpack.c.bf16 %v560_v3, %v559_v14  ;;  %v563_v11 = vld [vmem:[%s1552_s13 + $0x70] sm:$0xff]  ;;  %v564_v18 = vld [vmem:[%s1552_s13 + $0x78] sm:$0xff] }
 0x408   :  { %v543_v43 = vld [vmem:[#allocation2] sm:$0xff]  ;;  %v579_v46 = vsel %vm58_vm0, %v544_v44, 0.0  ;;  %1098 = vmatprep.subr.bf16.mxu0 %v1097_v56  ;;  %v562_v16 = vld [vmem:[%s1552_s13 + $0x68] sm:$0xff]  ;;  %v1121_v19 = vpack.c.bf16 %v564_v18, %v563_v11  ;;  %v568_v22 = vld [vmem:[%s1554_s15 + $0x10] sm:$0xff] }
 0x409   :  { %v576_v45 = vsel %vm58_vm0, %v543_v43, 0.0  ;;  %v1117_v17 = vpack.c.bf16 %v562_v16, %v561_v15  ;;  %v566_v20 = vld [vmem:[%s1554_s15] sm:$0xff]  ;;  %v567_v21 = vld [vmem:[%s1554_s15 + $0x8] sm:$0xff]  ;;  %v569_v24 = vld [vmem:[%s1554_s15 + $0x18] sm:$0xff] }
 0x40a   :  { %577 = vadd.xlane.f32.xlu0 %v576_v45  ;;  %v1125_v23 = vpack.c.bf16 %v567_v21, %v566_v20  ;;  %v1129_v25 = vpack.c.bf16 %v569_v24, %v568_v22  ;;  %v570_v26 = vld [vmem:[%s1554_s15 + $0x20] sm:$0xff]  ;;  %v571_v27 = vld [vmem:[%s1554_s15 + $0x28] sm:$0xff]  ;;  %v573_v51 = vld [vmem:[%s1554_s15 + $0x38] sm:$0xff] }
 0x40b   :  { %1100 = vmatpush3.bf16.msra.mxu0 %v1097_v56  ;;  %v1133_v28 = vpack.c.bf16 %v571_v27, %v570_v26  ;;  %v820_v37 = vld [vmem:[%s1550_s11] ss:$0 sm:$0xff] }
 0x40c   :  { %1102 = vmatprep.subr.bf16.mxu0 %v1101_v8  ;;  %1126 = vmatprep.subr.bf16.mxu1 %v1125_v23  ;;  %v821_v39 = vld [vmem:[%s1551_s12] ss:$0 sm:$0xff] }
 0x40d   :  { %1128 = vmatpush3.bf16.msra.mxu1 %v1125_v23  ;;  %v822_v54 = vld [vmem:[%s1553_s14] ss:$0 sm:$0xff] }
 0x40e   :  { %580 = vadd.xlane.f32.xlu0 %v579_v46  ;;  %1130 = vmatprep.subr.bf16.mxu1 %v1129_v25 }
 0x40f   :  { %1104 = vmatpush3.bf16.msra.mxu0 %v1101_v8 }
 0x410   :  { %1106 = vmatprep.subr.bf16.mxu0 %v1105_v9 }
 0x411   :  { %1132 = vmatpush3.bf16.msra.mxu1 %v1129_v25 }
 0x412   :  { %1134 = vmatprep.subr.bf16.mxu1 %v1133_v28 }
 0x413   :  { %1108 = vmatpush3.bf16.msra.mxu0 %v1105_v9 }
 0x414   :  { %1110 = vmatprep.subr.bf16.mxu0 %v1109_v13 }
 0x415   :  { %1136 = vmatpush3.bf16.msra.mxu1 %v1133_v28 }
 0x417   :  { %1112 = vmatpush3.bf16.msra.mxu0 %v1109_v13 }
 0x418   :  { %1114 = vmatprep.subr.bf16.mxu0 %v1113_v4 }
 0x41b   :  { %1116 = vmatpush3.bf16.msra.mxu0 %v1113_v4 }
 0x41c   :  { %1118 = vmatprep.subr.bf16.mxu0 %v1117_v17 }
 0x41f   :  { %1120 = vmatpush3.bf16.msra.mxu0 %v1117_v17 }
 0x420   :  { %1122 = vmatprep.subr.bf16.mxu0 %v1121_v19 }
 0x423   :  { %1124 = vmatpush3.bf16.msra.mxu0 %v1121_v19 }
 0x424   :  { %1157 = vrot.lane.b32.xlu0 %v1156_v50, %s1167_s4  ;;  %v572_v50 = vld [vmem:[%s1554_s15 + $0x30] sm:$0xff] }
 0x425   :  { %v1137_v53 = vpack.c.bf16 %v573_v51, %v572_v50 }
 0x427   :  { %1138 = vmatprep.subr.bf16.mxu1 %v1137_v53 }
 0x428   :  { %1140 = vmatpush3.bf16.msra.mxu1 %v1137_v53 }
 0x497   :  { %v578_v57 = vpop.xlane.xlu0 %577 }
 0x498   :  { %v583_v60 = vmul.f32 0.015625, %v578_v57 }
 0x49a   :  { %v1443_v61 = vsub.f32 %v543_v43, %v583_v60 }
 0x49b   :  { %v581_v62 = vpop.xlane.xlu0 %580 }
 0x49c   :  { %v584_v63 = vmul.f32 0.015625, %v581_v62  ;;  %v587_v52 = vmul.f32 %v1443_v61, %v1443_v61 }
 0x49e   :  { %v1447_v0 = vsub.f32 %v544_v44, %v584_v63  ;;  %v589_v1 = vsel %vm58_vm0, %v587_v52, 0.0  ;;  %v823_v63 = vld [vmem:[%s1555_s16] ss:$0 sm:$0xff] }
 0x49f   :  { %590 = vadd.xlane.f32.xlu1 %v589_v1  ;;  %v1158_v36 = vpop.permute.xlu0 %1157 }
 0x4a0   :  { %v588_v2 = vmul.f32 %v1447_v0, %v1447_v0  ;;  %v1159_v40 = vunpack.i.l.bf16 %v1158_v36  ;;  %v1160_v45 = vunpack.i.h.bf16 %v1158_v36 }
 0x4a2   :  { %v592_v5 = vsel %vm58_vm0, %v588_v2, 0.0 }
 0x4a3   :  { %593 = vadd.xlane.f32.xlu1 %v592_v5 }
 0x52c   :  { %v591_v29 = vpop.xlane.xlu1 %590 }
 0x52d   :  { %v595_v30 = vmul.f32 0.015625, %v591_v29 }
 0x52f   :  { %v597_v31 = vadd.f32 1e-05, %v595_v30 }
 0x530   :  { %v594_v32 = vpop.xlane.xlu1 %593 }
 0x531   :  { %1161 = vrsqrt.f32 %v597_v31  ;;  %v596_v33 = vmul.f32 0.015625, %v594_v32 }
 0x533   :  { %v598_v34 = vadd.f32 1e-05, %v596_v33 }
 0x535   :  { %1163 = vrsqrt.f32 %v598_v34 }
 0x53b   :  { %v1162_v35 = vpop.eup %1161 }
 0x53c   :  { %v601_v38 = vmul.f32 %v1162_v35, %v1443_v61 }
 0x53e   :  { %v609_v41 = vmul.f32 %v820_v37, %v601_v38 }
 0x53f   :  { %v1164_v42 = vpop.eup %1163 }
 0x540   :  { %v617_v43 = vadd.f32 %v821_v39, %v609_v41  ;;  %v602_v44 = vmul.f32 %v1164_v42, %v1447_v0 }
 0x542   :  { %v627_v46 = vsel %vm58_vm0, %v617_v43, %v1159_v40  ;;  %v610_v47 = vmul.f32 %v820_v37, %v602_v44 }
 0x543   :  { %1011 = vmatprep.mubr.f32.mxu0 %v627_v46 }
 0x544   :  { %v618_v48 = vadd.f32 %v821_v39, %v610_v47 }
 0x546   :  { %v628_v49 = vsel %vm58_vm0, %v618_v48, %v1160_v45 }
 0x547   :  { %1012 = vmatmul.mubr.f32.vlgmr.msra.gmra.mrb[0].mxu0 %v628_v49 }
 0x61a   :  { %v1013_v55 = vpop.f32.mrb[0].mxu0 }
 0x61b   :  { %v707_v56 = vadd.f32 %v1013_v55, %v822_v54  ;;  %v701_v57 = vpop.f32.mrb[1].mxu0 }
 0x61c   :  { %v702_v60 = vadd.f32 %v822_v54, %v701_v57 }
 0x61d   :  { %v711_v62 = vmax.f32 %v707_v56, 0.0 }
 0x61e   :  { %v710_v61 = vmax.f32 %v702_v60, 0.0 }
 0x620   :  { %1030 = vmatprep.mubr.msk.f32.mxu1 %vm58_vm0, %v710_v61 }
 0x621   :  { %1031 = vmatmul.mubr.msk.f32.vlgmr.msra.gmra.mrb[0].mxu1 %vm58_vm0, %v711_v62 }
 0x6f4   :  { %v1032_v52 = vpop.f32.mrb[0].mxu1 }
 0x6f5   :  { %v796_v0 = vadd.f32 %v1032_v52, %v823_v63  ;;  %v790_v1 = vpop.f32.mrb[1].mxu1 }
 0x6f6   :  { %v791_v2 = vadd.f32 %v823_v63, %v790_v1 }
 0x6f7   :  { %800 = vst.msk [vmem:[%s1556_s17 + $0x8] sm:$0xff] %vm58_vm0, %v796_v0 }
 0x6f8   :  { %799 = vst.msk [vmem:[%s1556_s17] sm:$0xff] %vm58_vm0, %v791_v2 }

// kernel: policy_forward.9
= control target key start
LH: loop header
LB: loop body
LE: loop exit
PB: predicated region body
PF: predicated region fallthrough
CT: control target
= control target key end

     0   :  { %vm58_vm0 = vcmask 523264   ;;  %v1229_v0 = vmov 0.0   ;;  %s1655_s0 = inlined_call_operand.<no memory space> [shape: s32[1], index: 0, kind: input, shape index: {}]   ;;  %s1656_s1 = inlined_call_operand.<no memory space> [shape: s32[1], index: 1, kind: input, shape index: {}]   ;;  %s1657_s2 = inlined_call_operand.vmem [shape: s32[1,48], index: 2, kind: input, shape index: {}]   ;;  %s1658_s3 = inlined_call_operand.vmem [shape: f32[48,128], index: 3, kind: input, shape index: {}]   ;;  %s1659_s4 = inlined_call_operand.vmem [shape: f32[24,64], index: 4, kind: input, shape index: {}]   ;;  %s1660_s5 = inlined_call_operand.vmem [shape: f32[128,64], index: 5, kind: input, shape index: {}]   ;;  %s1661_s6 = inlined_call_operand.vmem [shape: f32[1,64], index: 6, kind: input, shape index: {}]   ;;  %s1662_s7 = inlined_call_operand.vmem [shape: f32[1,64], index: 7, kind: input, shape index: {}]   ;;  %s1663_s8 = inlined_call_operand.vmem [shape: f32[1,64], index: 8, kind: input, shape index: {}]   ;;  %s1664_s9 = inlined_call_operand.vmem [shape: f32[64,64], index: 9, kind: input, shape index: {}]   ;;  %s1665_s10 = inlined_call_operand.vmem [shape: f32[1,64], index: 10, kind: input, shape index: {}]   ;;  %s1666_s11 = inlined_call_operand.vmem [shape: f32[1,64], index: 11, kind: input, shape index: {}]   ;;  %s1667_s12 = inlined_call_operand.vmem [shape: f32[1,64], index: 12, kind: input, shape index: {}]   ;;  %s1668_s13 = inlined_call_operand.vmem [shape: f32[128,64], index: 13, kind: input, shape index: {}]   ;;  %s1669_s14 = inlined_call_operand.vmem [shape: f32[1,64], index: 14, kind: input, shape index: {}]   ;;  %s1670_s15 = inlined_call_operand.vmem [shape: f32[64,64], index: 15, kind: input, shape index: {}]   ;;  %s1671_s16 = inlined_call_operand.vmem [shape: f32[1,64], index: 16, kind: input, shape index: {}]   ;;  %s1672_s17 = inlined_call_operand.vmem [shape: f32[24,64], index: 17, kind: output, shape index: {}]  }
   0x1   :  { %1673 = sst [smem:[#allocation6_spill]] %s1655_s0  ;;  %59 = vst.msk [vmem:[#allocation2] sm:$0xff] %vm58_vm0, %v1229_v0  ;;  %60 = vst.msk [vmem:[#allocation2 + $0x8] sm:$0xff] %vm58_vm0, %v1229_v0 }
   0x2   :  { %1674 = sst [smem:[#allocation7_spill]] %s1656_s1  ;;  %61 = vst.msk [vmem:[#allocation2 + $0x10] sm:$0xff] %vm58_vm0, %v1229_v0  ;;  %s1676_s29 = sld [smem:[#allocation6_spill]] }
   0x3   :  { %s1675_s26 = sld [smem:[#allocation7_spill]] }
   0x8   :  { %p67_p1 = scmp.lt.s32.totalorder %s1676_s29, 24 }
   0x9   :  { %p64_p0 = scmp.ge.s32.totalorder %s1675_s26, 0 }
   0xb   :  { %p68_p2 = pnand %p67_p1, %p64_p0 }
   0xc   :  { %v78_v1 = vld [vmem:[%s1660_s5] sm:$0xff] (!%p68_p2)  ;;  %v79_v2 = vld [vmem:[%s1660_s5 + $0x8] sm:$0xff] (!%p68_p2)  ;;  %v80_v3 = vld [vmem:[%s1660_s5 + $0x10] sm:$0xff] (!%p68_p2)  ;;  %vm1231_vm1 = vmmov (!%p68_p2), 0   ;;  %vm461_vm3 = vcmask (!%p68_p2), 392192  }
   0xd   :  { %71 = sbr.rel (%p68_p2) target bundleno = 1032 (0x408), region = 69  ;;  %v1111_v4 = vpack.c.bf16 (!%p68_p2), %v79_v2, %v78_v1  ;;  %v81_v5 = vld [vmem:[%s1660_s5 + $0x18] sm:$0xff] (!%p68_p2)  ;;  %v82_v7 = vld [vmem:[%s1660_s5 + $0x20] sm:$0xff] (!%p68_p2)  ;;  %v83_v8 = vld [vmem:[%s1660_s5 + $0x28] sm:$0xff] (!%p68_p2) }
   0xe   :  { %v1115_v6 = vpack.c.bf16 (!%p68_p2), %v81_v5, %v80_v3  ;;  %v1119_v9 = vpack.c.bf16 (!%p68_p2), %v83_v8, %v82_v7  ;;  %v72_v10 = vld [vmem:[%s1658_s3] sm:$0xff] (!%p68_p2)  ;;  %v84_v11 = vld [vmem:[%s1660_s5 + $0x30] sm:$0xff] (!%p68_p2)  ;;  %v85_v12 = vld [vmem:[%s1660_s5 + $0x38] sm:$0xff] (!%p68_p2) }
   0xf   :  { %1112 = vmatprep.subr.bf16.mxu0 (!%p68_p2), %v1111_v4  ;;  %990 = vmatprep.mubr.f32.mxu0 (!%p68_p2), %v72_v10  ;;  %v1123_v13 = vpack.c.bf16 (!%p68_p2), %v85_v12, %v84_v11  ;;  %v86_v14 = vld [vmem:[%s1660_s5 + $0x40] sm:$0xff] (!%p68_p2)  ;;  %v87_v15 = vld [vmem:[%s1660_s5 + $0x48] sm:$0xff] (!%p68_p2)  ;;  %v88_v17 = vld [vmem:[%s1660_s5 + $0x50] sm:$0xff] (!%p68_p2) }
  0x10   :  { %1114 = vmatpush3.bf16.msra.mxu0 (!%p68_p2), %v1111_v4  ;;  %v1127_v16 = vpack.c.bf16 (!%p68_p2), %v87_v15, %v86_v14  ;;  %v89_v18 = vld [vmem:[%s1660_s5 + $0x58] sm:$0xff] (!%p68_p2)  ;;  %v90_v20 = vld [vmem:[%s1660_s5 + $0x60] sm:$0xff] (!%p68_p2)  ;;  %v91_v21 = vld [vmem:[%s1660_s5 + $0x68] sm:$0xff] (!%p68_p2) }
  0x11   :  { %1116 = vmatprep.subr.bf16.mxu0 (!%p68_p2), %v1115_v6  ;;  %v1131_v19 = vpack.c.bf16 (!%p68_p2), %v89_v18, %v88_v17  ;;  %v1135_v22 = vpack.c.bf16 (!%p68_p2), %v91_v21, %v90_v20  ;;  %v92_v23 = vld [vmem:[%s1660_s5 + $0x70] sm:$0xff] (!%p68_p2)  ;;  %v93_v24 = vld [vmem:[%s1660_s5 + $0x78] sm:$0xff] (!%p68_p2)  ;;  %v73_v26 = vld [vmem:[%s1658_s3 + $0x8] sm:$0xff] (!%p68_p2) }
  0x12   :  { %v1139_v25 = vpack.c.bf16 (!%p68_p2), %v93_v24, %v92_v23  ;;  %v74_v27 = vld [vmem:[%s1658_s3 + $0x10] sm:$0xff] (!%p68_p2)  ;;  %v75_v28 = vld [vmem:[%s1658_s3 + $0x18] sm:$0xff] (!%p68_p2)  ;;  %v76_v29 = vld [vmem:[%s1658_s3 + $0x20] sm:$0xff] (!%p68_p2) }
  0x13   :  { %v77_v30 = vld [vmem:[%s1658_s3 + $0x28] sm:$0xff] (!%p68_p2)  ;;  %v859_v31 = vld [vmem:[%s1661_s6] ss:$0 sm:$0xff] (!%p68_p2)  ;;  %v310_v20 = vld [vmem:[%s1664_s9 + $0x10] sm:$0xff] (!%p68_p2) }
  0x14   :  { %1118 = vmatpush3.bf16.msra.mxu0 %v1115_v6  ;;  %v308_v17 = vld [vmem:[%s1664_s9] sm:$0xff]  ;;  %v309_v18 = vld [vmem:[%s1664_s9 + $0x8] sm:$0xff]  ;;  %v311_v21 = vld [vmem:[%s1664_s9 + $0x18] sm:$0xff] }
  0x15   :  { %1120 = vmatprep.subr.bf16.mxu0 %v1119_v9  ;;  %v312_v23 = vld [vmem:[%s1664_s9 + $0x20] sm:$0xff]  ;;  %v313_v24 = vld [vmem:[%s1664_s9 + $0x28] sm:$0xff] }
  0x18   :  { %1122 = vmatpush3.bf16.msra.mxu0 %v1119_v9 }
  0x19   :  { %1124 = vmatprep.subr.bf16.mxu0 %v1123_v13 }
  0x1c   :  { %1126 = vmatpush3.bf16.msra.mxu0 %v1123_v13 }
  0x1d   :  { %1128 = vmatprep.subr.bf16.mxu0 %v1127_v16 }
  0x20   :  { %1130 = vmatpush3.bf16.msra.mxu0 %v1127_v16 }
  0x21   :  { %1132 = vmatprep.subr.bf16.mxu0 %v1131_v19 }
  0x24   :  { %1134 = vmatpush3.bf16.msra.mxu0 %v1131_v19  ;;  %v1143_v19 = vpack.c.bf16 %v309_v18, %v308_v17  ;;  %v1230_v17 = vmov 0.0|0.0   ;;  %v1232_v18 = vmov 0.0  }
  0x25   :  { %1136 = vmatprep.subr.bf16.mxu0 %v1135_v22 }
  0x26   :  { %1144 = vmatprep.subr.bf16.mxu1 %v1143_v19 }
  0x27   :  { %1146 = vmatpush3.bf16.msra.mxu1 %v1143_v19 }
  0x28   :  { %1138 = vmatpush3.bf16.msra.mxu0 %v1135_v22  ;;  %v1147_v22 = vpack.c.bf16 %v311_v21, %v310_v20 }
  0x29   :  { %1140 = vmatprep.subr.bf16.mxu0 %v1139_v25 }
  0x2a   :  { %1148 = vmatprep.subr.bf16.mxu1 %v1147_v22 }
  0x2b   :  { %1150 = vmatpush3.bf16.msra.mxu1 %v1147_v22 }
  0x2c   :  { %1142 = vmatpush3.bf16.msra.mxu0 %v1139_v25  ;;  %v314_v25 = vld [vmem:[%s1664_s9 + $0x30] sm:$0xff] }
  0x2f   :  { %991 = vmatmul.mubr.f32.vlgmr.msra.gmra.mrb[0].mxu0 %v73_v26  ;;  %v1151_v26 = vpack.c.bf16 %v313_v24, %v312_v23  ;;  %v436_v23 = vlaneseq }
  0x30   :  { %993 = vmatprep.mubr.f32.mxu0 %v74_v27  ;;  %v315_v27 = vld [vmem:[%s1664_s9 + $0x38] sm:$0xff] }
  0x31   :  { %1152 = vmatprep.subr.bf16.mxu1 %v1151_v26 }
  0x32   :  { %1154 = vmatpush3.bf16.msra.mxu1 %v1151_v26 }
  0x33   :  { %994 = vmatmul.mubr.f32.gmra.mrb[2].mxu0 %v75_v28  ;;  %v1155_v28 = vpack.c.bf16 %v315_v27, %v314_v25 }
  0x34   :  { %996 = vmatprep.mubr.f32.mxu0 %v76_v29 }
  0x35   :  { %1156 = vmatprep.subr.bf16.mxu1 %v1155_v28 }
  0x36   :  { %1158 = vmatpush3.bf16.msra.mxu1 %v1155_v28 }
  0x37   :  { %997 = vmatmul.mubr.f32.gmra.mrb[4].mxu0 %v77_v30  ;;  %1159 = vmatprep.subr.bf16.mxu1 %v1230_v17 }
 0x102   :  { %v992_v32 = vpop.f32.mrb[0].mxu0 }
 0x103   :  { %v167_v33 = vpop.f32.mrb[1].mxu0  ;;  %v173_v35 = vadd.f32 %v992_v32, %v859_v31 }
 0x104   :  { %v168_v34 = vadd.f32 %v859_v31, %v167_v33 }
 0x105   :  { %v202_v43 = vsel %vm58_vm0, %v173_v35, 0.0 }
 0x106   :  { %v995_v36 = vpop.f32.mrb[2].mxu0  ;;  %v199_v37 = vsel %vm58_vm0, %v168_v34, 0.0 }
 0x107   :  { %v177_v38 = vpop.f32.mrb[3].mxu0  ;;  %200 = vadd.xlane.f32.xlu0 %v199_v37  ;;  %v183_v40 = vadd.f32 %v995_v36, %v859_v31 }
 0x108   :  { %v178_v39 = vadd.f32 %v859_v31, %v177_v38 }
 0x109   :  { %v208_v47 = vsel %vm58_vm0, %v183_v40, 0.0 }
 0x10a   :  { %v998_v41 = vpop.f32.mrb[4].mxu0  ;;  %v205_v42 = vsel %vm58_vm0, %v178_v39, 0.0 }
 0x10b   :  { %v187_v44 = vpop.f32.mrb[5].mxu0  ;;  %206 = vadd.xlane.f32.xlu1 %v205_v42  ;;  %203 = vadd.xlane.f32.xlu0 %v202_v43  ;;  %v193_v46 = vadd.f32 %v998_v41, %v859_v31 }
 0x10c   :  { %v188_v45 = vadd.f32 %v859_v31, %v187_v44 }
 0x10d   :  { %v214_v49 = vsel %vm58_vm0, %v193_v46, 0.0 }
 0x10e   :  { %v211_v48 = vsel %vm58_vm0, %v188_v45, 0.0 }
 0x10f   :  { %209 = vadd.xlane.f32.xlu1 %v208_v47  ;;  %212 = vadd.xlane.f32.xlu0 %v211_v48  ;;  %v860_v48 = vld [vmem:[%s1662_s7] ss:$0 sm:$0xff] }
 0x113   :  { %215 = vadd.xlane.f32.xlu1 %v214_v49 }
 0x194   :  { %v201_v50 = vpop.xlane.xlu0 %200 }
 0x195   :  { %v218_v51 = vmul.f32 0.015625, %v201_v50  ;;  %v861_v50 = vld [vmem:[%s1663_s8] ss:$0 sm:$0xff] }
 0x197   :  { %v1413_v52 = vsub.f32 %v168_v34, %v218_v51 }
 0x198   :  { %v207_v53 = vpop.xlane.xlu1 %206  ;;  %v204_v54 = vpop.xlane.xlu0 %203 }
 0x199   :  { %v220_v55 = vmul.f32 0.015625, %v207_v53  ;;  %v219_v56 = vmul.f32 0.015625, %v204_v54  ;;  %v230_v57 = vmul.f32 %v1413_v52, %v1413_v52 }
 0x19b   :  { %v1417_v58 = vsub.f32 %v178_v39, %v220_v55  ;;  %v1419_v59 = vsub.f32 %v173_v35, %v219_v56  ;;  %v236_v60 = vsel %vm58_vm0, %v230_v57, 0.0 }
 0x19c   :  { %v210_v61 = vpop.xlane.xlu1 %209  ;;  %237 = vadd.xlane.f32.xlu0 %v236_v60  ;;  %v213_v62 = vpop.xlane.xlu0 %212 }
 0x19d   :  { %v221_v63 = vmul.f32 0.015625, %v210_v61  ;;  %v222_v1 = vmul.f32 0.015625, %v213_v62  ;;  %v232_v2 = vmul.f32 %v1417_v58, %v1417_v58  ;;  %v231_v3 = vmul.f32 %v1419_v59, %v1419_v59 }
 0x19f   :  { %v1426_v4 = vsub.f32 %v183_v40, %v221_v63  ;;  %v1428_v5 = vsub.f32 %v188_v45, %v222_v1  ;;  %v242_v6 = vsel %vm58_vm0, %v232_v2, 0.0  ;;  %v239_v7 = vsel %vm58_vm0, %v231_v3, 0.0 }
 0x1a0   :  { %v216_v8 = vpop.xlane.xlu1 %215  ;;  %243 = vadd.xlane.f32.xlu0 %v242_v6  ;;  %240 = vadd.xlane.f32.xlu1 %v239_v7 }
 0x1a1   :  { %v223_v9 = vmul.f32 0.015625, %v216_v8  ;;  %v233_v10 = vmul.f32 %v1426_v4, %v1426_v4  ;;  %v234_v11 = vmul.f32 %v1428_v5, %v1428_v5 }
 0x1a3   :  { %v1436_v12 = vsub.f32 %v193_v46, %v223_v9  ;;  %v245_v13 = vsel %vm58_vm0, %v233_v10, 0.0  ;;  %v248_v14 = vsel %vm58_vm0, %v234_v11, 0.0 }
 0x1a4   :  { %246 = vadd.xlane.f32.xlu1 %v245_v13  ;;  %249 = vadd.xlane.f32.xlu0 %v248_v14 }
 0x1a5   :  { %v235_v15 = vmul.f32 %v1436_v12, %v1436_v12 }
 0x1a7   :  { %v251_v16 = vsel %vm58_vm0, %v235_v15, 0.0 }
 0x1a8   :  { %252 = vadd.xlane.f32.xlu1 %v251_v16 }
 0x229   :  { %v238_v29 = vpop.xlane.xlu0 %237 }
 0x22a   :  { %v254_v30 = vmul.f32 0.015625, %v238_v29  ;;  %v437_v29 = vshrl.u32 %v436_v23, 7 }
 0x22c   :  { %v260_v31 = vadd.f32 1e-05, %v254_v30 }
 0x22d   :  { %v241_v32 = vpop.xlane.xlu1 %240  ;;  %v244_v33 = vpop.xlane.xlu0 %243 }
 0x22e   :  { %1211 = vrsqrt.f32 %v260_v31  ;;  %v255_v34 = vmul.f32 0.015625, %v241_v32  ;;  %v256_v35 = vmul.f32 0.015625, %v244_v33  ;;  %v869_v32 = vld [vmem:[%s1657_s2] ss:$0 sm:$0xff] }
 0x22f   :  { %vm449_vm2 = vcmp.eq.s32.totalorder %v437_v29, %v869_v32 }
 0x230   :  { %v261_v36 = vadd.f32 1e-05, %v255_v34  ;;  %v262_v37 = vadd.f32 1e-05, %v256_v35 }
 0x231   :  { %v247_v38 = vpop.xlane.xlu1 %246  ;;  %v250_v39 = vpop.xlane.xlu0 %249 }
 0x232   :  { %1213 = vrsqrt.f32 %v261_v36  ;;  %v257_v40 = vmul.f32 0.015625, %v247_v38  ;;  %v258_v41 = vmul.f32 0.015625, %v250_v39  ;;  %v438_v36 = vadd.s32 8, %v437_v29 }
 0x233   :  { %1215 = vrsqrt.f32 %v262_v37  ;;  %v870_v38 = vsel %vm449_vm2, 1.0, %v1232_v18  ;;  %v439_v39 = vadd.s32 16, %v437_v29 }
 0x234   :  { %v263_v42 = vadd.f32 1e-05, %v257_v40  ;;  %v264_v43 = vadd.f32 1e-05, %v258_v41  ;;  %vm450_vm4 = vcmp.eq.s32.totalorder %v438_v36, %v869_v32 }
 0x235   :  { %v253_v44 = vpop.xlane.xlu1 %252  ;;  %v871_v40 = vsel %vm450_vm4, 1.0, %v1232_v18  ;;  %vm451_vm5 = vcmp.eq.s32.totalorder %v439_v39, %v869_v32 }
 0x236   :  { %1217 = vrsqrt.f32 %v263_v42  ;;  %v259_v45 = vmul.f32 0.015625, %v253_v44  ;;  %v872_v41 = vsel %vm451_vm5, 1.0, %v1232_v18  ;;  %v458_v42 = vld [vmem:[#allocation2] sm:$0xff] }
 0x237   :  { %1219 = vrsqrt.f32 %v264_v43 }
 0x238   :  { %v1212_v46 = vpop.eup %1211  ;;  %v265_v47 = vadd.f32 1e-05, %v259_v45 }
 0x239   :  { %v272_v49 = vmul.f32 %v1212_v46, %v1413_v52  ;;  %v459_v46 = vld [vmem:[#allocation2 + $0x8] sm:$0xff] }
 0x23a   :  { %1221 = vrsqrt.f32 %v265_v47 }
 0x23b   :  { %v284_v51 = vmul.f32 %v860_v48, %v272_v49 }
 0x23c   :  { %v1214_v53 = vpop.eup %1213 }
 0x23d   :  { %v1216_v54 = vpop.eup %1215  ;;  %v296_v55 = vadd.f32 %v861_v50, %v284_v51  ;;  %v273_v56 = vmul.f32 %v1214_v53, %v1419_v59 }
 0x23e   :  { %v274_v57 = vmul.f32 %v1216_v54, %v1417_v58 }
 0x23f   :  { %v302_v60 = vmax.f32 %v296_v55, 0.0  ;;  %v285_v61 = vmul.f32 %v860_v48, %v273_v56 }
 0x240   :  { %v1218_v62 = vpop.eup %1217  ;;  %v286_v63 = vmul.f32 %v860_v48, %v274_v57 }
 0x241   :  { %v1220_v1 = vpop.eup %1219  ;;  %1015 = vmatprep.mubr.msk.f32.mxu1 %vm58_vm0, %v302_v60  ;;  %v297_v52 = vadd.f32 %v861_v50, %v285_v61  ;;  %v275_v2 = vmul.f32 %v1218_v62, %v1426_v4 }
 0x242   :  { %v298_v3 = vadd.f32 %v861_v50, %v286_v63  ;;  %v276_v6 = vmul.f32 %v1220_v1, %v1428_v5 }
 0x243   :  { %v303_v7 = vmax.f32 %v297_v52, 0.0  ;;  %v287_v8 = vmul.f32 %v860_v48, %v275_v2 }
 0x244   :  { %v1222_v9 = vpop.eup %1221  ;;  %v304_v10 = vmax.f32 %v298_v3, 0.0  ;;  %v288_v59 = vmul.f32 %v860_v48, %v276_v6 }
 0x245   :  { %1016 = vmatmul.mubr.msk.f32.vlgmr.msra.gmra.mrb[0].mxu1 %vm58_vm0, %v303_v7  ;;  %v299_v58 = vadd.f32 %v861_v50, %v287_v8  ;;  %v277_v11 = vmul.f32 %v1222_v9, %v1436_v12  ;;  %v862_v12 = vld [vmem:[%s1665_s10] ss:$0 sm:$0xff] }
 0x246   :  { %1018 = vmatprep.mubr.msk.f32.mxu1 %vm58_vm0, %v304_v10  ;;  %v300_v13 = vadd.f32 %v861_v50, %v288_v59 }
 0x247   :  { %v305_v14 = vmax.f32 %v299_v58, 0.0  ;;  %v289_v15 = vmul.f32 %v860_v48, %v277_v11 }
 0x248   :  { %v306_v16 = vmax.f32 %v300_v13, 0.0 }
 0x249   :  { %1019 = vmatmul.mubr.msk.f32.gmra.mrb[2].mxu1 %vm58_vm0, %v305_v14  ;;  %v301_v4 = vadd.f32 %v861_v50, %v289_v15  ;;  %v460_v50 = vld [vmem:[#allocation2 + $0x10] sm:$0xff] }
 0x24a   :  { %1021 = vmatprep.mubr.msk.f32.mxu1 %vm58_vm0, %v306_v16 }
 0x24b   :  { %v307_v5 = vmax.f32 %v301_v4, 0.0 }
 0x24d   :  { %1022 = vmatmul.mubr.msk.f32.gmra.mrb[4].mxu1 %vm58_vm0, %v307_v5 }
 0x24e   :  { %1036 = vmatprep.mubr.msk.f32.mxu1 %vm1231_vm1, %v1232_v18 }
 0x318   :  { %v1017_v19 = vpop.f32.mrb[0].mxu1 }
 0x319   :  { %v413_v20 = vadd.f32 %v1017_v19, %v862_v12  ;;  %v407_v21 = vpop.f32.mrb[1].mxu1 }
 0x31a   :  { %v408_v22 = vadd.f32 %v862_v12, %v407_v21 }
 0x31c   :  { %v1160_v24 = vpack.c.bf16 %v413_v20, %v408_v22  ;;  %v1020_v25 = vpop.f32.mrb[2].mxu1 }
 0x31d   :  { %v423_v26 = vadd.f32 %v1020_v25, %v862_v12  ;;  %v417_v27 = vpop.f32.mrb[3].mxu1 }
 0x31e   :  { %v418_v28 = vadd.f32 %v862_v12, %v417_v27  ;;  %1161 = vmatpush3.bf16.msra.mxu1 %v1160_v24 }
 0x31f   :  { %1162 = vmatprep.subr.bf16.mxu1 %v1230_v17 }
 0x320   :  { %v1163_v30 = vpack.c.bf16 %v423_v26, %v418_v28  ;;  %v1023_v31 = vpop.f32.mrb[4].mxu1 }
 0x321   :  { %v433_v33 = vadd.f32 %v1023_v31, %v862_v12  ;;  %v427_v34 = vpop.f32.mrb[5].mxu1 }
 0x322   :  { %v428_v35 = vadd.f32 %v862_v12, %v427_v34  ;;  %1164 = vmatpush3.bf16.msra.mxu1 %v1163_v30 }
 0x323   :  { %1165 = vmatprep.subr.bf16.mxu1 %v1230_v17 }
 0x324   :  { %v1166_v37 = vpack.c.bf16 %v433_v33, %v428_v35 }
 0x326   :  { %1167 = vmatpush3.bf16.msra.mxu1 %v1166_v37 }
 0x329   :  { %1037 = vmatmul.mubr.msk.f32.vlgmr.msra.gmra.mrb[6].mxu1 %vm461_vm3, %v870_v38 }
 0x32a   :  { %1039 = vmatprep.mubr.msk.f32.mxu1 %vm1231_vm1, %v1232_v18 }
 0x32d   :  { %1040 = vmatmul.mubr.msk.f32.gmra.mrb[8].mxu1 %vm461_vm3, %v871_v40 }
 0x32e   :  { %1042 = vmatprep.mubr.msk.f32.mxu1 %vm1231_vm1, %v1232_v18 }
 0x331   :  { %1043 = vmatmul.mubr.msk.f32.gmra.mrb[10].mxu1 %vm461_vm3, %v872_v41 }
 0x3fc   :  { %v537_v43 = vpop.f32.mrb[6].mxu1 }
 0x3fd   :  { %v551_v44 = vadd.f32 %v537_v43, %v458_v42  ;;  %v1038_v45 = vpop.f32.mrb[7].mxu1 }
 0x3ff   :  { %554 = vst.msk [vmem:[#allocation2] sm:$0xff] %vm58_vm0, %v551_v44 }
 0x400   :  { %v542_v47 = vpop.f32.mrb[8].mxu1 }
 0x401   :  { %v552_v48 = vadd.f32 %v542_v47, %v459_v46  ;;  %v1041_v49 = vpop.f32.mrb[9].mxu1 }
 0x403   :  { %555 = vst.msk [vmem:[#allocation2 + $0x8] sm:$0xff] %vm58_vm0, %v552_v48 }
 0x404   :  { %v547_v51 = vpop.f32.mrb[10].mxu1 }
 0x405   :  { %v553_v53 = vadd.f32 %v547_v51, %v460_v50  ;;  %v1044_v54 = vpop.f32.mrb[11].mxu1 }
 0x407   :  { %556 = vst.msk [vmem:[#allocation2 + $0x10] sm:$0xff] %vm58_vm0, %v553_v53 }
 0x408 PF:  { %v560_v55 = vld [vmem:[#allocation2] sm:$0xff]  ;;  %v569_v1 = vld [vmem:[%s1668_s13 + $0x8] sm:$0xff]  ;;  %v570_v52 = vld [vmem:[%s1668_s13 + $0x10] sm:$0xff]  ;;  %v1233_v2 = vmov 0.0|0.0   ;;  %s1234_s3 = smov 64   ;;  %vm1235_vm6 = vmmov 0  }
 0x409   :  { %v595_v60 = vsel %vm58_vm0, %v560_v55, 0.0  ;;  %v568_v63 = vld [vmem:[%s1668_s13] sm:$0xff]  ;;  %1168 = vmatprep.subr.bf16.mxu0 %v1233_v2  ;;  %v571_v6 = vld [vmem:[%s1668_s13 + $0x18] sm:$0xff]  ;;  %1192 = vmatprep.subr.bf16.mxu1 %v1233_v2  ;;  %v573_v9 = vld [vmem:[%s1668_s13 + $0x28] sm:$0xff] }
 0x40a   :  { %v561_v56 = vld [vmem:[#allocation2 + $0x8] sm:$0xff]  ;;  %596 = vadd.xlane.f32.xlu0 %v595_v60  ;;  %v1169_v3 = vpack.c.bf16 %v569_v1, %v568_v63  ;;  %v1172_v7 = vpack.c.bf16 %v571_v6, %v570_v52  ;;  %v572_v8 = vld [vmem:[%s1668_s13 + $0x20] sm:$0xff]  ;;  %v574_v12 = vld [vmem:[%s1668_s13 + $0x30] sm:$0xff]  ;;  %1077 = vmatprep.mubr.msk.f32.mxu0 %vm1235_vm6, %v1229_v0 }
 0x40b   :  { %v598_v62 = vsel %vm58_vm0, %v561_v56, 0.0  ;;  %v1175_v10 = vpack.c.bf16 %v573_v9, %v572_v8  ;;  %v564_v18 = vld [vmem:[%s1659_s4 + $0x8] sm:$0xff]  ;;  %v575_v19 = vld [vmem:[%s1668_s13 + $0x38] sm:$0xff]  ;;  %v576_v21 = vld [vmem:[%s1668_s13 + $0x40] sm:$0xff]  ;;  %1102 = vmatprep.mubr.msk.f32.mxu1 %vm1235_vm6, %v1229_v0 }
 0x40c   :  { %1170 = vmatpush3.bf16.msra.mxu0 %v1169_v3  ;;  %v1178_v20 = vpack.c.bf16 %v575_v19, %v574_v12  ;;  %v577_v22 = vld [vmem:[%s1668_s13 + $0x48] sm:$0xff]  ;;  %v578_v24 = vld [vmem:[%s1668_s13 + $0x50] sm:$0xff]  ;;  %v579_v25 = vld [vmem:[%s1668_s13 + $0x58] sm:$0xff] }
 0x40d   :  { %1171 = vmatprep.subr.bf16.mxu0 %v1233_v2  ;;  %v1181_v23 = vpack.c.bf16 %v577_v22, %v576_v21  ;;  %v580_v26 = vld [vmem:[%s1668_s13 + $0x60] sm:$0xff]  ;;  %v1184_v28 = vpack.c.bf16 %v579_v25, %v578_v24  ;;  %v581_v29 = vld [vmem:[%s1668_s13 + $0x68] sm:$0xff]  ;;  %v582_v31 = vld [vmem:[%s1668_s13 + $0x70] sm:$0xff] }
 0x40e   :  { %v1497_v57 = vld [vmem:[#allocation2 + $0x10] sm:$0xff]  ;;  %599 = vadd.xlane.f32.xlu0 %v598_v62  ;;  %v563_v27 = vld [vmem:[%s1659_s4] sm:$0xff]  ;;  %v1187_v30 = vpack.c.bf16 %v581_v29, %v580_v26  ;;  %v583_v32 = vld [vmem:[%s1668_s13 + $0x78] sm:$0xff] }
 0x40f   :  { %v601_v61 = vsel %vm58_vm0, %v1497_v57, 0.0  ;;  %v1190_v33 = vpack.c.bf16 %v583_v32, %v582_v31  ;;  %v565_v39 = vld [vmem:[%s1659_s4 + $0x10] sm:$0xff]  ;;  %v585_v40 = vld [vmem:[%s1670_s15] sm:$0xff]  ;;  %v586_v41 = vld [vmem:[%s1670_s15 + $0x8] sm:$0xff] }
 0x410   :  { %602 = vadd.xlane.f32.xlu1 %v601_v61  ;;  %1173 = vmatpush3.bf16.msra.mxu0 %v1172_v7  ;;  %v587_v42 = vld [vmem:[%s1670_s15 + $0x10] sm:$0xff]  ;;  %v1193_v43 = vpack.c.bf16 %v586_v41, %v585_v40  ;;  %v588_v44 = vld [vmem:[%s1670_s15 + $0x18] sm:$0xff]  ;;  %v589_v46 = vld [vmem:[%s1670_s15 + $0x20] sm:$0xff] }
 0x411   :  { %1174 = vmatprep.subr.bf16.mxu0 %v1233_v2  ;;  %v1196_v45 = vpack.c.bf16 %v588_v44, %v587_v42  ;;  %v590_v47 = vld [vmem:[%s1670_s15 + $0x28] sm:$0xff]  ;;  %v877_v61 = vld [vmem:[%s1667_s12] ss:$0 sm:$0xff] }
 0x412   :  { %1194 = vmatpush3.bf16.msra.mxu1 %v1193_v43  ;;  %v1199_v48 = vpack.c.bf16 %v590_v47, %v589_v46  ;;  %v878_v12 = vld [vmem:[%s1669_s14] ss:$0 sm:$0xff] }
 0x413   :  { %1195 = vmatprep.subr.bf16.mxu1 %v1233_v2  ;;  %v879_v31 = vld [vmem:[%s1671_s16] ss:$0 sm:$0xff] }
 0x414   :  { %1176 = vmatpush3.bf16.msra.mxu0 %v1175_v10 }
 0x415   :  { %1177 = vmatprep.subr.bf16.mxu0 %v1233_v2 }
 0x416   :  { %1197 = vmatpush3.bf16.msra.mxu1 %v1196_v45 }
 0x417   :  { %1198 = vmatprep.subr.bf16.mxu1 %v1233_v2 }
 0x418   :  { %1179 = vmatpush3.bf16.msra.mxu0 %v1178_v20 }
 0x419   :  { %1180 = vmatprep.subr.bf16.mxu0 %v1233_v2 }
 0x41a   :  { %1200 = vmatpush3.bf16.msra.mxu1 %v1199_v48 }
 0x41b   :  { %1201 = vmatprep.subr.bf16.mxu1 %v1233_v2 }
 0x41c   :  { %1182 = vmatpush3.bf16.msra.mxu0 %v1181_v23 }
 0x41d   :  { %1183 = vmatprep.subr.bf16.mxu0 %v1233_v2 }
 0x420   :  { %1185 = vmatpush3.bf16.msra.mxu0 %v1184_v28 }
 0x421   :  { %1186 = vmatprep.subr.bf16.mxu0 %v1233_v2 }
 0x424   :  { %1188 = vmatpush3.bf16.msra.mxu0 %v1187_v30 }
 0x425   :  { %1189 = vmatprep.subr.bf16.mxu0 %v1233_v2 }
 0x428   :  { %1191 = vmatpush3.bf16.msra.mxu0 %v1190_v33 }
 0x497   :  { %v597_v59 = vpop.xlane.xlu0 %596 }
 0x498   :  { %v605_v58 = vmul.f32 0.015625, %v597_v59 }
 0x49a   :  { %v1526_v11 = vsub.f32 %v560_v55, %v605_v58 }
 0x49b   :  { %v600_v13 = vpop.xlane.xlu0 %599 }
 0x49c   :  { %v606_v14 = vmul.f32 0.015625, %v600_v13  ;;  %v611_v15 = vmul.f32 %v1526_v11, %v1526_v11 }
 0x49d   :  { %v603_v34 = vpop.xlane.xlu1 %602 }
 0x49e   :  { %v1530_v16 = vsub.f32 %v561_v56, %v606_v14  ;;  %v614_v4 = vsel %vm58_vm0, %v611_v15, 0.0  ;;  %v607_v35 = vmul.f32 0.015625, %v603_v34 }
 0x49f   :  { %615 = vadd.xlane.f32.xlu1 %v614_v4 }
 0x4a0   :  { %v612_v5 = vmul.f32 %v1530_v16, %v1530_v16  ;;  %v610_v36 = vsub.f32 %v1497_v57, %v607_v35  ;;  %v876_v57 = vld [vmem:[%s1666_s11] ss:$0 sm:$0xff] }
 0x4a2   :  { %v617_v17 = vsel %vm58_vm0, %v612_v5, 0.0  ;;  %v613_v37 = vmul.f32 %v610_v36, %v610_v36  ;;  %v591_v5 = vld [vmem:[%s1670_s15 + $0x30] sm:$0xff] }
 0x4a3   :  { %618 = vadd.xlane.f32.xlu0 %v617_v17  ;;  %v592_v17 = vld [vmem:[%s1670_s15 + $0x38] sm:$0xff] }
 0x4a4   :  { %v620_v38 = vsel %vm58_vm0, %v613_v37, 0.0 }
 0x4b0   :  { %658 = vrot.lane.b32.xlu1 %v564_v18, %s1234_s3  ;;  %v1202_v18 = vpack.c.bf16 %v592_v17, %v591_v5 }
 0x4b2   :  { %1203 = vmatpush3.bf16.msra.mxu1 %v1202_v18 }
 0x4b9   :  { %656 = vrot.lane.b32.xlu0 %v563_v27, %s1234_s3 }
 0x4d4   :  { %621 = vadd.xlane.f32.xlu1 %v620_v38 }
 0x4e5   :  { %660 = vrot.lane.b32.xlu1 %v565_v39, %s1234_s3 }
 0x52c   :  { %v616_v49 = vpop.xlane.xlu1 %615 }
 0x52d   :  { %v623_v50 = vmul.f32 0.015625, %v616_v49 }
 0x52f   :  { %v626_v51 = vadd.f32 1e-05, %v623_v50 }
 0x530   :  { %v619_v53 = vpop.xlane.xlu0 %618  ;;  %v659_v8 = vpop.permute.xlu1 %658 }
 0x531   :  { %1223 = vrsqrt.f32 %v626_v51  ;;  %v624_v54 = vmul.f32 0.015625, %v619_v53 }
 0x533   :  { %v627_v55 = vadd.f32 1e-05, %v624_v54 }
 0x534   :  { %v657_v1 = vpop.permute.xlu0 %656 }
 0x535   :  { %1225 = vrsqrt.f32 %v627_v55 }
 0x53b   :  { %v1224_v56 = vpop.eup %1223 }
 0x53c   :  { %v632_v60 = vmul.f32 %v1224_v56, %v1526_v11 }
 0x53e   :  { %v641_v62 = vmul.f32 %v876_v57, %v632_v60 }
 0x53f   :  { %v1226_v63 = vpop.eup %1225 }
 0x540   :  { %v650_v52 = vadd.f32 %v877_v61, %v641_v62  ;;  %v633_v2 = vmul.f32 %v1226_v63, %v1530_v16 }
 0x542   :  { %v665_v3 = vsel %vm58_vm0, %v650_v52, %v657_v1  ;;  %v642_v6 = vmul.f32 %v876_v57, %v633_v2 }
 0x543   :  { %1078 = vmatmul.mubr.f32.vlgmr.msra.gmra.mrb[0].mxu0 %v665_v3 }
 0x544   :  { %1080 = vmatprep.mubr.msk.f32.mxu0 %vm1235_vm6, %v1229_v0  ;;  %v651_v7 = vadd.f32 %v877_v61, %v642_v6 }
 0x546   :  { %v666_v9 = vsel %vm58_vm0, %v651_v7, %v659_v8 }
 0x547   :  { %1081 = vmatmul.mubr.f32.gmra.mrb[2].mxu0 %v666_v9 }
 0x548   :  { %1083 = vmatprep.mubr.msk.f32.mxu0 %vm1235_vm6, %v1229_v0 }
 0x561   :  { %v622_v10 = vpop.xlane.xlu1 %621 }
 0x562   :  { %v625_v59 = vmul.f32 0.015625, %v622_v10 }
 0x564   :  { %v628_v58 = vadd.f32 1e-05, %v625_v59 }
 0x565   :  { %v661_v15 = vpop.permute.xlu1 %660 }
 0x566   :  { %1227 = vrsqrt.f32 %v628_v58 }
 0x570   :  { %v1228_v11 = vpop.eup %1227 }
 0x571   :  { %v634_v13 = vmul.f32 %v1228_v11, %v610_v36 }
 0x573   :  { %v643_v14 = vmul.f32 %v876_v57, %v634_v13 }
 0x575   :  { %v652_v16 = vadd.f32 %v877_v61, %v643_v14 }
 0x577   :  { %v667_v4 = vsel %vm58_vm0, %v652_v16, %v661_v15 }
 0x578   :  { %1084 = vmatmul.mubr.f32.gmra.mrb[4].mxu0 %v667_v4 }
 0x616   :  { %v740_v19 = vpop.f32.mrb[0].mxu0 }
 0x617   :  { %v741_v20 = vadd.f32 %v878_v12, %v740_v19  ;;  %v1079_v21 = vpop.f32.mrb[1].mxu0 }
 0x619   :  { %v754_v22 = vmax.f32 %v741_v20, 0.0 }
 0x61a   :  { %v745_v23 = vpop.f32.mrb[2].mxu0 }
 0x61b   :  { %v746_v24 = vadd.f32 %v878_v12, %v745_v23  ;;  %v1082_v25 = vpop.f32.mrb[3].mxu0  ;;  %1103 = vmatmul.mubr.msk.f32.vlgmr.msra.gmra.mrb[0].mxu1 %vm58_vm0, %v754_v22 }
 0x61c   :  { %1105 = vmatprep.mubr.msk.f32.mxu1 %vm1235_vm6, %v1229_v0 }
 0x61d   :  { %v755_v26 = vmax.f32 %v746_v24, 0.0 }
 0x61f   :  { %1106 = vmatmul.mubr.msk.f32.gmra.mrb[2].mxu1 %vm58_vm0, %v755_v26 }
 0x620   :  { %1108 = vmatprep.mubr.msk.f32.mxu1 %vm1235_vm6, %v1229_v0 }
 0x64b   :  { %v750_v27 = vpop.f32.mrb[4].mxu0 }
 0x64c   :  { %v751_v28 = vadd.f32 %v878_v12, %v750_v27  ;;  %v1085_v29 = vpop.f32.mrb[5].mxu0 }
 0x64e   :  { %v756_v30 = vmax.f32 %v751_v28, 0.0 }
 0x650   :  { %1109 = vmatmul.mubr.msk.f32.gmra.mrb[4].mxu1 %vm58_vm0, %v756_v30 }
 0x6ee   :  { %v838_v32 = vpop.f32.mrb[0].mxu1 }
 0x6ef   :  { %v839_v33 = vadd.f32 %v879_v31, %v838_v32  ;;  %v1104_v34 = vpop.f32.mrb[1].mxu1 }
 0x6f1   :  { %852 = vst.msk [vmem:[%s1672_s17] sm:$0xff] %vm58_vm0, %v839_v33 }
 0x6f2   :  { %v843_v35 = vpop.f32.mrb[2].mxu1 }
 0x6f3   :  { %v844_v0 = vadd.f32 %v879_v31, %v843_v35  ;;  %v1107_v36 = vpop.f32.mrb[3].mxu1 }
 0x6f5   :  { %853 = vst.msk [vmem:[%s1672_s17 + $0x8] sm:$0xff] %vm58_vm0, %v844_v0 }
 0x723   :  { %v848_v37 = vpop.f32.mrb[4].mxu1 }
 0x724   :  { %v849_v38 = vadd.f32 %v879_v31, %v848_v37  ;;  %v1110_v39 = vpop.f32.mrb[5].mxu1 }
 0x726   :  { %854 = vst.msk [vmem:[%s1672_s17 + $0x10] sm:$0xff] %vm58_vm0, %v849_v38 }

// kernel: policy_forward.11
= control target key start
LH: loop header
LB: loop body
LE: loop exit
PB: predicated region body
PF: predicated region fallthrough
CT: control target
= control target key end

     0   :  { %vm67_vm0 = vcmask 523264   ;;  %v1453_v0 = vmov 0.0   ;;  %s1937_s0 = inlined_call_operand.<no memory space> [shape: s32[1], index: 0, kind: input, shape index: {}]   ;;  %s1938_s1 = inlined_call_operand.<no memory space> [shape: s32[1], index: 1, kind: input, shape index: {}]   ;;  %s1939_s2 = inlined_call_operand.vmem [shape: s32[1,48], index: 2, kind: input, shape index: {}]   ;;  %s1940_s3 = inlined_call_operand.vmem [shape: f32[48,128], index: 3, kind: input, shape index: {}]   ;;  %s1941_s4 = inlined_call_operand.vmem [shape: f32[24,64], index: 4, kind: input, shape index: {}]   ;;  %s1942_s5 = inlined_call_operand.vmem [shape: f32[128,64], index: 5, kind: input, shape index: {}]   ;;  %s1943_s6 = inlined_call_operand.vmem [shape: f32[1,64], index: 6, kind: input, shape index: {}]   ;;  %s1944_s7 = inlined_call_operand.vmem [shape: f32[1,64], index: 7, kind: input, shape index: {}]   ;;  %s1945_s8 = inlined_call_operand.vmem [shape: f32[1,64], index: 8, kind: input, shape index: {}]   ;;  %s1946_s9 = inlined_call_operand.vmem [shape: f32[64,64], index: 9, kind: input, shape index: {}]   ;;  %s1947_s10 = inlined_call_operand.vmem [shape: f32[1,64], index: 10, kind: input, shape index: {}]   ;;  %s1948_s11 = inlined_call_operand.vmem [shape: f32[1,64], index: 11, kind: input, shape index: {}]   ;;  %s1949_s12 = inlined_call_operand.vmem [shape: f32[1,64], index: 12, kind: input, shape index: {}]   ;;  %s1950_s13 = inlined_call_operand.vmem [shape: f32[128,64], index: 13, kind: input, shape index: {}]   ;;  %s1951_s14 = inlined_call_operand.vmem [shape: f32[1,64], index: 14, kind: input, shape index: {}]   ;;  %s1952_s15 = inlined_call_operand.vmem [shape: f32[64,64], index: 15, kind: input, shape index: {}]   ;;  %s1953_s16 = inlined_call_operand.vmem [shape: f32[1,64], index: 16, kind: input, shape index: {}]   ;;  %s1954_s17 = inlined_call_operand.vmem [shape: f32[64,64], index: 17, kind: input, shape index: {}]   ;;  %s1955_s18 = inlined_call_operand.vmem [shape: f32[1,64], index: 18, kind: input, shape index: {}]   ;;  %s1956_s19 = inlined_call_operand.vmem [shape: f32[1,64], index: 19, kind: input, shape index: {}]   ;;  %s1957_s20 = inlined_call_operand.vmem [shape: f32[24,128], index: 20, kind: output, shape index: {}]  }
   0x1   :  { %1960 = sst [smem:[#allocation6_spill]] %s1937_s0  ;;  %68 = vst.msk [vmem:[#allocation2] sm:$0xff] %vm67_vm0, %v1453_v0  ;;  %69 = vst.msk [vmem:[#allocation2 + $0x8] sm:$0xff] %vm67_vm0, %v1453_v0 }
   0x2   :  { %1961 = sst [smem:[#allocation7_spill]] %s1938_s1  ;;  %70 = vst.msk [vmem:[#allocation2 + $0x10] sm:$0xff] %vm67_vm0, %v1453_v0  ;;  %s1966_s25 = sld [smem:[#allocation6_spill]] }
   0x3   :  { %1962 = sst [smem:[#allocation8_spill]] %s1939_s2  ;;  %s1965_s23 = sld [smem:[#allocation7_spill]] }
   0x4   :  { %1963 = sst [smem:[#allocation9_spill]] %s1940_s3 }
   0x5   :  { %1964 = sst [smem:[#allocation10_spill]] %s1941_s4 }
   0x8   :  { %p76_p1 = scmp.lt.s32.totalorder %s1966_s25, 24 }
   0x9   :  { %p73_p0 = scmp.ge.s32.totalorder %s1965_s23, 0 }
   0xb   :  { %p77_p2 = pnand %p76_p1, %p73_p0 }
   0xc   :  { %v87_v1 = vld [vmem:[%s1942_s5] sm:$0xff] (!%p77_p2)  ;;  %v88_v2 = vld [vmem:[%s1942_s5 + $0x8] sm:$0xff] (!%p77_p2)  ;;  %v89_v3 = vld [vmem:[%s1942_s5 + $0x10] sm:$0xff] (!%p77_p2)  ;;  %s1967_s25 = sld [smem:[#allocation9_spill]] (!%p77_p2)  ;;  %vm1455_vm1 = vmmov (!%p77_p2), 0   ;;  %s1968_s29 = sld [smem:[#allocation8_spill]] (!%p77_p2) }
   0xd   :  { %80 = sbr.rel (%p77_p2) target bundleno = 1032 (0x408), region = 81  ;;  %v1305_v4 = vpack.c.bf16 (!%p77_p2), %v88_v2, %v87_v1  ;;  %v90_v5 = vld [vmem:[%s1942_s5 + $0x18] sm:$0xff] (!%p77_p2)  ;;  %v91_v7 = vld [vmem:[%s1942_s5 + $0x20] sm:$0xff] (!%p77_p2)  ;;  %v92_v8 = vld [vmem:[%s1942_s5 + $0x28] sm:$0xff] (!%p77_p2)  ;;  %vm470_vm3 = vcmask (!%p77_p2), 392192  }
   0xe   :  { %v1309_v6 = vpack.c.bf16 (!%p77_p2), %v90_v5, %v89_v3  ;;  %v1313_v9 = vpack.c.bf16 (!%p77_p2), %v92_v8, %v91_v7  ;;  %v93_v11 = vld [vmem:[%s1942_s5 + $0x30] sm:$0xff] (!%p77_p2)  ;;  %v94_v12 = vld [vmem:[%s1942_s5 + $0x38] sm:$0xff] (!%p77_p2)  ;;  %v95_v14 = vld [vmem:[%s1942_s5 + $0x40] sm:$0xff] (!%p77_p2) }
   0xf   :  { %1306 = vmatprep.subr.bf16.mxu0 (!%p77_p2), %v1305_v4  ;;  %v1317_v13 = vpack.c.bf16 (!%p77_p2), %v94_v12, %v93_v11  ;;  %v96_v15 = vld [vmem:[%s1942_s5 + $0x48] sm:$0xff] (!%p77_p2)  ;;  %v97_v17 = vld [vmem:[%s1942_s5 + $0x50] sm:$0xff] (!%p77_p2)  ;;  %v98_v18 = vld [vmem:[%s1942_s5 + $0x58] sm:$0xff] (!%p77_p2) }
  0x10   :  { %1308 = vmatpush3.bf16.msra.mxu0 (!%p77_p2), %v1305_v4  ;;  %v1321_v16 = vpack.c.bf16 (!%p77_p2), %v96_v15, %v95_v14  ;;  %v1325_v19 = vpack.c.bf16 (!%p77_p2), %v98_v18, %v97_v17  ;;  %v99_v20 = vld [vmem:[%s1942_s5 + $0x60] sm:$0xff] (!%p77_p2)  ;;  %v100_v21 = vld [vmem:[%s1942_s5 + $0x68] sm:$0xff] (!%p77_p2)  ;;  %v101_v23 = vld [vmem:[%s1942_s5 + $0x70] sm:$0xff] (!%p77_p2) }
  0x11   :  { %1310 = vmatprep.subr.bf16.mxu0 (!%p77_p2), %v1309_v6  ;;  %v1329_v22 = vpack.c.bf16 (!%p77_p2), %v100_v21, %v99_v20  ;;  %v102_v24 = vld [vmem:[%s1942_s5 + $0x78] sm:$0xff] (!%p77_p2)  ;;  %v1012_v31 = vld [vmem:[%s1943_s6] ss:$0 sm:$0xff] (!%p77_p2)  ;;  %v318_v18 = vld [vmem:[%s1946_s9 + $0x8] sm:$0xff] (!%p77_p2) }
  0x12   :  { %v81_v10 = vld [vmem:[%s1967_s25] sm:$0xff] (!%p77_p2)  ;;  %v1333_v25 = vpack.c.bf16 (!%p77_p2), %v102_v24, %v101_v23  ;;  %v82_v26 = vld [vmem:[%s1967_s25 + $0x8] sm:$0xff] (!%p77_p2)  ;;  %v83_v27 = vld [vmem:[%s1967_s25 + $0x10] sm:$0xff] (!%p77_p2) }
  0x13   :  { %1159 = vmatprep.mubr.f32.mxu0 (!%p77_p2), %v81_v10  ;;  %v84_v28 = vld [vmem:[%s1967_s25 + $0x18] sm:$0xff] (!%p77_p2)  ;;  %v85_v29 = vld [vmem:[%s1967_s25 + $0x20] sm:$0xff] (!%p77_p2)  ;;  %v86_v30 = vld [vmem:[%s1967_s25 + $0x28] sm:$0xff] (!%p77_p2) }
  0x14   :  { %1312 = vmatpush3.bf16.msra.mxu0 %v1309_v6  ;;  %v317_v17 = vld [vmem:[%s1946_s9] sm:$0xff]  ;;  %v319_v20 = vld [vmem:[%s1946_s9 + $0x10] sm:$0xff]  ;;  %v320_v21 = vld [vmem:[%s1946_s9 + $0x18] sm:$0xff] }
  0x15   :  { %1314 = vmatprep.subr.bf16.mxu0 %v1313_v9  ;;  %v321_v23 = vld [vmem:[%s1946_s9 + $0x20] sm:$0xff]  ;;  %v322_v24 = vld [vmem:[%s1946_s9 + $0x28] sm:$0xff] }
  0x18   :  { %1316 = vmatpush3.bf16.msra.mxu0 %v1313_v9 }
  0x19   :  { %1318 = vmatprep.subr.bf16.mxu0 %v1317_v13 }
  0x1c   :  { %1320 = vmatpush3.bf16.msra.mxu0 %v1317_v13 }
  0x1d   :  { %1322 = vmatprep.subr.bf16.mxu0 %v1321_v16 }
  0x20   :  { %1324 = vmatpush3.bf16.msra.mxu0 %v1321_v16 }
  0x21   :  { %1326 = vmatprep.subr.bf16.mxu0 %v1325_v19 }
  0x24   :  { %1328 = vmatpush3.bf16.msra.mxu0 %v1325_v19  ;;  %v1337_v19 = vpack.c.bf16 %v318_v18, %v317_v17  ;;  %v1454_v17 = vmov 0.0|0.0   ;;  %v1456_v18 = vmov 0.0  }
  0x25   :  { %1330 = vmatprep.subr.bf16.mxu0 %v1329_v22 }
  0x26   :  { %1338 = vmatprep.subr.bf16.mxu1 %v1337_v19 }
  0x27   :  { %1340 = vmatpush3.bf16.msra.mxu1 %v1337_v19 }
  0x28   :  { %1332 = vmatpush3.bf16.msra.mxu0 %v1329_v22  ;;  %v1341_v22 = vpack.c.bf16 %v320_v21, %v319_v20 }
  0x29   :  { %1334 = vmatprep.subr.bf16.mxu0 %v1333_v25 }
  0x2a   :  { %1342 = vmatprep.subr.bf16.mxu1 %v1341_v22 }
  0x2b   :  { %1344 = vmatpush3.bf16.msra.mxu1 %v1341_v22 }
  0x2c   :  { %1336 = vmatpush3.bf16.msra.mxu0 %v1333_v25  ;;  %v323_v25 = vld [vmem:[%s1946_s9 + $0x30] sm:$0xff] }
  0x2f   :  { %1160 = vmatmul.mubr.f32.vlgmr.msra.gmra.mrb[0].mxu0 %v82_v26  ;;  %v1345_v26 = vpack.c.bf16 %v322_v24, %v321_v23  ;;  %v445_v23 = vlaneseq }
  0x30   :  { %1162 = vmatprep.mubr.f32.mxu0 %v83_v27  ;;  %v324_v27 = vld [vmem:[%s1946_s9 + $0x38] sm:$0xff] }
  0x31   :  { %1346 = vmatprep.subr.bf16.mxu1 %v1345_v26 }
  0x32   :  { %1348 = vmatpush3.bf16.msra.mxu1 %v1345_v26 }
  0x33   :  { %1163 = vmatmul.mubr.f32.gmra.mrb[2].mxu0 %v84_v28  ;;  %v1349_v28 = vpack.c.bf16 %v324_v27, %v323_v25 }
  0x34   :  { %1165 = vmatprep.mubr.f32.mxu0 %v85_v29 }
  0x35   :  { %1350 = vmatprep.subr.bf16.mxu1 %v1349_v28 }
  0x36   :  { %1352 = vmatpush3.bf16.msra.mxu1 %v1349_v28 }
  0x37   :  { %1166 = vmatmul.mubr.f32.gmra.mrb[4].mxu0 %v86_v30  ;;  %1353 = vmatprep.subr.bf16.mxu1 %v1454_v17 }
 0x102   :  { %v1161_v32 = vpop.f32.mrb[0].mxu0 }
 0x103   :  { %v176_v33 = vpop.f32.mrb[1].mxu0  ;;  %v182_v35 = vadd.f32 %v1161_v32, %v1012_v31 }
 0x104   :  { %v177_v34 = vadd.f32 %v1012_v31, %v176_v33 }
 0x105   :  { %v211_v43 = vsel %vm67_vm0, %v182_v35, 0.0 }
 0x106   :  { %v1164_v36 = vpop.f32.mrb[2].mxu0  ;;  %v208_v37 = vsel %vm67_vm0, %v177_v34, 0.0 }
 0x107   :  { %v186_v38 = vpop.f32.mrb[3].mxu0  ;;  %209 = vadd.xlane.f32.xlu0 %v208_v37  ;;  %v192_v40 = vadd.f32 %v1164_v36, %v1012_v31 }
 0x108   :  { %v187_v39 = vadd.f32 %v1012_v31, %v186_v38 }
 0x109   :  { %v217_v47 = vsel %vm67_vm0, %v192_v40, 0.0 }
 0x10a   :  { %v1167_v41 = vpop.f32.mrb[4].mxu0  ;;  %v214_v42 = vsel %vm67_vm0, %v187_v39, 0.0 }
 0x10b   :  { %v196_v44 = vpop.f32.mrb[5].mxu0  ;;  %215 = vadd.xlane.f32.xlu1 %v214_v42  ;;  %212 = vadd.xlane.f32.xlu0 %v211_v43  ;;  %v202_v46 = vadd.f32 %v1167_v41, %v1012_v31 }
 0x10c   :  { %v197_v45 = vadd.f32 %v1012_v31, %v196_v44 }
 0x10d   :  { %v223_v49 = vsel %vm67_vm0, %v202_v46, 0.0 }
 0x10e   :  { %v220_v48 = vsel %vm67_vm0, %v197_v45, 0.0 }
 0x10f   :  { %218 = vadd.xlane.f32.xlu1 %v217_v47  ;;  %221 = vadd.xlane.f32.xlu0 %v220_v48  ;;  %v1013_v48 = vld [vmem:[%s1944_s7] ss:$0 sm:$0xff] }
 0x113   :  { %224 = vadd.xlane.f32.xlu1 %v223_v49 }
 0x194   :  { %v210_v50 = vpop.xlane.xlu0 %209 }
 0x195   :  { %v227_v51 = vmul.f32 0.015625, %v210_v50  ;;  %v1014_v50 = vld [vmem:[%s1945_s8] ss:$0 sm:$0xff] }
 0x197   :  { %v1652_v52 = vsub.f32 %v177_v34, %v227_v51 }
 0x198   :  { %v216_v53 = vpop.xlane.xlu1 %215  ;;  %v213_v54 = vpop.xlane.xlu0 %212 }
 0x199   :  { %v229_v55 = vmul.f32 0.015625, %v216_v53  ;;  %v228_v56 = vmul.f32 0.015625, %v213_v54  ;;  %v239_v57 = vmul.f32 %v1652_v52, %v1652_v52 }
 0x19b   :  { %v1656_v58 = vsub.f32 %v187_v39, %v229_v55  ;;  %v1658_v59 = vsub.f32 %v182_v35, %v228_v56  ;;  %v245_v60 = vsel %vm67_vm0, %v239_v57, 0.0 }
 0x19c   :  { %v219_v61 = vpop.xlane.xlu1 %218  ;;  %246 = vadd.xlane.f32.xlu0 %v245_v60  ;;  %v222_v62 = vpop.xlane.xlu0 %221 }
 0x19d   :  { %v230_v63 = vmul.f32 0.015625, %v219_v61  ;;  %v231_v1 = vmul.f32 0.015625, %v222_v62  ;;  %v241_v2 = vmul.f32 %v1656_v58, %v1656_v58  ;;  %v240_v3 = vmul.f32 %v1658_v59, %v1658_v59 }
 0x19f   :  { %v1665_v4 = vsub.f32 %v192_v40, %v230_v63  ;;  %v1667_v5 = vsub.f32 %v197_v45, %v231_v1  ;;  %v251_v6 = vsel %vm67_vm0, %v241_v2, 0.0  ;;  %v248_v7 = vsel %vm67_vm0, %v240_v3, 0.0 }
 0x1a0   :  { %v225_v8 = vpop.xlane.xlu1 %224  ;;  %252 = vadd.xlane.f32.xlu0 %v251_v6  ;;  %249 = vadd.xlane.f32.xlu1 %v248_v7 }
 0x1a1   :  { %v232_v9 = vmul.f32 0.015625, %v225_v8  ;;  %v242_v10 = vmul.f32 %v1665_v4, %v1665_v4  ;;  %v243_v11 = vmul.f32 %v1667_v5, %v1667_v5 }
 0x1a3   :  { %v1675_v12 = vsub.f32 %v202_v46, %v232_v9  ;;  %v254_v13 = vsel %vm67_vm0, %v242_v10, 0.0  ;;  %v257_v14 = vsel %vm67_vm0, %v243_v11, 0.0 }
 0x1a4   :  { %255 = vadd.xlane.f32.xlu1 %v254_v13  ;;  %258 = vadd.xlane.f32.xlu0 %v257_v14 }
 0x1a5   :  { %v244_v15 = vmul.f32 %v1675_v12, %v1675_v12 }
 0x1a7   :  { %v260_v16 = vsel %vm67_vm0, %v244_v15, 0.0 }
 0x1a8   :  { %261 = vadd.xlane.f32.xlu1 %v260_v16 }
 0x229   :  { %v247_v29 = vpop.xlane.xlu0 %246 }
 0x22a   :  { %v263_v30 = vmul.f32 0.015625, %v247_v29  ;;  %v446_v29 = vshrl.u32 %v445_v23, 7 }
 0x22c   :  { %v269_v31 = vadd.f32 1e-05, %v263_v30 }
 0x22d   :  { %v250_v32 = vpop.xlane.xlu1 %249  ;;  %v253_v33 = vpop.xlane.xlu0 %252 }
 0x22e   :  { %1417 = vrsqrt.f32 %v269_v31  ;;  %v264_v34 = vmul.f32 0.015625, %v250_v32  ;;  %v265_v35 = vmul.f32 0.015625, %v253_v33  ;;  %v1022_v32 = vld [vmem:[%s1968_s29] ss:$0 sm:$0xff] }
 0x22f   :  { %vm458_vm2 = vcmp.eq.s32.totalorder %v446_v29, %v1022_v32 }
 0x230   :  { %v270_v36 = vadd.f32 1e-05, %v264_v34  ;;  %v271_v37 = vadd.f32 1e-05, %v265_v35 }
 0x231   :  { %v256_v38 = vpop.xlane.xlu1 %255  ;;  %v259_v39 = vpop.xlane.xlu0 %258 }
 0x232   :  { %1419 = vrsqrt.f32 %v270_v36  ;;  %v266_v40 = vmul.f32 0.015625, %v256_v38  ;;  %v267_v41 = vmul.f32 0.015625, %v259_v39  ;;  %v447_v36 = vadd.s32 8, %v446_v29 }
 0x233   :  { %1421 = vrsqrt.f32 %v271_v37  ;;  %v1023_v38 = vsel %vm458_vm2, 1.0, %v1456_v18  ;;  %v448_v39 = vadd.s32 16, %v446_v29 }
 0x234   :  { %v272_v42 = vadd.f32 1e-05, %v266_v40  ;;  %v273_v43 = vadd.f32 1e-05, %v267_v41  ;;  %vm459_vm4 = vcmp.eq.s32.totalorder %v447_v36, %v1022_v32 }
 0x235   :  { %v262_v44 = vpop.xlane.xlu1 %261  ;;  %v1024_v40 = vsel %vm459_vm4, 1.0, %v1456_v18  ;;  %vm460_vm5 = vcmp.eq.s32.totalorder %v448_v39, %v1022_v32 }
 0x236   :  { %1423 = vrsqrt.f32 %v272_v42  ;;  %v268_v45 = vmul.f32 0.015625, %v262_v44  ;;  %v1025_v41 = vsel %vm460_vm5, 1.0, %v1456_v18  ;;  %v467_v42 = vld [vmem:[#allocation2] sm:$0xff] }
 0x237   :  { %1425 = vrsqrt.f32 %v273_v43 }
 0x238   :  { %v1418_v46 = vpop.eup %1417  ;;  %v274_v47 = vadd.f32 1e-05, %v268_v45 }
 0x239   :  { %v281_v49 = vmul.f32 %v1418_v46, %v1652_v52  ;;  %v468_v46 = vld [vmem:[#allocation2 + $0x8] sm:$0xff] }
 0x23a   :  { %1427 = vrsqrt.f32 %v274_v47 }
 0x23b   :  { %v293_v51 = vmul.f32 %v1013_v48, %v281_v49 }
 0x23c   :  { %v1420_v53 = vpop.eup %1419 }
 0x23d   :  { %v1422_v54 = vpop.eup %1421  ;;  %v305_v55 = vadd.f32 %v1014_v50, %v293_v51  ;;  %v282_v56 = vmul.f32 %v1420_v53, %v1658_v59 }
 0x23e   :  { %v283_v57 = vmul.f32 %v1422_v54, %v1656_v58 }
 0x23f   :  { %v311_v60 = vmax.f32 %v305_v55, 0.0  ;;  %v294_v61 = vmul.f32 %v1013_v48, %v282_v56 }
 0x240   :  { %v1424_v62 = vpop.eup %1423  ;;  %v295_v63 = vmul.f32 %v1013_v48, %v283_v57 }
 0x241   :  { %v1426_v1 = vpop.eup %1425  ;;  %1184 = vmatprep.mubr.msk.f32.mxu1 %vm67_vm0, %v311_v60  ;;  %v306_v52 = vadd.f32 %v1014_v50, %v294_v61  ;;  %v284_v2 = vmul.f32 %v1424_v62, %v1665_v4 }
 0x242   :  { %v307_v3 = vadd.f32 %v1014_v50, %v295_v63  ;;  %v285_v6 = vmul.f32 %v1426_v1, %v1667_v5 }
 0x243   :  { %v312_v7 = vmax.f32 %v306_v52, 0.0  ;;  %v296_v8 = vmul.f32 %v1013_v48, %v284_v2 }
 0x244   :  { %v1428_v9 = vpop.eup %1427  ;;  %v313_v10 = vmax.f32 %v307_v3, 0.0  ;;  %v297_v59 = vmul.f32 %v1013_v48, %v285_v6 }
 0x245   :  { %1185 = vmatmul.mubr.msk.f32.vlgmr.msra.gmra.mrb[0].mxu1 %vm67_vm0, %v312_v7  ;;  %v308_v58 = vadd.f32 %v1014_v50, %v296_v8  ;;  %v286_v11 = vmul.f32 %v1428_v9, %v1675_v12  ;;  %v1015_v12 = vld [vmem:[%s1947_s10] ss:$0 sm:$0xff] }
 0x246   :  { %1187 = vmatprep.mubr.msk.f32.mxu1 %vm67_vm0, %v313_v10  ;;  %v309_v13 = vadd.f32 %v1014_v50, %v297_v59 }
 0x247   :  { %v314_v14 = vmax.f32 %v308_v58, 0.0  ;;  %v298_v15 = vmul.f32 %v1013_v48, %v286_v11 }
 0x248   :  { %v315_v16 = vmax.f32 %v309_v13, 0.0 }
 0x249   :  { %1188 = vmatmul.mubr.msk.f32.gmra.mrb[2].mxu1 %vm67_vm0, %v314_v14  ;;  %v310_v4 = vadd.f32 %v1014_v50, %v298_v15  ;;  %v469_v50 = vld [vmem:[#allocation2 + $0x10] sm:$0xff] }
 0x24a   :  { %1190 = vmatprep.mubr.msk.f32.mxu1 %vm67_vm0, %v315_v16 }
 0x24b   :  { %v316_v5 = vmax.f32 %v310_v4, 0.0 }
 0x24d   :  { %1191 = vmatmul.mubr.msk.f32.gmra.mrb[4].mxu1 %vm67_vm0, %v316_v5 }
 0x24e   :  { %1205 = vmatprep.mubr.msk.f32.mxu1 %vm1455_vm1, %v1456_v18 }
 0x318   :  { %v1186_v19 = vpop.f32.mrb[0].mxu1 }
 0x319   :  { %v422_v20 = vadd.f32 %v1186_v19, %v1015_v12  ;;  %v416_v21 = vpop.f32.mrb[1].mxu1 }
 0x31a   :  { %v417_v22 = vadd.f32 %v1015_v12, %v416_v21 }
 0x31c   :  { %v1354_v24 = vpack.c.bf16 %v422_v20, %v417_v22  ;;  %v1189_v25 = vpop.f32.mrb[2].mxu1 }
 0x31d   :  { %v432_v26 = vadd.f32 %v1189_v25, %v1015_v12  ;;  %v426_v27 = vpop.f32.mrb[3].mxu1 }
 0x31e   :  { %v427_v28 = vadd.f32 %v1015_v12, %v426_v27  ;;  %1355 = vmatpush3.bf16.msra.mxu1 %v1354_v24 }
 0x31f   :  { %1356 = vmatprep.subr.bf16.mxu1 %v1454_v17 }
 0x320   :  { %v1357_v30 = vpack.c.bf16 %v432_v26, %v427_v28  ;;  %v1192_v31 = vpop.f32.mrb[4].mxu1 }
 0x321   :  { %v442_v33 = vadd.f32 %v1192_v31, %v1015_v12  ;;  %v436_v34 = vpop.f32.mrb[5].mxu1 }
 0x322   :  { %v437_v35 = vadd.f32 %v1015_v12, %v436_v34  ;;  %1358 = vmatpush3.bf16.msra.mxu1 %v1357_v30 }
 0x323   :  { %1359 = vmatprep.subr.bf16.mxu1 %v1454_v17 }
 0x324   :  { %v1360_v37 = vpack.c.bf16 %v442_v33, %v437_v35 }
 0x326   :  { %1361 = vmatpush3.bf16.msra.mxu1 %v1360_v37 }
 0x329   :  { %1206 = vmatmul.mubr.msk.f32.vlgmr.msra.gmra.mrb[6].mxu1 %vm470_vm3, %v1023_v38 }
 0x32a   :  { %1208 = vmatprep.mubr.msk.f32.mxu1 %vm1455_vm1, %v1456_v18 }
 0x32d   :  { %1209 = vmatmul.mubr.msk.f32.gmra.mrb[8].mxu1 %vm470_vm3, %v1024_v40 }
 0x32e   :  { %1211 = vmatprep.mubr.msk.f32.mxu1 %vm1455_vm1, %v1456_v18 }
 0x331   :  { %1212 = vmatmul.mubr.msk.f32.gmra.mrb[10].mxu1 %vm470_vm3, %v1025_v41 }
 0x3fc   :  { %v546_v43 = vpop.f32.mrb[6].mxu1 }
 0x3fd   :  { %v560_v44 = vadd.f32 %v546_v43, %v467_v42  ;;  %v1207_v45 = vpop.f32.mrb[7].mxu1 }
 0x3ff   :  { %563 = vst.msk [vmem:[#allocation2] sm:$0xff] %vm67_vm0, %v560_v44 }
 0x400   :  { %v551_v47 = vpop.f32.mrb[8].mxu1 }
 0x401   :  { %v561_v48 = vadd.f32 %v551_v47, %v468_v46  ;;  %v1210_v49 = vpop.f32.mrb[9].mxu1 }
 0x403   :  { %564 = vst.msk [vmem:[#allocation2 + $0x8] sm:$0xff] %vm67_vm0, %v561_v48 }
 0x404   :  { %v556_v51 = vpop.f32.mrb[10].mxu1 }
 0x405   :  { %v562_v53 = vadd.f32 %v556_v51, %v469_v50  ;;  %v1213_v54 = vpop.f32.mrb[11].mxu1 }
 0x407   :  { %565 = vst.msk [vmem:[#allocation2 + $0x10] sm:$0xff] %vm67_vm0, %v562_v53 }
 0x408 PF:  { %v569_v55 = vld [vmem:[#allocation2] sm:$0xff]  ;;  %v578_v1 = vld [vmem:[%s1950_s13 + $0x8] sm:$0xff]  ;;  %v579_v52 = vld [vmem:[%s1950_s13 + $0x10] sm:$0xff]  ;;  %v1457_v2 = vmov 0.0|0.0   ;;  %s1969_s6 = sld [smem:[#allocation10_spill]]  ;;  %s1458_s4 = smov 64  }
 0x409   :  { %v604_v60 = vsel %vm67_vm0, %v569_v55, 0.0  ;;  %v577_v63 = vld [vmem:[%s1950_s13] sm:$0xff]  ;;  %1362 = vmatprep.subr.bf16.mxu0 %v1457_v2  ;;  %v580_v6 = vld [vmem:[%s1950_s13 + $0x18] sm:$0xff]  ;;  %1386 = vmatprep.subr.bf16.mxu1 %v1457_v2  ;;  %v582_v9 = vld [vmem:[%s1950_s13 + $0x28] sm:$0xff]  ;;  %vm1459_vm6 = vmmov 0  }
 0x40a   :  { %v570_v56 = vld [vmem:[#allocation2 + $0x8] sm:$0xff]  ;;  %605 = vadd.xlane.f32.xlu0 %v604_v60  ;;  %v1363_v3 = vpack.c.bf16 %v578_v1, %v577_v63  ;;  %v1366_v7 = vpack.c.bf16 %v580_v6, %v579_v52  ;;  %v581_v8 = vld [vmem:[%s1950_s13 + $0x20] sm:$0xff]  ;;  %v583_v12 = vld [vmem:[%s1950_s13 + $0x30] sm:$0xff]  ;;  %1246 = vmatprep.mubr.msk.f32.mxu0 %vm1459_vm6, %v1453_v0 }
 0x40b   :  { %v607_v62 = vsel %vm67_vm0, %v570_v56, 0.0  ;;  %v1369_v10 = vpack.c.bf16 %v582_v9, %v581_v8  ;;  %v584_v19 = vld [vmem:[%s1950_s13 + $0x38] sm:$0xff]  ;;  %v585_v21 = vld [vmem:[%s1950_s13 + $0x40] sm:$0xff]  ;;  %v586_v22 = vld [vmem:[%s1950_s13 + $0x48] sm:$0xff]  ;;  %1271 = vmatprep.mubr.msk.f32.mxu1 %vm1459_vm6, %v1453_v0 }
 0x40c   :  { %1364 = vmatpush3.bf16.msra.mxu0 %v1363_v3  ;;  %v1372_v20 = vpack.c.bf16 %v584_v19, %v583_v12  ;;  %v1375_v23 = vpack.c.bf16 %v586_v22, %v585_v21  ;;  %v587_v24 = vld [vmem:[%s1950_s13 + $0x50] sm:$0xff]  ;;  %v588_v25 = vld [vmem:[%s1950_s13 + $0x58] sm:$0xff]  ;;  %v589_v26 = vld [vmem:[%s1950_s13 + $0x60] sm:$0xff] }
 0x40d   :  { %1365 = vmatprep.subr.bf16.mxu0 %v1457_v2  ;;  %v1378_v28 = vpack.c.bf16 %v588_v25, %v587_v24  ;;  %v590_v29 = vld [vmem:[%s1950_s13 + $0x68] sm:$0xff]  ;;  %v591_v31 = vld [vmem:[%s1950_s13 + $0x70] sm:$0xff]  ;;  %v592_v32 = vld [vmem:[%s1950_s13 + $0x78] sm:$0xff] }
 0x40e   :  { %v1736_v57 = vld [vmem:[#allocation2 + $0x10] sm:$0xff]  ;;  %608 = vadd.xlane.f32.xlu0 %v607_v62  ;;  %v573_v18 = vld [vmem:[%s1969_s6 + $0x8] sm:$0xff]  ;;  %v572_v27 = vld [vmem:[%s1969_s6] sm:$0xff]  ;;  %v1381_v30 = vpack.c.bf16 %v590_v29, %v589_v26  ;;  %v1384_v33 = vpack.c.bf16 %v592_v32, %v591_v31 }
 0x40f   :  { %v610_v61 = vsel %vm67_vm0, %v1736_v57, 0.0  ;;  %v574_v39 = vld [vmem:[%s1969_s6 + $0x10] sm:$0xff]  ;;  %v594_v40 = vld [vmem:[%s1952_s15] sm:$0xff]  ;;  %v595_v41 = vld [vmem:[%s1952_s15 + $0x8] sm:$0xff] }
 0x410   :  { %611 = vadd.xlane.f32.xlu1 %v610_v61  ;;  %1367 = vmatpush3.bf16.msra.mxu0 %v1366_v7  ;;  %v596_v42 = vld [vmem:[%s1952_s15 + $0x10] sm:$0xff]  ;;  %v1387_v43 = vpack.c.bf16 %v595_v41, %v594_v40  ;;  %v597_v44 = vld [vmem:[%s1952_s15 + $0x18] sm:$0xff]  ;;  %v598_v46 = vld [vmem:[%s1952_s15 + $0x20] sm:$0xff] }
 0x411   :  { %1368 = vmatprep.subr.bf16.mxu0 %v1457_v2  ;;  %v1390_v45 = vpack.c.bf16 %v597_v44, %v596_v42  ;;  %v599_v47 = vld [vmem:[%s1952_s15 + $0x28] sm:$0xff]  ;;  %v1030_v61 = vld [vmem:[%s1949_s12] ss:$0 sm:$0xff]  ;;  %v867_v41 = vld [vmem:[%s1954_s17 + $0x30] sm:$0xff] }
 0x412   :  { %1388 = vmatpush3.bf16.msra.mxu1 %v1387_v43  ;;  %v1393_v48 = vpack.c.bf16 %v599_v47, %v598_v46  ;;  %v1031_v19 = vld [vmem:[%s1951_s14] ss:$0 sm:$0xff]  ;;  %v862_v21 = vld [vmem:[%s1954_s17 + $0x8] sm:$0xff]  ;;  %v868_v42 = vld [vmem:[%s1954_s17 + $0x38] sm:$0xff] }
 0x413   :  { %1389 = vmatprep.subr.bf16.mxu1 %v1457_v2  ;;  %v1408_v43 = vpack.c.bf16 %v868_v42, %v867_v41 }
 0x414   :  { %1370 = vmatpush3.bf16.msra.mxu0 %v1369_v10 }
 0x415   :  { %1371 = vmatprep.subr.bf16.mxu0 %v1457_v2 }
 0x416   :  { %1391 = vmatpush3.bf16.msra.mxu1 %v1390_v45 }
 0x417   :  { %1392 = vmatprep.subr.bf16.mxu1 %v1457_v2 }
 0x418   :  { %1373 = vmatpush3.bf16.msra.mxu0 %v1372_v20  ;;  %v861_v20 = vld [vmem:[%s1954_s17] sm:$0xff] }
 0x419   :  { %1374 = vmatprep.subr.bf16.mxu0 %v1457_v2  ;;  %v1399_v25 = vpack.c.bf16 %v862_v21, %v861_v20 }
 0x41a   :  { %1394 = vmatpush3.bf16.msra.mxu1 %v1393_v48 }
 0x41b   :  { %1395 = vmatprep.subr.bf16.mxu1 %v1457_v2 }
 0x41c   :  { %1376 = vmatpush3.bf16.msra.mxu0 %v1375_v23 }
 0x41d   :  { %1377 = vmatprep.subr.bf16.mxu0 %v1457_v2 }
 0x420   :  { %1379 = vmatpush3.bf16.msra.mxu0 %v1378_v28  ;;  %v864_v28 = vld [vmem:[%s1954_s17 + $0x18] sm:$0xff] }
 0x421   :  { %1380 = vmatprep.subr.bf16.mxu0 %v1457_v2 }
 0x424   :  { %1382 = vmatpush3.bf16.msra.mxu0 %v1381_v30 }
 0x425   :  { %1383 = vmatprep.subr.bf16.mxu0 %v1457_v2 }
 0x428   :  { %1385 = vmatpush3.bf16.msra.mxu0 %v1384_v33 }
 0x497   :  { %v606_v59 = vpop.xlane.xlu0 %605 }
 0x498   :  { %v614_v58 = vmul.f32 0.015625, %v606_v59 }
 0x49a   :  { %v1765_v11 = vsub.f32 %v569_v55, %v614_v58 }
 0x49b   :  { %v609_v13 = vpop.xlane.xlu0 %608 }
 0x49c   :  { %v615_v14 = vmul.f32 0.015625, %v609_v13  ;;  %v620_v15 = vmul.f32 %v1765_v11, %v1765_v11 }
 0x49d   :  { %v612_v34 = vpop.xlane.xlu1 %611 }
 0x49e   :  { %v1769_v16 = vsub.f32 %v570_v56, %v615_v14  ;;  %v623_v4 = vsel %vm67_vm0, %v620_v15, 0.0  ;;  %v616_v35 = vmul.f32 0.015625, %v612_v34  ;;  %v865_v34 = vld [vmem:[%s1954_s17 + $0x20] sm:$0xff] }
 0x49f   :  { %624 = vadd.xlane.f32.xlu1 %v623_v4 }
 0x4a0   :  { %v621_v5 = vmul.f32 %v1769_v16, %v1769_v16  ;;  %v619_v36 = vsub.f32 %v1736_v57, %v616_v35  ;;  %v1029_v57 = vld [vmem:[%s1948_s11] ss:$0 sm:$0xff]  ;;  %v866_v35 = vld [vmem:[%s1954_s17 + $0x28] sm:$0xff] }
 0x4a2   :  { %v626_v17 = vsel %vm67_vm0, %v621_v5, 0.0  ;;  %v622_v37 = vmul.f32 %v619_v36, %v619_v36 }
 0x4a3   :  { %627 = vadd.xlane.f32.xlu0 %v626_v17  ;;  %v600_v17 = vld [vmem:[%s1952_s15 + $0x30] sm:$0xff] }
 0x4a4   :  { %v629_v38 = vsel %vm67_vm0, %v622_v37, 0.0 }
 0x4b0   :  { %667 = vrot.lane.b32.xlu1 %v573_v18, %s1458_s4  ;;  %v601_v18 = vld [vmem:[%s1952_s15 + $0x38] sm:$0xff] }
 0x4b1   :  { %v1396_v12 = vpack.c.bf16 %v601_v18, %v600_v17 }
 0x4b3   :  { %1397 = vmatpush3.bf16.msra.mxu1 %v1396_v12 }
 0x4b4   :  { %1398 = vmatprep.subr.bf16.mxu1 %v1457_v2 }
 0x4b9   :  { %665 = vrot.lane.b32.xlu0 %v572_v27, %s1458_s4  ;;  %v863_v27 = vld [vmem:[%s1954_s17 + $0x10] sm:$0xff] }
 0x4ba   :  { %v1402_v32 = vpack.c.bf16 %v864_v28, %v863_v27 }
 0x4d4   :  { %630 = vadd.xlane.f32.xlu1 %v629_v38 }
 0x4e5   :  { %669 = vrot.lane.b32.xlu1 %v574_v39, %s1458_s4 }
 0x52c   :  { %v625_v49 = vpop.xlane.xlu1 %624 }
 0x52d   :  { %v632_v50 = vmul.f32 0.015625, %v625_v49 }
 0x52f   :  { %v635_v51 = vadd.f32 1e-05, %v632_v50 }
 0x530   :  { %v628_v53 = vpop.xlane.xlu0 %627  ;;  %v668_v9 = vpop.permute.xlu1 %667 }
 0x531   :  { %1429 = vrsqrt.f32 %v635_v51  ;;  %v633_v54 = vmul.f32 0.015625, %v628_v53 }
 0x533   :  { %v636_v55 = vadd.f32 1e-05, %v633_v54  ;;  %v1036_v54 = vld [vmem:[%s1955_s18] ss:$0 sm:$0xff] }
 0x534   :  { %v666_v1 = vpop.permute.xlu0 %665 }
 0x535   :  { %1431 = vrsqrt.f32 %v636_v55 }
 0x53b   :  { %v1430_v56 = vpop.eup %1429 }
 0x53c   :  { %v641_v60 = vmul.f32 %v1430_v56, %v1765_v11 }
 0x53e   :  { %v650_v62 = vmul.f32 %v1029_v57, %v641_v60 }
 0x53f   :  { %v1432_v63 = vpop.eup %1431 }
 0x540   :  { %v659_v52 = vadd.f32 %v1030_v61, %v650_v62  ;;  %v642_v3 = vmul.f32 %v1432_v63, %v1769_v16 }
 0x542   :  { %v674_v6 = vsel %vm67_vm0, %v659_v52, %v666_v1  ;;  %v651_v7 = vmul.f32 %v1029_v57, %v642_v3 }
 0x543   :  { %1247 = vmatmul.mubr.f32.vlgmr.msra.gmra.mrb[0].mxu0 %v674_v6 }
 0x544   :  { %1249 = vmatprep.mubr.msk.f32.mxu0 %vm1459_vm6, %v1453_v0  ;;  %v660_v8 = vadd.f32 %v1030_v61, %v651_v7 }
 0x546   :  { %v675_v10 = vsel %vm67_vm0, %v660_v8, %v668_v9 }
 0x547   :  { %1250 = vmatmul.mubr.f32.gmra.mrb[2].mxu0 %v675_v10 }
 0x548   :  { %1252 = vmatprep.mubr.msk.f32.mxu0 %vm1459_vm6, %v1453_v0 }
 0x561   :  { %v631_v59 = vpop.xlane.xlu1 %630 }
 0x562   :  { %v634_v58 = vmul.f32 0.015625, %v631_v59 }
 0x564   :  { %v637_v11 = vadd.f32 1e-05, %v634_v58 }
 0x565   :  { %v670_v16 = vpop.permute.xlu1 %669 }
 0x566   :  { %1433 = vrsqrt.f32 %v637_v11 }
 0x570   :  { %v1434_v13 = vpop.eup %1433 }
 0x571   :  { %v643_v14 = vmul.f32 %v1434_v13, %v619_v36  ;;  %v1405_v36 = vpack.c.bf16 %v866_v35, %v865_v34 }
 0x573   :  { %v652_v15 = vmul.f32 %v1029_v57, %v643_v14 }
 0x575   :  { %v661_v4 = vadd.f32 %v1030_v61, %v652_v15 }
 0x577   :  { %v676_v5 = vsel %vm67_vm0, %v661_v4, %v670_v16 }
 0x578   :  { %1253 = vmatmul.mubr.f32.gmra.mrb[4].mxu0 %v676_v5 }
 0x616   :  { %v749_v22 = vpop.f32.mrb[0].mxu0 }
 0x617   :  { %v750_v23 = vadd.f32 %v1031_v19, %v749_v22  ;;  %v1248_v24 = vpop.f32.mrb[1].mxu0 }
 0x619   :  { %v763_v26 = vmax.f32 %v750_v23, 0.0 }
 0x61a   :  { %v754_v29 = vpop.f32.mrb[2].mxu0 }
 0x61b   :  { %v755_v30 = vadd.f32 %v1031_v19, %v754_v29  ;;  %v1251_v31 = vpop.f32.mrb[3].mxu0  ;;  %1272 = vmatmul.mubr.msk.f32.vlgmr.msra.gmra.mrb[0].mxu1 %vm67_vm0, %v763_v26 }
 0x61c   :  { %1274 = vmatprep.mubr.msk.f32.mxu1 %vm1459_vm6, %v1453_v0  ;;  %1400 = vmatpush3.bf16.msra.mxu1 %v1399_v25 }
 0x61d   :  { %v764_v33 = vmax.f32 %v755_v30, 0.0  ;;  %1401 = vmatprep.subr.bf16.mxu1 %v1457_v2 }
 0x61f   :  { %1275 = vmatmul.mubr.msk.f32.gmra.mrb[2].mxu1 %vm67_vm0, %v764_v33 }
 0x620   :  { %1277 = vmatprep.mubr.msk.f32.mxu1 %vm1459_vm6, %v1453_v0  ;;  %1403 = vmatpush3.bf16.msra.mxu1 %v1402_v32 }
 0x621   :  { %1404 = vmatprep.subr.bf16.mxu1 %v1457_v2 }
 0x624   :  { %1406 = vmatpush3.bf16.msra.mxu1 %v1405_v36 }
 0x625   :  { %1407 = vmatprep.subr.bf16.mxu1 %v1457_v2  ;;  %v1032_v2 = vld [vmem:[%s1953_s16] ss:$0 sm:$0xff] }
 0x628   :  { %1409 = vmatpush3.bf16.msra.mxu1 %v1408_v43 }
 0x64b   :  { %v759_v37 = vpop.f32.mrb[4].mxu0 }
 0x64c   :  { %v760_v38 = vadd.f32 %v1031_v19, %v759_v37  ;;  %v1254_v39 = vpop.f32.mrb[5].mxu0 }
 0x64e   :  { %v765_v40 = vmax.f32 %v760_v38, 0.0 }
 0x650   :  { %1278 = vmatmul.mubr.msk.f32.gmra.mrb[4].mxu1 %vm67_vm0, %v765_v40 }
 0x651   :  { %1296 = vmatprep.mubr.msk.f32.mxu1 %vm1459_vm6, %v1453_v0 }
 0x6ee   :  { %v847_v44 = vpop.f32.mrb[0].mxu1 }
 0x6ef   :  { %v848_v45 = vadd.f32 %v1032_v2, %v847_v44  ;;  %v1273_v46 = vpop.f32.mrb[1].mxu1 }
 0x6f1   :  { %1297 = vmatmul.mubr.msk.f32.vlgmr.msra.gmra.mrb[6].mxu1 %vm67_vm0, %v848_v45 }
 0x6f2   :  { %v852_v47 = vpop.f32.mrb[2].mxu1  ;;  %1299 = vmatprep.mubr.msk.f32.mxu1 %vm1459_vm6, %v1453_v0 }
 0x6f3   :  { %v853_v48 = vadd.f32 %v1032_v2, %v852_v47  ;;  %v1276_v49 = vpop.f32.mrb[3].mxu1 }
 0x6f5   :  { %1300 = vmatmul.mubr.msk.f32.gmra.mrb[8].mxu1 %vm67_vm0, %v853_v48 }
 0x6f6   :  { %1302 = vmatprep.mubr.msk.f32.mxu1 %vm1459_vm6, %v1453_v0  ;;  %v1040_v0 = vld [vmem:[%s1956_s19] ss:$0 sm:$0xff] }
 0x723   :  { %v857_v50 = vpop.f32.mrb[4].mxu1 }
 0x724   :  { %v858_v51 = vadd.f32 %v1032_v2, %v857_v50  ;;  %v1279_v53 = vpop.f32.mrb[5].mxu1 }
 0x726   :  { %1303 = vmatmul.mubr.msk.f32.gmra.mrb[10].mxu1 %vm67_vm0, %v858_v51 }
 0x7c4   :  { %v951_v55 = vpop.f32.mrb[6].mxu1 }
 0x7c5   :  { %v952_v56 = vadd.f32 %v1036_v54, %v951_v55  ;;  %v1298_v57 = vpop.f32.mrb[7].mxu1 }
 0x7c7   :  { %1435 = vtanh.f32 %v952_v56 }
 0x7c8   :  { %v956_v60 = vpop.f32.mrb[8].mxu1 }
 0x7c9   :  { %v957_v61 = vadd.f32 %v1036_v54, %v956_v60  ;;  %v1301_v62 = vpop.f32.mrb[9].mxu1 }
 0x7cb   :  { %1437 = vtanh.f32 %v957_v61 }
 0x7d1   :  { %v1436_v63 = vpop.eup %1435 }
 0x7d2   :  { %v975_v1 = vmul.f32 %v1436_v63, %v1040_v0 }
 0x7d4   :  { %v978_v52 = vsel %vm67_vm0, %v975_v1, 0.0 }
 0x7d5   :  { %v1438_v3 = vpop.eup %1437  ;;  %979 = vadd.xlane.f32.xlu1 %v978_v52 }
 0x7d6   :  { %v976_v6 = vmul.f32 %v1438_v3, %v1040_v0 }
 0x7d8   :  { %v981_v7 = vsel %vm67_vm0, %v976_v6, 0.0 }
 0x7d9   :  { %982 = vadd.xlane.f32.xlu0 %v981_v7 }
 0x7f9   :  { %v961_v8 = vpop.f32.mrb[10].mxu1 }
 0x7fa   :  { %v962_v9 = vadd.f32 %v1036_v54, %v961_v8  ;;  %v1304_v10 = vpop.f32.mrb[11].mxu1 }
 0x7fc   :  { %1439 = vtanh.f32 %v962_v9 }
 0x806   :  { %v1440_v59 = vpop.eup %1439 }
 0x807   :  { %v977_v58 = vmul.f32 %v1440_v59, %v1040_v0 }
 0x809   :  { %v984_v11 = vsel %vm67_vm0, %v977_v58, 0.0 }
 0x80a   :  { %985 = vadd.xlane.f32.xlu0 %v984_v11 }
 0x862   :  { %v980_v13 = vpop.xlane.xlu1 %979 }
 0x863   :  { %v987_v14 = vsub.f32 0.0, %v980_v13 }
 0x865   :  { %v990_v15 = vmul.f32 1.442695, %v987_v14 }
 0x866   :  { %v983_v16 = vpop.xlane.xlu0 %982 }
 0x867   :  { %1441 = vpow2.f32 %v990_v15  ;;  %v988_v4 = vsub.f32 0.0, %v983_v16 }
 0x869   :  { %v992_v5 = vmul.f32 1.442695, %v988_v4 }
 0x86b   :  { %1443 = vpow2.f32 %v992_v5 }
 0x871   :  { %v1442_v17 = vpop.eup %1441 }
 0x872   :  { %v996_v18 = vadd.f32 1.0, %v1442_v17 }
 0x874   :  { %1445 = vrcp.f32 %v996_v18 }
 0x875   :  { %v1444_v12 = vpop.eup %1443 }
 0x876   :  { %v997_v19 = vadd.f32 1.0, %v1444_v12 }
 0x878   :  { %1447 = vrcp.f32 %v997_v19 }
 0x87e   :  { %v1446_v20 = vpop.eup %1445 }
 0x87f   :  { %1005 = vst [vmem:[%s1957_s20] sm:$0xff] %v1446_v20 }
 0x882   :  { %v1448_v21 = vpop.eup %1447 }
 0x883   :  { %1006 = vst [vmem:[%s1957_s20 + $0x8] sm:$0xff] %v1448_v21 }
 0x897   :  { %v986_v22 = vpop.xlane.xlu0 %985 }
 0x898   :  { %v989_v23 = vsub.f32 0.0, %v986_v22 }
 0x89a   :  { %v994_v24 = vmul.f32 1.442695, %v989_v23 }
 0x89c   :  { %1449 = vpow2.f32 %v994_v24 }
 0x8a6   :  { %v1450_v25 = vpop.eup %1449 }
 0x8a7   :  { %v998_v26 = vadd.f32 1.0, %v1450_v25 }
 0x8a9   :  { %1451 = vrcp.f32 %v998_v26 }
 0x8b3   :  { %v1452_v27 = vpop.eup %1451 }
 0x8b4   :  { %1007 = vst [vmem:[%s1957_s20 + $0x10] sm:$0xff] %v1452_v27 }

</bundles_post_ra>
